<compile_context>
chip_gen: v7x
topology: tpu7x:2x2x1
jax: 0.10.0
libtpu: 0.0.40
codegen_flags: <defaults>
</compile_context>

<pallas_src>
import jax
import jax.numpy as jnp
from jax.experimental import pallas as pl
from jax.experimental.pallas import tpu as pltpu


# ----------------------------- Pallas kernel -------------------------------
def _conv3x3_leaky_kernel(x_ref, w_ref, b_ref, o_ref):
    """Fused 3x3 same-padding conv + bias + LeakyReLU(0.01) for one image and
    one band of output rows.

    x_ref: (H+2, W+2, Cin)   zero-padded input image (f32, VMEM, reused across h)
    w_ref: (3, 3, Cin, Cout) conv weights (bf16, VMEM)
    b_ref: (1, Cout)         bias (f32, VMEM)
    o_ref: (th, W, Cout)     output rows [h*th, (h+1)*th) (f32, VMEM)
    """
    th, W, Cout = o_ref.shape
    Cin = x_ref.shape[-1]
    h = pl.program_id(1)
    row0 = h * th

    # 9 shifted taps from the halo'd VMEM block -> 9 MXU matmuls, f32 accumulate.
    acc = jnp.zeros((th * W, Cout), jnp.float32)
    for dy in range(3):
        for dx in range(3):
            tap = x_ref[pl.ds(row0 + dy, th), pl.ds(dx, W), :]      # (th, W, Cin)
            tap = tap.reshape(th * W, Cin).astype(jnp.bfloat16)     # bf16 MXU input
            acc = acc + jnp.dot(tap, w_ref[dy, dx],
                                preferred_element_type=jnp.float32)

    y = acc + b_ref[...]                      # bias once per output tile (f32)
    y = jnp.where(y > 0, y, 0.01 * y)         # LeakyReLU, PyTorch default slope
    o_ref[...] = y.reshape(th, W, Cout).astype(o_ref.dtype)


# ------------------------------ JAX glue ------------------------------------
def _pick_tile_h(H, target=8):
    """Largest divisor of H that is <= target (so blocks always tile H exactly)."""
    if H <= target:
        return H
    for th in range(target, 0, -1):
        if H % th == 0:
            return th
    return H


def _conv3x3_leaky(x_nhwc, w_kkio, b_2d, *, tile_h=8):
    """3x3 same conv (stride 1, pad 1) + LeakyReLU(0.01), fused in Pallas.

    x_nhwc : (N, H, W, Cin) f32
    w_kkio : (3, 3, Cin, Cout) bf16   (pre-transposed, pre-cast)
    b_2d   : (1, Cout) f32
    """
    N, H, W, Cin = x_nhwc.shape
    Cout = w_kkio.shape[-1]
    th = _pick_tile_h(H, tile_h)

    # Zero spatial padding only (1 px halo); ~1.02x blow-up, fused under jit.
    xp = jnp.pad(x_nhwc, ((0, 0), (1, 1), (1, 1), (0, 0)))

    grid = (N, H // th)  # e.g. (2, 2) = 4 parallel steps for the toy shape
    return pl.pallas_call(
        _conv3x3_leaky_kernel,
        out_shape=jax.ShapeDtypeStruct((N, H, W, Cout), jnp.float32),
        grid=grid,
        in_specs=[
            # Full padded image per batch element. Block index is constant in h,
            # so consecutive h-steps reuse the resident VMEM block (no re-DMA):
            # each input byte is read from HBM once per layer (vs 9x im2col).
            pl.BlockSpec((None, H + 2, W + 2, Cin), lambda n, h: (n, 0, 0, 0)),
            pl.BlockSpec((3, 3, Cin, Cout), lambda n, h: (0, 0, 0, 0)),
            pl.BlockSpec((1, Cout), lambda n, h: (0, 0)),
        ],
        out_specs=pl.BlockSpec((None, th, W, Cout), lambda n, h: (n, h, 0, 0)),
        compiler_params=pltpu.CompilerParams(
            dimension_semantics=("parallel", "parallel"),
            vmem_limit_bytes=32 * 1024 * 1024,  # safe on v5e/v6e/v7x; blocks are tiny
        ),
    )(xp, w_kkio, b_2d)


def init_encoder_params(cin, key):
    """Deterministic synthetic params matching the nn.Conv2d shapes."""
    keys = jax.random.split(key, 6)

    def conv_params(kw, kb, cout, cin_):
        w = jax.random.normal(kw, (cout, cin_, 3, 3), jnp.float32) * 0.05
        b = jax.random.normal(kb, (cout,), jnp.float32) * 0.05
        return w, b

    w1, b1 = conv_params(keys[0], keys[1], 256, cin)
    w2, b2 = conv_params(keys[2], keys[3], 128, 256)
    w3, b3 = conv_params(keys[4], keys[5], 128, 128)
    return ((w1, b1), (w2, b2), (w3, b3))


def prepare_params(params):
    """One-time weight transform (hoisted out of the forward path):
    (Cout, Cin, 3, 3) f32 -> (3, 3, Cin, Cout) bf16, bias -> (1, Cout) f32.
    The (kh, kw, cin) ordering matches the in-kernel tap loop."""
    prepared = []
    for w, b in params:
        w_kkio = jnp.transpose(w, (2, 3, 1, 0)).astype(jnp.bfloat16)
        prepared.append((w_kkio, b.reshape(1, -1).astype(jnp.float32)))
    return tuple(prepared)


@jax.jit
def encoder_forward(x_nchw, prepared_params):
    """Encoder forward. Input/output are NCHW to match the PyTorch module."""
    x = jnp.transpose(x_nchw, (0, 2, 3, 1))          # NCHW -> NHWC
    # Note: layer 1 (Cin=4) underutilizes MXU lanes but its FLOPs are negligible;
    # it reuses the same fused kernel for a single code path.
    for w_kkio, b_2d in prepared_params:
        x = _conv3x3_leaky(x, w_kkio, b_2d)          # Conv3x3 + LeakyReLU
    return jnp.transpose(x, (0, 3, 1, 2))            # NHWC -> NCHW


# ------------------------------- main ---------------------------------------
if __name__ == "__main__":
    key = jax.random.PRNGKey(0)
    k_x, k_p = jax.random.split(key)

    # ss_0.shape[1] (input channels) chosen as 4 for this synthetic run.
    N, Cin, H, W = 2, 4, 16, 16
    x = jax.random.normal(k_x, (N, Cin, H, W), jnp.float32)

    params = init_encoder_params(Cin, k_p)
    prepared = prepare_params(params)                # weight transpose/bf16 cast once

    out = encoder_forward(x, prepared)
    out = jax.block_until_ready(out)

    assert out.shape == (N, 128, H, W), out.shape
    assert out.dtype == jnp.float32
    print("KERNEL_OK")
</pallas_src>

<mosaic_0001>
module attributes {stable_mosaic.version = 11 : i64} {
  func.func @_conv3x3_leaky_kernel(%arg0: i32, %arg1: i32, %arg2: memref<1x18x18x4xf32, #tpu.memory_space<vmem>>, %arg3: memref<3x3x4x256xbf16, #tpu.memory_space<vmem>>, %arg4: memref<1x256xf32, #tpu.memory_space<vmem>>, %arg5: memref<1x8x16x256xf32, #tpu.memory_space<vmem>>) attributes {dimension_semantics = [#tpu.dimension_semantics<parallel>, #tpu.dimension_semantics<parallel>], iteration_bounds = array<i64: 2, 2>, scalar_prefetch = 0 : i64, scratch_operands = 0 : i64, tpu.core_type = #tpu.core_type<tc>, window_params = [{transform_indices = @transform_0, window_bounds = array<i64: 1, 18, 18, 4>}, {pipeline_mode = #tpu.pipeline_mode<synchronous>, transform_indices = @transform_1, window_bounds = array<i64: 3, 3, 4, 256>}, {pipeline_mode = #tpu.pipeline_mode<synchronous>, transform_indices = @transform_2, window_bounds = array<i64: 1, 256>}, {transform_indices = @transform_3, window_bounds = array<i64: 1, 8, 16, 256>}]} {
    %c8_i32 = arith.constant 8 : i32
    %0 = arith.muli %arg1, %c8_i32 : i32
    %cst = arith.constant 0.000000e+00 : f32
    %1 = vector.broadcast %cst : f32 to vector<128x256xf32>
    %c0_i32 = arith.constant 0 : i32
    %2 = arith.addi %0, %c0_i32 : i32
    %c0 = arith.constant 0 : index
    %3 = arith.index_cast %2 : i32 to index
    %c0_0 = arith.constant 0 : index
    %c0_1 = arith.constant 0 : index
    %4 = vector.load %arg2[%c0, %3, %c0_0, %c0_1] : memref<1x18x18x4xf32, #tpu.memory_space<vmem>>, vector<1x8x16x4xf32>
    %5 = vector.shape_cast %4 : vector<1x8x16x4xf32> to vector<8x16x4xf32>
    %6 = vector.shape_cast %5 : vector<8x16x4xf32> to vector<128x4xf32>
    %7 = arith.truncf %6 : vector<128x4xf32> to vector<128x4xbf16>
    %c0_2 = arith.constant 0 : index
    %c0_3 = arith.constant 0 : index
    %c0_4 = arith.constant 0 : index
    %c0_5 = arith.constant 0 : index
    %8 = vector.load %arg3[%c0_2, %c0_3, %c0_4, %c0_5] : memref<3x3x4x256xbf16, #tpu.memory_space<vmem>>, vector<1x1x4x256xbf16>
    %9 = vector.shape_cast %8 : vector<1x1x4x256xbf16> to vector<4x256xbf16>
    %cst_6 = arith.constant dense<0.000000e+00> : vector<128x256xf32>
    %10 = tpu.matmul %7, %9, %cst_6 {dimension_numbers = #tpu.dot_dimension_numbers<[1], [0], [0], [1], [0, 0, 1, 1], [], []>} : vector<128x4xbf16>, vector<4x256xbf16>, vector<128x256xf32> -> vector<128x256xf32>
    %11 = arith.addf %1, %10 : vector<128x256xf32>
    %c0_i32_7 = arith.constant 0 : i32
    %12 = arith.addi %0, %c0_i32_7 : i32
    %c0_8 = arith.constant 0 : index
    %13 = arith.index_cast %12 : i32 to index
    %c1 = arith.constant 1 : index
    %c0_9 = arith.constant 0 : index
    %14 = vector.load %arg2[%c0_8, %13, %c1, %c0_9] : memref<1x18x18x4xf32, #tpu.memory_space<vmem>>, vector<1x8x16x4xf32>
    %15 = vector.shape_cast %14 : vector<1x8x16x4xf32> to vector<8x16x4xf32>
    %16 = vector.shape_cast %15 : vector<8x16x4xf32> to vector<128x4xf32>
    %17 = arith.truncf %16 : vector<128x4xf32> to vector<128x4xbf16>
    %c0_10 = arith.constant 0 : index
    %c1_11 = arith.constant 1 : index
    %c0_12 = arith.constant 0 : index
    %c0_13 = arith.constant 0 : index
    %18 = vector.load %arg3[%c0_10, %c1_11, %c0_12, %c0_13] : memref<3x3x4x256xbf16, #tpu.memory_space<vmem>>, vector<1x1x4x256xbf16>
    %19 = vector.shape_cast %18 : vector<1x1x4x256xbf16> to vector<4x256xbf16>
    %cst_14 = arith.constant dense<0.000000e+00> : vector<128x256xf32>
    %20 = tpu.matmul %17, %19, %cst_14 {dimension_numbers = #tpu.dot_dimension_numbers<[1], [0], [0], [1], [0, 0, 1, 1], [], []>} : vector<128x4xbf16>, vector<4x256xbf16>, vector<128x256xf32> -> vector<128x256xf32>
    %21 = arith.addf %11, %20 : vector<128x256xf32>
    %c0_i32_15 = arith.constant 0 : i32
    %22 = arith.addi %0, %c0_i32_15 : i32
    %c0_16 = arith.constant 0 : index
    %23 = arith.index_cast %22 : i32 to index
    %c2 = arith.constant 2 : index
    %c0_17 = arith.constant 0 : index
    %24 = vector.load %arg2[%c0_16, %23, %c2, %c0_17] : memref<1x18x18x4xf32, #tpu.memory_space<vmem>>, vector<1x8x16x4xf32>
    %25 = vector.shape_cast %24 : vector<1x8x16x4xf32> to vector<8x16x4xf32>
    %26 = vector.shape_cast %25 : vector<8x16x4xf32> to vector<128x4xf32>
    %27 = arith.truncf %26 : vector<128x4xf32> to vector<128x4xbf16>
    %c0_18 = arith.constant 0 : index
    %c2_19 = arith.constant 2 : index
    %c0_20 = arith.constant 0 : index
    %c0_21 = arith.constant 0 : index
    %28 = vector.load %arg3[%c0_18, %c2_19, %c0_20, %c0_21] : memref<3x3x4x256xbf16, #tpu.memory_space<vmem>>, vector<1x1x4x256xbf16>
    %29 = vector.shape_cast %28 : vector<1x1x4x256xbf16> to vector<4x256xbf16>
    %cst_22 = arith.constant dense<0.000000e+00> : vector<128x256xf32>
    %30 = tpu.matmul %27, %29, %cst_22 {dimension_numbers = #tpu.dot_dimension_numbers<[1], [0], [0], [1], [0, 0, 1, 1], [], []>} : vector<128x4xbf16>, vector<4x256xbf16>, vector<128x256xf32> -> vector<128x256xf32>
    %31 = arith.addf %21, %30 : vector<128x256xf32>
    %c1_i32 = arith.constant 1 : i32
    %32 = arith.addi %0, %c1_i32 : i32
    %c0_23 = arith.constant 0 : index
    %33 = arith.index_cast %32 : i32 to index
    %c0_24 = arith.constant 0 : index
    %c0_25 = arith.constant 0 : index
    %34 = vector.load %arg2[%c0_23, %33, %c0_24, %c0_25] : memref<1x18x18x4xf32, #tpu.memory_space<vmem>>, vector<1x8x16x4xf32>
    %35 = vector.shape_cast %34 : vector<1x8x16x4xf32> to vector<8x16x4xf32>
    %36 = vector.shape_cast %35 : vector<8x16x4xf32> to vector<128x4xf32>
    %37 = arith.truncf %36 : vector<128x4xf32> to vector<128x4xbf16>
    %c1_26 = arith.constant 1 : index
    %c0_27 = arith.constant 0 : index
    %c0_28 = arith.constant 0 : index
    %c0_29 = arith.constant 0 : index
    %38 = vector.load %arg3[%c1_26, %c0_27, %c0_28, %c0_29] : memref<3x3x4x256xbf16, #tpu.memory_space<vmem>>, vector<1x1x4x256xbf16>
    %39 = vector.shape_cast %38 : vector<1x1x4x256xbf16> to vector<4x256xbf16>
    %cst_30 = arith.constant dense<0.000000e+00> : vector<128x256xf32>
    %40 = tpu.matmul %37, %39, %cst_30 {dimension_numbers = #tpu.dot_dimension_numbers<[1], [0], [0], [1], [0, 0, 1, 1], [], []>} : vector<128x4xbf16>, vector<4x256xbf16>, vector<128x256xf32> -> vector<128x256xf32>
    %41 = arith.addf %31, %40 : vector<128x256xf32>
    %c1_i32_31 = arith.constant 1 : i32
    %42 = arith.addi %0, %c1_i32_31 : i32
    %c0_32 = arith.constant 0 : index
    %43 = arith.index_cast %42 : i32 to index
    %c1_33 = arith.constant 1 : index
    %c0_34 = arith.constant 0 : index
    %44 = vector.load %arg2[%c0_32, %43, %c1_33, %c0_34] : memref<1x18x18x4xf32, #tpu.memory_space<vmem>>, vector<1x8x16x4xf32>
    %45 = vector.shape_cast %44 : vector<1x8x16x4xf32> to vector<8x16x4xf32>
    %46 = vector.shape_cast %45 : vector<8x16x4xf32> to vector<128x4xf32>
    %47 = arith.truncf %46 : vector<128x4xf32> to vector<128x4xbf16>
    %c1_35 = arith.constant 1 : index
    %c1_36 = arith.constant 1 : index
    %c0_37 = arith.constant 0 : index
    %c0_38 = arith.constant 0 : index
    %48 = vector.load %arg3[%c1_35, %c1_36, %c0_37, %c0_38] : memref<3x3x4x256xbf16, #tpu.memory_space<vmem>>, vector<1x1x4x256xbf16>
    %49 = vector.shape_cast %48 : vector<1x1x4x256xbf16> to vector<4x256xbf16>
    %cst_39 = arith.constant dense<0.000000e+00> : vector<128x256xf32>
    %50 = tpu.matmul %47, %49, %cst_39 {dimension_numbers = #tpu.dot_dimension_numbers<[1], [0], [0], [1], [0, 0, 1, 1], [], []>} : vector<128x4xbf16>, vector<4x256xbf16>, vector<128x256xf32> -> vector<128x256xf32>
    %51 = arith.addf %41, %50 : vector<128x256xf32>
    %c1_i32_40 = arith.constant 1 : i32
    %52 = arith.addi %0, %c1_i32_40 : i32
    %c0_41 = arith.constant 0 : index
    %53 = arith.index_cast %52 : i32 to index
    %c2_42 = arith.constant 2 : index
    %c0_43 = arith.constant 0 : index
    %54 = vector.load %arg2[%c0_41, %53, %c2_42, %c0_43] : memref<1x18x18x4xf32, #tpu.memory_space<vmem>>, vector<1x8x16x4xf32>
    %55 = vector.shape_cast %54 : vector<1x8x16x4xf32> to vector<8x16x4xf32>
    %56 = vector.shape_cast %55 : vector<8x16x4xf32> to vector<128x4xf32>
    %57 = arith.truncf %56 : vector<128x4xf32> to vector<128x4xbf16>
    %c1_44 = arith.constant 1 : index
    %c2_45 = arith.constant 2 : index
    %c0_46 = arith.constant 0 : index
    %c0_47 = arith.constant 0 : index
    %58 = vector.load %arg3[%c1_44, %c2_45, %c0_46, %c0_47] : memref<3x3x4x256xbf16, #tpu.memory_space<vmem>>, vector<1x1x4x256xbf16>
    %59 = vector.shape_cast %58 : vector<1x1x4x256xbf16> to vector<4x256xbf16>
    %cst_48 = arith.constant dense<0.000000e+00> : vector<128x256xf32>
    %60 = tpu.matmul %57, %59, %cst_48 {dimension_numbers = #tpu.dot_dimension_numbers<[1], [0], [0], [1], [0, 0, 1, 1], [], []>} : vector<128x4xbf16>, vector<4x256xbf16>, vector<128x256xf32> -> vector<128x256xf32>
    %61 = arith.addf %51, %60 : vector<128x256xf32>
    %c2_i32 = arith.constant 2 : i32
    %62 = arith.addi %0, %c2_i32 : i32
    %c0_49 = arith.constant 0 : index
    %63 = arith.index_cast %62 : i32 to index
    %c0_50 = arith.constant 0 : index
    %c0_51 = arith.constant 0 : index
    %64 = vector.load %arg2[%c0_49, %63, %c0_50, %c0_51] : memref<1x18x18x4xf32, #tpu.memory_space<vmem>>, vector<1x8x16x4xf32>
    %65 = vector.shape_cast %64 : vector<1x8x16x4xf32> to vector<8x16x4xf32>
    %66 = vector.shape_cast %65 : vector<8x16x4xf32> to vector<128x4xf32>
    %67 = arith.truncf %66 : vector<128x4xf32> to vector<128x4xbf16>
    %c2_52 = arith.constant 2 : index
    %c0_53 = arith.constant 0 : index
    %c0_54 = arith.constant 0 : index
    %c0_55 = arith.constant 0 : index
    %68 = vector.load %arg3[%c2_52, %c0_53, %c0_54, %c0_55] : memref<3x3x4x256xbf16, #tpu.memory_space<vmem>>, vector<1x1x4x256xbf16>
    %69 = vector.shape_cast %68 : vector<1x1x4x256xbf16> to vector<4x256xbf16>
    %cst_56 = arith.constant dense<0.000000e+00> : vector<128x256xf32>
    %70 = tpu.matmul %67, %69, %cst_56 {dimension_numbers = #tpu.dot_dimension_numbers<[1], [0], [0], [1], [0, 0, 1, 1], [], []>} : vector<128x4xbf16>, vector<4x256xbf16>, vector<128x256xf32> -> vector<128x256xf32>
    %71 = arith.addf %61, %70 : vector<128x256xf32>
    %c2_i32_57 = arith.constant 2 : i32
    %72 = arith.addi %0, %c2_i32_57 : i32
    %c0_58 = arith.constant 0 : index
    %73 = arith.index_cast %72 : i32 to index
    %c1_59 = arith.constant 1 : index
    %c0_60 = arith.constant 0 : index
    %74 = vector.load %arg2[%c0_58, %73, %c1_59, %c0_60] : memref<1x18x18x4xf32, #tpu.memory_space<vmem>>, vector<1x8x16x4xf32>
    %75 = vector.shape_cast %74 : vector<1x8x16x4xf32> to vector<8x16x4xf32>
    %76 = vector.shape_cast %75 : vector<8x16x4xf32> to vector<128x4xf32>
    %77 = arith.truncf %76 : vector<128x4xf32> to vector<128x4xbf16>
    %c2_61 = arith.constant 2 : index
    %c1_62 = arith.constant 1 : index
    %c0_63 = arith.constant 0 : index
    %c0_64 = arith.constant 0 : index
    %78 = vector.load %arg3[%c2_61, %c1_62, %c0_63, %c0_64] : memref<3x3x4x256xbf16, #tpu.memory_space<vmem>>, vector<1x1x4x256xbf16>
    %79 = vector.shape_cast %78 : vector<1x1x4x256xbf16> to vector<4x256xbf16>
    %cst_65 = arith.constant dense<0.000000e+00> : vector<128x256xf32>
    %80 = tpu.matmul %77, %79, %cst_65 {dimension_numbers = #tpu.dot_dimension_numbers<[1], [0], [0], [1], [0, 0, 1, 1], [], []>} : vector<128x4xbf16>, vector<4x256xbf16>, vector<128x256xf32> -> vector<128x256xf32>
    %81 = arith.addf %71, %80 : vector<128x256xf32>
    %c2_i32_66 = arith.constant 2 : i32
    %82 = arith.addi %0, %c2_i32_66 : i32
    %c0_67 = arith.constant 0 : index
    %83 = arith.index_cast %82 : i32 to index
    %c2_68 = arith.constant 2 : index
    %c0_69 = arith.constant 0 : index
    %84 = vector.load %arg2[%c0_67, %83, %c2_68, %c0_69] : memref<1x18x18x4xf32, #tpu.memory_space<vmem>>, vector<1x8x16x4xf32>
    %85 = vector.shape_cast %84 : vector<1x8x16x4xf32> to vector<8x16x4xf32>
    %86 = vector.shape_cast %85 : vector<8x16x4xf32> to vector<128x4xf32>
    %87 = arith.truncf %86 : vector<128x4xf32> to vector<128x4xbf16>
    %c2_70 = arith.constant 2 : index
    %c2_71 = arith.constant 2 : index
    %c0_72 = arith.constant 0 : index
    %c0_73 = arith.constant 0 : index
    %88 = vector.load %arg3[%c2_70, %c2_71, %c0_72, %c0_73] : memref<3x3x4x256xbf16, #tpu.memory_space<vmem>>, vector<1x1x4x256xbf16>
    %89 = vector.shape_cast %88 : vector<1x1x4x256xbf16> to vector<4x256xbf16>
    %cst_74 = arith.constant dense<0.000000e+00> : vector<128x256xf32>
    %90 = tpu.matmul %87, %89, %cst_74 {dimension_numbers = #tpu.dot_dimension_numbers<[1], [0], [0], [1], [0, 0, 1, 1], [], []>} : vector<128x4xbf16>, vector<4x256xbf16>, vector<128x256xf32> -> vector<128x256xf32>
    %91 = arith.addf %81, %90 : vector<128x256xf32>
    %c0_75 = arith.constant 0 : index
    %c0_76 = arith.constant 0 : index
    %92 = vector.load %arg4[%c0_75, %c0_76] : memref<1x256xf32, #tpu.memory_space<vmem>>, vector<1x256xf32>
    %93 = vector.broadcast %92 : vector<1x256xf32> to vector<128x256xf32>
    %94 = arith.addf %91, %93 : vector<128x256xf32>
    %cst_77 = arith.constant 0.000000e+00 : f32
    %95 = vector.broadcast %cst_77 : f32 to vector<128x256xf32>
    %96 = arith.cmpf ogt, %94, %95 : vector<128x256xf32>
    %cst_78 = arith.constant 0.00999999977 : f32
    %97 = vector.broadcast %cst_78 : f32 to vector<128x256xf32>
    %98 = arith.mulf %97, %94 : vector<128x256xf32>
    %99 = arith.select %96, %94, %98 : vector<128x256xi1>, vector<128x256xf32>
    %100 = vector.shape_cast %99 : vector<128x256xf32> to vector<8x16x256xf32>
    %c0_79 = arith.constant 0 : index
    %c0_80 = arith.constant 0 : index
    %c0_81 = arith.constant 0 : index
    %c0_82 = arith.constant 0 : index
    %101 = vector.load %arg5[%c0_79, %c0_80, %c0_81, %c0_82] : memref<1x8x16x256xf32, #tpu.memory_space<vmem>>, vector<1x8x16x256xf32>
    %102 = vector.shape_cast %101 : vector<1x8x16x256xf32> to vector<8x16x256xf32>
    %103 = vector.shape_cast %100 : vector<8x16x256xf32> to vector<1x8x16x256xf32>
    tpu.vector_store %arg5[%c0_79, %c0_80, %c0_81, %c0_82], %103 {strides = array<i32>} : memref<1x8x16x256xf32, #tpu.memory_space<vmem>>, vector<1x8x16x256xf32>,
    return
  }
  func.func @transform_0(%arg0: i32, %arg1: i32) -> (i32, i32, i32, i32) {
    %c0_i32 = arith.constant 0 : i32
    %c0_i32_0 = arith.constant 0 : i32
    %c0_i32_1 = arith.constant 0 : i32
    %c0_i32_2 = arith.constant 0 : i32
    return %arg0, %c0_i32, %c0_i32_0, %c0_i32_1 : i32, i32, i32, i32
  }
  func.func @transform_1(%arg0: i32, %arg1: i32) -> (i32, i32, i32, i32) {
    %c0_i32 = arith.constant 0 : i32
    %c0_i32_0 = arith.constant 0 : i32
    %c0_i32_1 = arith.constant 0 : i32
    %c0_i32_2 = arith.constant 0 : i32
    %c0_i32_3 = arith.constant 0 : i32
    return %c0_i32, %c0_i32_0, %c0_i32_1, %c0_i32_2 : i32, i32, i32, i32
  }
  func.func @transform_2(%arg0: i32, %arg1: i32) -> (i32, i32) {
    %c0_i32 = arith.constant 0 : i32
    %c0_i32_0 = arith.constant 0 : i32
    %c0_i32_1 = arith.constant 0 : i32
    return %c0_i32, %c0_i32_0 : i32, i32
  }
  func.func @transform_3(%arg0: i32, %arg1: i32) -> (i32, i32, i32, i32) {
    %c0_i32 = arith.constant 0 : i32
    %c0_i32_0 = arith.constant 0 : i32
    %c0_i32_1 = arith.constant 0 : i32
    return %arg0, %arg1, %c0_i32, %c0_i32_0 : i32, i32, i32, i32
  }
}

module attributes {stable_mosaic.version = 11 : i64} {
  func.func @_conv3x3_leaky_kernel(%arg0: i32, %arg1: i32, %arg2: memref<1x18x18x256xf32, #tpu.memory_space<vmem>>, %arg3: memref<3x3x256x128xbf16, #tpu.memory_space<vmem>>, %arg4: memref<1x128xf32, #tpu.memory_space<vmem>>, %arg5: memref<1x8x16x128xf32, #tpu.memory_space<vmem>>) attributes {dimension_semantics = [#tpu.dimension_semantics<parallel>, #tpu.dimension_semantics<parallel>], iteration_bounds = array<i64: 2, 2>, scalar_prefetch = 0 : i64, scratch_operands = 0 : i64, tpu.core_type = #tpu.core_type<tc>, window_params = [{transform_indices = @transform_0, window_bounds = array<i64: 1, 18, 18, 256>}, {pipeline_mode = #tpu.pipeline_mode<synchronous>, transform_indices = @transform_1, window_bounds = array<i64: 3, 3, 256, 128>}, {pipeline_mode = #tpu.pipeline_mode<synchronous>, transform_indices = @transform_2, window_bounds = array<i64: 1, 128>}, {transform_indices = @transform_3, window_bounds = array<i64: 1, 8, 16, 128>}]} {
    %c8_i32 = arith.constant 8 : i32
    %0 = arith.muli %arg1, %c8_i32 : i32
    %cst = arith.constant 0.000000e+00 : f32
    %1 = vector.broadcast %cst : f32 to vector<128x128xf32>
    %c0_i32 = arith.constant 0 : i32
    %2 = arith.addi %0, %c0_i32 : i32
    %c0 = arith.constant 0 : index
    %3 = arith.index_cast %2 : i32 to index
    %c0_0 = arith.constant 0 : index
    %c0_1 = arith.constant 0 : index
    %4 = vector.load %arg2[%c0, %3, %c0_0, %c0_1] : memref<1x18x18x256xf32, #tpu.memory_space<vmem>>, vector<1x8x16x256xf32>
    %5 = vector.shape_cast %4 : vector<1x8x16x256xf32> to vector<8x16x256xf32>
    %6 = vector.shape_cast %5 : vector<8x16x256xf32> to vector<128x256xf32>
    %7 = arith.truncf %6 : vector<128x256xf32> to vector<128x256xbf16>
    %c0_2 = arith.constant 0 : index
    %c0_3 = arith.constant 0 : index
    %c0_4 = arith.constant 0 : index
    %c0_5 = arith.constant 0 : index
    %8 = vector.load %arg3[%c0_2, %c0_3, %c0_4, %c0_5] : memref<3x3x256x128xbf16, #tpu.memory_space<vmem>>, vector<1x1x256x128xbf16>
    %9 = vector.shape_cast %8 : vector<1x1x256x128xbf16> to vector<256x128xbf16>
    %cst_6 = arith.constant dense<0.000000e+00> : vector<128x128xf32>
    %10 = tpu.matmul %7, %9, %cst_6 {dimension_numbers = #tpu.dot_dimension_numbers<[1], [0], [0], [1], [0, 0, 1, 1], [], []>} : vector<128x256xbf16>, vector<256x128xbf16>, vector<128x128xf32> -> vector<128x128xf32>
    %11 = arith.addf %1, %10 : vector<128x128xf32>
    %c0_i32_7 = arith.constant 0 : i32
    %12 = arith.addi %0, %c0_i32_7 : i32
    %c0_8 = arith.constant 0 : index
    %13 = arith.index_cast %12 : i32 to index
    %c1 = arith.constant 1 : index
    %c0_9 = arith.constant 0 : index
    %14 = vector.load %arg2[%c0_8, %13, %c1, %c0_9] : memref<1x18x18x256xf32, #tpu.memory_space<vmem>>, vector<1x8x16x256xf32>
    %15 = vector.shape_cast %14 : vector<1x8x16x256xf32> to vector<8x16x256xf32>
    %16 = vector.shape_cast %15 : vector<8x16x256xf32> to vector<128x256xf32>
    %17 = arith.truncf %16 : vector<128x256xf32> to vector<128x256xbf16>
    %c0_10 = arith.constant 0 : index
    %c1_11 = arith.constant 1 : index
    %c0_12 = arith.constant 0 : index
    %c0_13 = arith.constant 0 : index
    %18 = vector.load %arg3[%c0_10, %c1_11, %c0_12, %c0_13] : memref<3x3x256x128xbf16, #tpu.memory_space<vmem>>, vector<1x1x256x128xbf16>
    %19 = vector.shape_cast %18 : vector<1x1x256x128xbf16> to vector<256x128xbf16>
    %cst_14 = arith.constant dense<0.000000e+00> : vector<128x128xf32>
    %20 = tpu.matmul %17, %19, %cst_14 {dimension_numbers = #tpu.dot_dimension_numbers<[1], [0], [0], [1], [0, 0, 1, 1], [], []>} : vector<128x256xbf16>, vector<256x128xbf16>, vector<128x128xf32> -> vector<128x128xf32>
    %21 = arith.addf %11, %20 : vector<128x128xf32>
    %c0_i32_15 = arith.constant 0 : i32
    %22 = arith.addi %0, %c0_i32_15 : i32
    %c0_16 = arith.constant 0 : index
    %23 = arith.index_cast %22 : i32 to index
    %c2 = arith.constant 2 : index
    %c0_17 = arith.constant 0 : index
    %24 = vector.load %arg2[%c0_16, %23, %c2, %c0_17] : memref<1x18x18x256xf32, #tpu.memory_space<vmem>>, vector<1x8x16x256xf32>
    %25 = vector.shape_cast %24 : vector<1x8x16x256xf32> to vector<8x16x256xf32>
    %26 = vector.shape_cast %25 : vector<8x16x256xf32> to vector<128x256xf32>
    %27 = arith.truncf %26 : vector<128x256xf32> to vector<128x256xbf16>
    %c0_18 = arith.constant 0 : index
    %c2_19 = arith.constant 2 : index
    %c0_20 = arith.constant 0 : index
    %c0_21 = arith.constant 0 : index
    %28 = vector.load %arg3[%c0_18, %c2_19, %c0_20, %c0_21] : memref<3x3x256x128xbf16, #tpu.memory_space<vmem>>, vector<1x1x256x128xbf16>
    %29 = vector.shape_cast %28 : vector<1x1x256x128xbf16> to vector<256x128xbf16>
    %cst_22 = arith.constant dense<0.000000e+00> : vector<128x128xf32>
    %30 = tpu.matmul %27, %29, %cst_22 {dimension_numbers = #tpu.dot_dimension_numbers<[1], [0], [0], [1], [0, 0, 1, 1], [], []>} : vector<128x256xbf16>, vector<256x128xbf16>, vector<128x128xf32> -> vector<128x128xf32>
    %31 = arith.addf %21, %30 : vector<128x128xf32>
    %c1_i32 = arith.constant 1 : i32
    %32 = arith.addi %0, %c1_i32 : i32
    %c0_23 = arith.constant 0 : index
    %33 = arith.index_cast %32 : i32 to index
    %c0_24 = arith.constant 0 : index
    %c0_25 = arith.constant 0 : index
    %34 = vector.load %arg2[%c0_23, %33, %c0_24, %c0_25] : memref<1x18x18x256xf32, #tpu.memory_space<vmem>>, vector<1x8x16x256xf32>
    %35 = vector.shape_cast %34 : vector<1x8x16x256xf32> to vector<8x16x256xf32>
    %36 = vector.shape_cast %35 : vector<8x16x256xf32> to vector<128x256xf32>
    %37 = arith.truncf %36 : vector<128x256xf32> to vector<128x256xbf16>
    %c1_26 = arith.constant 1 : index
    %c0_27 = arith.constant 0 : index
    %c0_28 = arith.constant 0 : index
    %c0_29 = arith.constant 0 : index
    %38 = vector.load %arg3[%c1_26, %c0_27, %c0_28, %c0_29] : memref<3x3x256x128xbf16, #tpu.memory_space<vmem>>, vector<1x1x256x128xbf16>
    %39 = vector.shape_cast %38 : vector<1x1x256x128xbf16> to vector<256x128xbf16>
    %cst_30 = arith.constant dense<0.000000e+00> : vector<128x128xf32>
    %40 = tpu.matmul %37, %39, %cst_30 {dimension_numbers = #tpu.dot_dimension_numbers<[1], [0], [0], [1], [0, 0, 1, 1], [], []>} : vector<128x256xbf16>, vector<256x128xbf16>, vector<128x128xf32> -> vector<128x128xf32>
    %41 = arith.addf %31, %40 : vector<128x128xf32>
    %c1_i32_31 = arith.constant 1 : i32
    %42 = arith.addi %0, %c1_i32_31 : i32
    %c0_32 = arith.constant 0 : index
    %43 = arith.index_cast %42 : i32 to index
    %c1_33 = arith.constant 1 : index
    %c0_34 = arith.constant 0 : index
    %44 = vector.load %arg2[%c0_32, %43, %c1_33, %c0_34] : memref<1x18x18x256xf32, #tpu.memory_space<vmem>>, vector<1x8x16x256xf32>
    %45 = vector.shape_cast %44 : vector<1x8x16x256xf32> to vector<8x16x256xf32>
    %46 = vector.shape_cast %45 : vector<8x16x256xf32> to vector<128x256xf32>
    %47 = arith.truncf %46 : vector<128x256xf32> to vector<128x256xbf16>
    %c1_35 = arith.constant 1 : index
    %c1_36 = arith.constant 1 : index
    %c0_37 = arith.constant 0 : index
    %c0_38 = arith.constant 0 : index
    %48 = vector.load %arg3[%c1_35, %c1_36, %c0_37, %c0_38] : memref<3x3x256x128xbf16, #tpu.memory_space<vmem>>, vector<1x1x256x128xbf16>
    %49 = vector.shape_cast %48 : vector<1x1x256x128xbf16> to vector<256x128xbf16>
    %cst_39 = arith.constant dense<0.000000e+00> : vector<128x128xf32>
    %50 = tpu.matmul %47, %49, %cst_39 {dimension_numbers = #tpu.dot_dimension_numbers<[1], [0], [0], [1], [0, 0, 1, 1], [], []>} : vector<128x256xbf16>, vector<256x128xbf16>, vector<128x128xf32> -> vector<128x128xf32>
    %51 = arith.addf %41, %50 : vector<128x128xf32>
    %c1_i32_40 = arith.constant 1 : i32
    %52 = arith.addi %0, %c1_i32_40 : i32
    %c0_41 = arith.constant 0 : index
    %53 = arith.index_cast %52 : i32 to index
    %c2_42 = arith.constant 2 : index
    %c0_43 = arith.constant 0 : index
    %54 = vector.load %arg2[%c0_41, %53, %c2_42, %c0_43] : memref<1x18x18x256xf32, #tpu.memory_space<vmem>>, vector<1x8x16x256xf32>
    %55 = vector.shape_cast %54 : vector<1x8x16x256xf32> to vector<8x16x256xf32>
    %56 = vector.shape_cast %55 : vector<8x16x256xf32> to vector<128x256xf32>
    %57 = arith.truncf %56 : vector<128x256xf32> to vector<128x256xbf16>
    %c1_44 = arith.constant 1 : index
    %c2_45 = arith.constant 2 : index
    %c0_46 = arith.constant 0 : index
    %c0_47 = arith.constant 0 : index
    %58 = vector.load %arg3[%c1_44, %c2_45, %c0_46, %c0_47] : memref<3x3x256x128xbf16, #tpu.memory_space<vmem>>, vector<1x1x256x128xbf16>
    %59 = vector.shape_cast %58 : vector<1x1x256x128xbf16> to vector<256x128xbf16>
    %cst_48 = arith.constant dense<0.000000e+00> : vector<128x128xf32>
    %60 = tpu.matmul %57, %59, %cst_48 {dimension_numbers = #tpu.dot_dimension_numbers<[1], [0], [0], [1], [0, 0, 1, 1], [], []>} : vector<128x256xbf16>, vector<256x128xbf16>, vector<128x128xf32> -> vector<128x128xf32>
    %61 = arith.addf %51, %60 : vector<128x128xf32>
    %c2_i32 = arith.constant 2 : i32
    %62 = arith.addi %0, %c2_i32 : i32
    %c0_49 = arith.constant 0 : index
    %63 = arith.index_cast %62 : i32 to index
    %c0_50 = arith.constant 0 : index
    %c0_51 = arith.constant 0 : index
    %64 = vector.load %arg2[%c0_49, %63, %c0_50, %c0_51] : memref<1x18x18x256xf32, #tpu.memory_space<vmem>>, vector<1x8x16x256xf32>
    %65 = vector.shape_cast %64 : vector<1x8x16x256xf32> to vector<8x16x256xf32>
    %66 = vector.shape_cast %65 : vector<8x16x256xf32> to vector<128x256xf32>
    %67 = arith.truncf %66 : vector<128x256xf32> to vector<128x256xbf16>
    %c2_52 = arith.constant 2 : index
    %c0_53 = arith.constant 0 : index
    %c0_54 = arith.constant 0 : index
    %c0_55 = arith.constant 0 : index
    %68 = vector.load %arg3[%c2_52, %c0_53, %c0_54, %c0_55] : memref<3x3x256x128xbf16, #tpu.memory_space<vmem>>, vector<1x1x256x128xbf16>
    %69 = vector.shape_cast %68 : vector<1x1x256x128xbf16> to vector<256x128xbf16>
    %cst_56 = arith.constant dense<0.000000e+00> : vector<128x128xf32>
    %70 = tpu.matmul %67, %69, %cst_56 {dimension_numbers = #tpu.dot_dimension_numbers<[1], [0], [0], [1], [0, 0, 1, 1], [], []>} : vector<128x256xbf16>, vector<256x128xbf16>, vector<128x128xf32> -> vector<128x128xf32>
    %71 = arith.addf %61, %70 : vector<128x128xf32>
    %c2_i32_57 = arith.constant 2 : i32
    %72 = arith.addi %0, %c2_i32_57 : i32
    %c0_58 = arith.constant 0 : index
    %73 = arith.index_cast %72 : i32 to index
    %c1_59 = arith.constant 1 : index
    %c0_60 = arith.constant 0 : index
    %74 = vector.load %arg2[%c0_58, %73, %c1_59, %c0_60] : memref<1x18x18x256xf32, #tpu.memory_space<vmem>>, vector<1x8x16x256xf32>
    %75 = vector.shape_cast %74 : vector<1x8x16x256xf32> to vector<8x16x256xf32>
    %76 = vector.shape_cast %75 : vector<8x16x256xf32> to vector<128x256xf32>
    %77 = arith.truncf %76 : vector<128x256xf32> to vector<128x256xbf16>
    %c2_61 = arith.constant 2 : index
    %c1_62 = arith.constant 1 : index
    %c0_63 = arith.constant 0 : index
    %c0_64 = arith.constant 0 : index
    %78 = vector.load %arg3[%c2_61, %c1_62, %c0_63, %c0_64] : memref<3x3x256x128xbf16, #tpu.memory_space<vmem>>, vector<1x1x256x128xbf16>
    %79 = vector.shape_cast %78 : vector<1x1x256x128xbf16> to vector<256x128xbf16>
    %cst_65 = arith.constant dense<0.000000e+00> : vector<128x128xf32>
    %80 = tpu.matmul %77, %79, %cst_65 {dimension_numbers = #tpu.dot_dimension_numbers<[1], [0], [0], [1], [0, 0, 1, 1], [], []>} : vector<128x256xbf16>, vector<256x128xbf16>, vector<128x128xf32> -> vector<128x128xf32>
    %81 = arith.addf %71, %80 : vector<128x128xf32>
    %c2_i32_66 = arith.constant 2 : i32
    %82 = arith.addi %0, %c2_i32_66 : i32
    %c0_67 = arith.constant 0 : index
    %83 = arith.index_cast %82 : i32 to index
    %c2_68 = arith.constant 2 : index
    %c0_69 = arith.constant 0 : index
    %84 = vector.load %arg2[%c0_67, %83, %c2_68, %c0_69] : memref<1x18x18x256xf32, #tpu.memory_space<vmem>>, vector<1x8x16x256xf32>
    %85 = vector.shape_cast %84 : vector<1x8x16x256xf32> to vector<8x16x256xf32>
    %86 = vector.shape_cast %85 : vector<8x16x256xf32> to vector<128x256xf32>
    %87 = arith.truncf %86 : vector<128x256xf32> to vector<128x256xbf16>
    %c2_70 = arith.constant 2 : index
    %c2_71 = arith.constant 2 : index
    %c0_72 = arith.constant 0 : index
    %c0_73 = arith.constant 0 : index
    %88 = vector.load %arg3[%c2_70, %c2_71, %c0_72, %c0_73] : memref<3x3x256x128xbf16, #tpu.memory_space<vmem>>, vector<1x1x256x128xbf16>
    %89 = vector.shape_cast %88 : vector<1x1x256x128xbf16> to vector<256x128xbf16>
    %cst_74 = arith.constant dense<0.000000e+00> : vector<128x128xf32>
    %90 = tpu.matmul %87, %89, %cst_74 {dimension_numbers = #tpu.dot_dimension_numbers<[1], [0], [0], [1], [0, 0, 1, 1], [], []>} : vector<128x256xbf16>, vector<256x128xbf16>, vector<128x128xf32> -> vector<128x128xf32>
    %91 = arith.addf %81, %90 : vector<128x128xf32>
    %c0_75 = arith.constant 0 : index
    %c0_76 = arith.constant 0 : index
    %92 = vector.load %arg4[%c0_75, %c0_76] : memref<1x128xf32, #tpu.memory_space<vmem>>, vector<1x128xf32>
    %93 = vector.broadcast %92 : vector<1x128xf32> to vector<128x128xf32>
    %94 = arith.addf %91, %93 : vector<128x128xf32>
    %cst_77 = arith.constant 0.000000e+00 : f32
    %95 = vector.broadcast %cst_77 : f32 to vector<128x128xf32>
    %96 = arith.cmpf ogt, %94, %95 : vector<128x128xf32>
    %cst_78 = arith.constant 0.00999999977 : f32
    %97 = vector.broadcast %cst_78 : f32 to vector<128x128xf32>
    %98 = arith.mulf %97, %94 : vector<128x128xf32>
    %99 = arith.select %96, %94, %98 : vector<128x128xi1>, vector<128x128xf32>
    %100 = vector.shape_cast %99 : vector<128x128xf32> to vector<8x16x128xf32>
    %c0_79 = arith.constant 0 : index
    %c0_80 = arith.constant 0 : index
    %c0_81 = arith.constant 0 : index
    %c0_82 = arith.constant 0 : index
    %101 = vector.load %arg5[%c0_79, %c0_80, %c0_81, %c0_82] : memref<1x8x16x128xf32, #tpu.memory_space<vmem>>, vector<1x8x16x128xf32>
    %102 = vector.shape_cast %101 : vector<1x8x16x128xf32> to vector<8x16x128xf32>
    %103 = vector.shape_cast %100 : vector<8x16x128xf32> to vector<1x8x16x128xf32>
    tpu.vector_store %arg5[%c0_79, %c0_80, %c0_81, %c0_82], %103 {strides = array<i32>} : memref<1x8x16x128xf32, #tpu.memory_space<vmem>>, vector<1x8x16x128xf32>,
    return
  }
  func.func @transform_0(%arg0: i32, %arg1: i32) -> (i32, i32, i32, i32) {
    %c0_i32 = arith.constant 0 : i32
    %c0_i32_0 = arith.constant 0 : i32
    %c0_i32_1 = arith.constant 0 : i32
    %c0_i32_2 = arith.constant 0 : i32
    return %arg0, %c0_i32, %c0_i32_0, %c0_i32_1 : i32, i32, i32, i32
  }
  func.func @transform_1(%arg0: i32, %arg1: i32) -> (i32, i32, i32, i32) {
    %c0_i32 = arith.constant 0 : i32
    %c0_i32_0 = arith.constant 0 : i32
    %c0_i32_1 = arith.constant 0 : i32
    %c0_i32_2 = arith.constant 0 : i32
    %c0_i32_3 = arith.constant 0 : i32
    return %c0_i32, %c0_i32_0, %c0_i32_1, %c0_i32_2 : i32, i32, i32, i32
  }
  func.func @transform_2(%arg0: i32, %arg1: i32) -> (i32, i32) {
    %c0_i32 = arith.constant 0 : i32
    %c0_i32_0 = arith.constant 0 : i32
    %c0_i32_1 = arith.constant 0 : i32
    return %c0_i32, %c0_i32_0 : i32, i32
  }
  func.func @transform_3(%arg0: i32, %arg1: i32) -> (i32, i32, i32, i32) {
    %c0_i32 = arith.constant 0 : i32
    %c0_i32_0 = arith.constant 0 : i32
    %c0_i32_1 = arith.constant 0 : i32
    return %arg0, %arg1, %c0_i32, %c0_i32_0 : i32, i32, i32, i32
  }
}

module attributes {stable_mosaic.version = 11 : i64} {
  func.func @_conv3x3_leaky_kernel(%arg0: i32, %arg1: i32, %arg2: memref<1x18x18x128xf32, #tpu.memory_space<vmem>>, %arg3: memref<3x3x128x128xbf16, #tpu.memory_space<vmem>>, %arg4: memref<1x128xf32, #tpu.memory_space<vmem>>, %arg5: memref<1x8x16x128xf32, #tpu.memory_space<vmem>>) attributes {dimension_semantics = [#tpu.dimension_semantics<parallel>, #tpu.dimension_semantics<parallel>], iteration_bounds = array<i64: 2, 2>, scalar_prefetch = 0 : i64, scratch_operands = 0 : i64, tpu.core_type = #tpu.core_type<tc>, window_params = [{transform_indices = @transform_0, window_bounds = array<i64: 1, 18, 18, 128>}, {pipeline_mode = #tpu.pipeline_mode<synchronous>, transform_indices = @transform_1, window_bounds = array<i64: 3, 3, 128, 128>}, {pipeline_mode = #tpu.pipeline_mode<synchronous>, transform_indices = @transform_2, window_bounds = array<i64: 1, 128>}, {transform_indices = @transform_3, window_bounds = array<i64: 1, 8, 16, 128>}]} {
    %c8_i32 = arith.constant 8 : i32
    %0 = arith.muli %arg1, %c8_i32 : i32
    %cst = arith.constant 0.000000e+00 : f32
    %1 = vector.broadcast %cst : f32 to vector<128x128xf32>
    %c0_i32 = arith.constant 0 : i32
    %2 = arith.addi %0, %c0_i32 : i32
    %c0 = arith.constant 0 : index
    %3 = arith.index_cast %2 : i32 to index
    %c0_0 = arith.constant 0 : index
    %c0_1 = arith.constant 0 : index
    %4 = vector.load %arg2[%c0, %3, %c0_0, %c0_1] : memref<1x18x18x128xf32, #tpu.memory_space<vmem>>, vector<1x8x16x128xf32>
    %5 = vector.shape_cast %4 : vector<1x8x16x128xf32> to vector<8x16x128xf32>
    %6 = vector.shape_cast %5 : vector<8x16x128xf32> to vector<128x128xf32>
    %7 = arith.truncf %6 : vector<128x128xf32> to vector<128x128xbf16>
    %c0_2 = arith.constant 0 : index
    %c0_3 = arith.constant 0 : index
    %c0_4 = arith.constant 0 : index
    %c0_5 = arith.constant 0 : index
    %8 = vector.load %arg3[%c0_2, %c0_3, %c0_4, %c0_5] : memref<3x3x128x128xbf16, #tpu.memory_space<vmem>>, vector<1x1x128x128xbf16>
    %9 = vector.shape_cast %8 : vector<1x1x128x128xbf16> to vector<128x128xbf16>
    %cst_6 = arith.constant dense<0.000000e+00> : vector<128x128xf32>
    %10 = tpu.matmul %7, %9, %cst_6 {dimension_numbers = #tpu.dot_dimension_numbers<[1], [0], [0], [1], [0, 0, 1, 1], [], []>} : vector<128x128xbf16>, vector<128x128xbf16>, vector<128x128xf32> -> vector<128x128xf32>
    %11 = arith.addf %1, %10 : vector<128x128xf32>
    %c0_i32_7 = arith.constant 0 : i32
    %12 = arith.addi %0, %c0_i32_7 : i32
    %c0_8 = arith.constant 0 : index
    %13 = arith.index_cast %12 : i32 to index
    %c1 = arith.constant 1 : index
    %c0_9 = arith.constant 0 : index
    %14 = vector.load %arg2[%c0_8, %13, %c1, %c0_9] : memref<1x18x18x128xf32, #tpu.memory_space<vmem>>, vector<1x8x16x128xf32>
    %15 = vector.shape_cast %14 : vector<1x8x16x128xf32> to vector<8x16x128xf32>
    %16 = vector.shape_cast %15 : vector<8x16x128xf32> to vector<128x128xf32>
    %17 = arith.truncf %16 : vector<128x128xf32> to vector<128x128xbf16>
    %c0_10 = arith.constant 0 : index
    %c1_11 = arith.constant 1 : index
    %c0_12 = arith.constant 0 : index
    %c0_13 = arith.constant 0 : index
    %18 = vector.load %arg3[%c0_10, %c1_11, %c0_12, %c0_13] : memref<3x3x128x128xbf16, #tpu.memory_space<vmem>>, vector<1x1x128x128xbf16>
    %19 = vector.shape_cast %18 : vector<1x1x128x128xbf16> to vector<128x128xbf16>
    %cst_14 = arith.constant dense<0.000000e+00> : vector<128x128xf32>
    %20 = tpu.matmul %17, %19, %cst_14 {dimension_numbers = #tpu.dot_dimension_numbers<[1], [0], [0], [1], [0, 0, 1, 1], [], []>} : vector<128x128xbf16>, vector<128x128xbf16>, vector<128x128xf32> -> vector<128x128xf32>
    %21 = arith.addf %11, %20 : vector<128x128xf32>
    %c0_i32_15 = arith.constant 0 : i32
    %22 = arith.addi %0, %c0_i32_15 : i32
    %c0_16 = arith.constant 0 : index
    %23 = arith.index_cast %22 : i32 to index
    %c2 = arith.constant 2 : index
    %c0_17 = arith.constant 0 : index
    %24 = vector.load %arg2[%c0_16, %23, %c2, %c0_17] : memref<1x18x18x128xf32, #tpu.memory_space<vmem>>, vector<1x8x16x128xf32>
    %25 = vector.shape_cast %24 : vector<1x8x16x128xf32> to vector<8x16x128xf32>
    %26 = vector.shape_cast %25 : vector<8x16x128xf32> to vector<128x128xf32>
    %27 = arith.truncf %26 : vector<128x128xf32> to vector<128x128xbf16>
    %c0_18 = arith.constant 0 : index
    %c2_19 = arith.constant 2 : index
    %c0_20 = arith.constant 0 : index
    %c0_21 = arith.constant 0 : index
    %28 = vector.load %arg3[%c0_18, %c2_19, %c0_20, %c0_21] : memref<3x3x128x128xbf16, #tpu.memory_space<vmem>>, vector<1x1x128x128xbf16>
    %29 = vector.shape_cast %28 : vector<1x1x128x128xbf16> to vector<128x128xbf16>
    %cst_22 = arith.constant dense<0.000000e+00> : vector<128x128xf32>
    %30 = tpu.matmul %27, %29, %cst_22 {dimension_numbers = #tpu.dot_dimension_numbers<[1], [0], [0], [1], [0, 0, 1, 1], [], []>} : vector<128x128xbf16>, vector<128x128xbf16>, vector<128x128xf32> -> vector<128x128xf32>
    %31 = arith.addf %21, %30 : vector<128x128xf32>
    %c1_i32 = arith.constant 1 : i32
    %32 = arith.addi %0, %c1_i32 : i32
    %c0_23 = arith.constant 0 : index
    %33 = arith.index_cast %32 : i32 to index
    %c0_24 = arith.constant 0 : index
    %c0_25 = arith.constant 0 : index
    %34 = vector.load %arg2[%c0_23, %33, %c0_24, %c0_25] : memref<1x18x18x128xf32, #tpu.memory_space<vmem>>, vector<1x8x16x128xf32>
    %35 = vector.shape_cast %34 : vector<1x8x16x128xf32> to vector<8x16x128xf32>
    %36 = vector.shape_cast %35 : vector<8x16x128xf32> to vector<128x128xf32>
    %37 = arith.truncf %36 : vector<128x128xf32> to vector<128x128xbf16>
    %c1_26 = arith.constant 1 : index
    %c0_27 = arith.constant 0 : index
    %c0_28 = arith.constant 0 : index
    %c0_29 = arith.constant 0 : index
    %38 = vector.load %arg3[%c1_26, %c0_27, %c0_28, %c0_29] : memref<3x3x128x128xbf16, #tpu.memory_space<vmem>>, vector<1x1x128x128xbf16>
    %39 = vector.shape_cast %38 : vector<1x1x128x128xbf16> to vector<128x128xbf16>
    %cst_30 = arith.constant dense<0.000000e+00> : vector<128x128xf32>
    %40 = tpu.matmul %37, %39, %cst_30 {dimension_numbers = #tpu.dot_dimension_numbers<[1], [0], [0], [1], [0, 0, 1, 1], [], []>} : vector<128x128xbf16>, vector<128x128xbf16>, vector<128x128xf32> -> vector<128x128xf32>
    %41 = arith.addf %31, %40 : vector<128x128xf32>
    %c1_i32_31 = arith.constant 1 : i32
    %42 = arith.addi %0, %c1_i32_31 : i32
    %c0_32 = arith.constant 0 : index
    %43 = arith.index_cast %42 : i32 to index
    %c1_33 = arith.constant 1 : index
    %c0_34 = arith.constant 0 : index
    %44 = vector.load %arg2[%c0_32, %43, %c1_33, %c0_34] : memref<1x18x18x128xf32, #tpu.memory_space<vmem>>, vector<1x8x16x128xf32>
    %45 = vector.shape_cast %44 : vector<1x8x16x128xf32> to vector<8x16x128xf32>
    %46 = vector.shape_cast %45 : vector<8x16x128xf32> to vector<128x128xf32>
    %47 = arith.truncf %46 : vector<128x128xf32> to vector<128x128xbf16>
    %c1_35 = arith.constant 1 : index
    %c1_36 = arith.constant 1 : index
    %c0_37 = arith.constant 0 : index
    %c0_38 = arith.constant 0 : index
    %48 = vector.load %arg3[%c1_35, %c1_36, %c0_37, %c0_38] : memref<3x3x128x128xbf16, #tpu.memory_space<vmem>>, vector<1x1x128x128xbf16>
    %49 = vector.shape_cast %48 : vector<1x1x128x128xbf16> to vector<128x128xbf16>
    %cst_39 = arith.constant dense<0.000000e+00> : vector<128x128xf32>
    %50 = tpu.matmul %47, %49, %cst_39 {dimension_numbers = #tpu.dot_dimension_numbers<[1], [0], [0], [1], [0, 0, 1, 1], [], []>} : vector<128x128xbf16>, vector<128x128xbf16>, vector<128x128xf32> -> vector<128x128xf32>
    %51 = arith.addf %41, %50 : vector<128x128xf32>
    %c1_i32_40 = arith.constant 1 : i32
    %52 = arith.addi %0, %c1_i32_40 : i32
    %c0_41 = arith.constant 0 : index
    %53 = arith.index_cast %52 : i32 to index
    %c2_42 = arith.constant 2 : index
    %c0_43 = arith.constant 0 : index
    %54 = vector.load %arg2[%c0_41, %53, %c2_42, %c0_43] : memref<1x18x18x128xf32, #tpu.memory_space<vmem>>, vector<1x8x16x128xf32>
    %55 = vector.shape_cast %54 : vector<1x8x16x128xf32> to vector<8x16x128xf32>
    %56 = vector.shape_cast %55 : vector<8x16x128xf32> to vector<128x128xf32>
    %57 = arith.truncf %56 : vector<128x128xf32> to vector<128x128xbf16>
    %c1_44 = arith.constant 1 : index
    %c2_45 = arith.constant 2 : index
    %c0_46 = arith.constant 0 : index
    %c0_47 = arith.constant 0 : index
    %58 = vector.load %arg3[%c1_44, %c2_45, %c0_46, %c0_47] : memref<3x3x128x128xbf16, #tpu.memory_space<vmem>>, vector<1x1x128x128xbf16>
    %59 = vector.shape_cast %58 : vector<1x1x128x128xbf16> to vector<128x128xbf16>
    %cst_48 = arith.constant dense<0.000000e+00> : vector<128x128xf32>
    %60 = tpu.matmul %57, %59, %cst_48 {dimension_numbers = #tpu.dot_dimension_numbers<[1], [0], [0], [1], [0, 0, 1, 1], [], []>} : vector<128x128xbf16>, vector<128x128xbf16>, vector<128x128xf32> -> vector<128x128xf32>
    %61 = arith.addf %51, %60 : vector<128x128xf32>
    %c2_i32 = arith.constant 2 : i32
    %62 = arith.addi %0, %c2_i32 : i32
    %c0_49 = arith.constant 0 : index
    %63 = arith.index_cast %62 : i32 to index
    %c0_50 = arith.constant 0 : index
    %c0_51 = arith.constant 0 : index
    %64 = vector.load %arg2[%c0_49, %63, %c0_50, %c0_51] : memref<1x18x18x128xf32, #tpu.memory_space<vmem>>, vector<1x8x16x128xf32>
    %65 = vector.shape_cast %64 : vector<1x8x16x128xf32> to vector<8x16x128xf32>
    %66 = vector.shape_cast %65 : vector<8x16x128xf32> to vector<128x128xf32>
    %67 = arith.truncf %66 : vector<128x128xf32> to vector<128x128xbf16>
    %c2_52 = arith.constant 2 : index
    %c0_53 = arith.constant 0 : index
    %c0_54 = arith.constant 0 : index
    %c0_55 = arith.constant 0 : index
    %68 = vector.load %arg3[%c2_52, %c0_53, %c0_54, %c0_55] : memref<3x3x128x128xbf16, #tpu.memory_space<vmem>>, vector<1x1x128x128xbf16>
    %69 = vector.shape_cast %68 : vector<1x1x128x128xbf16> to vector<128x128xbf16>
    %cst_56 = arith.constant dense<0.000000e+00> : vector<128x128xf32>
    %70 = tpu.matmul %67, %69, %cst_56 {dimension_numbers = #tpu.dot_dimension_numbers<[1], [0], [0], [1], [0, 0, 1, 1], [], []>} : vector<128x128xbf16>, vector<128x128xbf16>, vector<128x128xf32> -> vector<128x128xf32>
    %71 = arith.addf %61, %70 : vector<128x128xf32>
    %c2_i32_57 = arith.constant 2 : i32
    %72 = arith.addi %0, %c2_i32_57 : i32
    %c0_58 = arith.constant 0 : index
    %73 = arith.index_cast %72 : i32 to index
    %c1_59 = arith.constant 1 : index
    %c0_60 = arith.constant 0 : index
    %74 = vector.load %arg2[%c0_58, %73, %c1_59, %c0_60] : memref<1x18x18x128xf32, #tpu.memory_space<vmem>>, vector<1x8x16x128xf32>
    %75 = vector.shape_cast %74 : vector<1x8x16x128xf32> to vector<8x16x128xf32>
    %76 = vector.shape_cast %75 : vector<8x16x128xf32> to vector<128x128xf32>
    %77 = arith.truncf %76 : vector<128x128xf32> to vector<128x128xbf16>
    %c2_61 = arith.constant 2 : index
    %c1_62 = arith.constant 1 : index
    %c0_63 = arith.constant 0 : index
    %c0_64 = arith.constant 0 : index
    %78 = vector.load %arg3[%c2_61, %c1_62, %c0_63, %c0_64] : memref<3x3x128x128xbf16, #tpu.memory_space<vmem>>, vector<1x1x128x128xbf16>
    %79 = vector.shape_cast %78 : vector<1x1x128x128xbf16> to vector<128x128xbf16>
    %cst_65 = arith.constant dense<0.000000e+00> : vector<128x128xf32>
    %80 = tpu.matmul %77, %79, %cst_65 {dimension_numbers = #tpu.dot_dimension_numbers<[1], [0], [0], [1], [0, 0, 1, 1], [], []>} : vector<128x128xbf16>, vector<128x128xbf16>, vector<128x128xf32> -> vector<128x128xf32>
    %81 = arith.addf %71, %80 : vector<128x128xf32>
    %c2_i32_66 = arith.constant 2 : i32
    %82 = arith.addi %0, %c2_i32_66 : i32
    %c0_67 = arith.constant 0 : index
    %83 = arith.index_cast %82 : i32 to index
    %c2_68 = arith.constant 2 : index
    %c0_69 = arith.constant 0 : index
    %84 = vector.load %arg2[%c0_67, %83, %c2_68, %c0_69] : memref<1x18x18x128xf32, #tpu.memory_space<vmem>>, vector<1x8x16x128xf32>
    %85 = vector.shape_cast %84 : vector<1x8x16x128xf32> to vector<8x16x128xf32>
    %86 = vector.shape_cast %85 : vector<8x16x128xf32> to vector<128x128xf32>
    %87 = arith.truncf %86 : vector<128x128xf32> to vector<128x128xbf16>
    %c2_70 = arith.constant 2 : index
    %c2_71 = arith.constant 2 : index
    %c0_72 = arith.constant 0 : index
    %c0_73 = arith.constant 0 : index
    %88 = vector.load %arg3[%c2_70, %c2_71, %c0_72, %c0_73] : memref<3x3x128x128xbf16, #tpu.memory_space<vmem>>, vector<1x1x128x128xbf16>
    %89 = vector.shape_cast %88 : vector<1x1x128x128xbf16> to vector<128x128xbf16>
    %cst_74 = arith.constant dense<0.000000e+00> : vector<128x128xf32>
    %90 = tpu.matmul %87, %89, %cst_74 {dimension_numbers = #tpu.dot_dimension_numbers<[1], [0], [0], [1], [0, 0, 1, 1], [], []>} : vector<128x128xbf16>, vector<128x128xbf16>, vector<128x128xf32> -> vector<128x128xf32>
    %91 = arith.addf %81, %90 : vector<128x128xf32>
    %c0_75 = arith.constant 0 : index
    %c0_76 = arith.constant 0 : index
    %92 = vector.load %arg4[%c0_75, %c0_76] : memref<1x128xf32, #tpu.memory_space<vmem>>, vector<1x128xf32>
    %93 = vector.broadcast %92 : vector<1x128xf32> to vector<128x128xf32>
    %94 = arith.addf %91, %93 : vector<128x128xf32>
    %cst_77 = arith.constant 0.000000e+00 : f32
    %95 = vector.broadcast %cst_77 : f32 to vector<128x128xf32>
    %96 = arith.cmpf ogt, %94, %95 : vector<128x128xf32>
    %cst_78 = arith.constant 0.00999999977 : f32
    %97 = vector.broadcast %cst_78 : f32 to vector<128x128xf32>
    %98 = arith.mulf %97, %94 : vector<128x128xf32>
    %99 = arith.select %96, %94, %98 : vector<128x128xi1>, vector<128x128xf32>
    %100 = vector.shape_cast %99 : vector<128x128xf32> to vector<8x16x128xf32>
    %c0_79 = arith.constant 0 : index
    %c0_80 = arith.constant 0 : index
    %c0_81 = arith.constant 0 : index
    %c0_82 = arith.constant 0 : index
    %101 = vector.load %arg5[%c0_79, %c0_80, %c0_81, %c0_82] : memref<1x8x16x128xf32, #tpu.memory_space<vmem>>, vector<1x8x16x128xf32>
    %102 = vector.shape_cast %101 : vector<1x8x16x128xf32> to vector<8x16x128xf32>
    %103 = vector.shape_cast %100 : vector<8x16x128xf32> to vector<1x8x16x128xf32>
    tpu.vector_store %arg5[%c0_79, %c0_80, %c0_81, %c0_82], %103 {strides = array<i32>} : memref<1x8x16x128xf32, #tpu.memory_space<vmem>>, vector<1x8x16x128xf32>,
    return
  }
  func.func @transform_0(%arg0: i32, %arg1: i32) -> (i32, i32, i32, i32) {
    %c0_i32 = arith.constant 0 : i32
    %c0_i32_0 = arith.constant 0 : i32
    %c0_i32_1 = arith.constant 0 : i32
    %c0_i32_2 = arith.constant 0 : i32
    return %arg0, %c0_i32, %c0_i32_0, %c0_i32_1 : i32, i32, i32, i32
  }
  func.func @transform_1(%arg0: i32, %arg1: i32) -> (i32, i32, i32, i32) {
    %c0_i32 = arith.constant 0 : i32
    %c0_i32_0 = arith.constant 0 : i32
    %c0_i32_1 = arith.constant 0 : i32
    %c0_i32_2 = arith.constant 0 : i32
    %c0_i32_3 = arith.constant 0 : i32
    return %c0_i32, %c0_i32_0, %c0_i32_1, %c0_i32_2 : i32, i32, i32, i32
  }
  func.func @transform_2(%arg0: i32, %arg1: i32) -> (i32, i32) {
    %c0_i32 = arith.constant 0 : i32
    %c0_i32_0 = arith.constant 0 : i32
    %c0_i32_1 = arith.constant 0 : i32
    return %c0_i32, %c0_i32_0 : i32, i32
  }
  func.func @transform_3(%arg0: i32, %arg1: i32) -> (i32, i32, i32, i32) {
    %c0_i32 = arith.constant 0 : i32
    %c0_i32_0 = arith.constant 0 : i32
    %c0_i32_1 = arith.constant 0 : i32
    return %arg0, %arg1, %c0_i32, %c0_i32_0 : i32, i32, i32, i32
  }
}

</mosaic_0001>

<bundles_post_ra>
// kernel: encoder_forward.3
= control target key start
LH: loop header
LB: loop body
LE: loop exit
PB: predicated region body
PF: predicated region fallthrough
CT: control target
= control target key end

     0   :  { %s2878_s12 = smov 0   ;;  %s2880_s13 = smov 0   ;;  %s3419_s0 = inlined_call_operand.vmem [shape: f32[2,18,18,4], index: 0, kind: input, shape index: {}]   ;;  %s3420_s1 = inlined_call_operand.vmem [shape: bf16[3,3,4,256], index: 1, kind: input, shape index: {}]   ;;  %s3421_s2 = inlined_call_operand.vmem [shape: f32[1,256], index: 2, kind: input, shape index: {}]   ;;  %s3422_s3 = inlined_call_operand.vmem [shape: f32[2,16,16,256], index: 3, kind: output, shape index: {}]  }
   0x1   :  { %s2882_s14 = smov 0   ;;  %s2884_s15 = smov 0  }
   0x2   :  { %s2886_s16 = smov 0  }
   0x3 LB: > { %s22_s17 = sadd.s32 1, %s2847_s14  ;;  %s25_s18 = sadd.s32 1, %s2851_s15  ;;  %s2855_s16 = sphi %s2886_s16, %s13_s16   ;;  %s2851_s15 = sphi %s2884_s15, %s3426_s15   ;;  %s2847_s14 = sphi %s2882_s14, %s3425_s14   ;;  %s2843_s13 = sphi %s2880_s13, %s3424_s13   ;;  %s2839_s12 = sphi %s2878_s12, %s3423_s12  }
   0x4   : > { %p23_p0 = scmp.ge.s32.totalorder %s22_s17, 2  ;;  %p2309_p1 = scmp.ge.s32.totalorder %s2855_s16, 1 }
   0x5   : > { %p151_p2 = scmp.lt.s32.totalorder %s2855_s16, 5 }
   0x6   : > { %s3428_s17 = smov (%p23_p0, %s22_s17), 0  ;;  %s3430_s18 = smov (!%p23_p0, %s25_s18), %s2851_s15 }
   0x7   : > { %p152_p3 = pnand %p2309_p1, %p151_p2  ;;  %p27_p4 = scmp.ge.s32.totalorder %s3430_s18, 2 }
   0x8   : > { %v2318_v0 = vld.sshfl [vmem:[%s3420_s1 + $0x4] sm:$0x33 pattern:$0x76325410] (!%p152_p3)  ;;  %vm285_vm0 = vcmask (!%p152_p3), 1041408   ;;  %v2857_v4 = vmov (!%p152_p3), 0  }
   0x9   : > { %s3432_s18 = smov (%p27_p4, %s3430_s18), 0  ;;  %155 = sbr.rel (%p152_p3) target bundleno = 528 (0x210), region = 32 }
   0xa   : > { %v259_v1 = vcombine.high (!%p152_p3), %v2318_v0, %v2318_v0  ;;  %v2395_v2 = vld.sshfl [vmem:[%s3420_s1 + $0x10] sm:$0x33 pattern:$0x76325410] (!%p152_p3)  ;;  %v287_v3 = vsel (!%p152_p3), %vm285_vm0, %v2318_v0, 0  ;;  %324 = vmatprep.mubr.bf16.mxu1 (!%p152_p3), %v2857_v4  ;;  %1077 = vmatprep.mubr.bf16.mxu0 (!%p152_p3), %v2857_v4  ;;  %p180_p5 = scmp.lt.s32.totalorder (!%p152_p3), %s2843_s13, 1 }
   0xb   : > { %v2922_v5 = vcombine.high (!%p152_p3), %v2395_v2, %v2395_v2  ;;  %v2925_v6 = vsel (!%p152_p3), %vm285_vm0, %v2395_v2, 0  ;;  %v2328_v7 = vld.sshfl [vmem:[%s3420_s1] sm:$0x33 pattern:$0x76325410] (!%p152_p3)  ;;  %s2316_s27 = smul.u32 (!%p152_p3), 192, %s2839_s12 }
   0xc   : > { %2319 = vmatprep.subr.msk.bf16.mxu1 (!%p152_p3), %vm285_vm0, %v259_v1  ;;  %v413_v8 = vcombine.high (!%p152_p3), %v2328_v7, %v2328_v7  ;;  %v2422_v9 = vld.sshfl [vmem:[%s3420_s1 + $0x14] sm:$0x33 pattern:$0x76325410] (!%p152_p3)  ;;  %vm260_vm1 = vcmask (!%p152_p3), 31744   ;;  %v439_v17 = vsel (!%p152_p3), %vm285_vm0, %v2328_v7, 0 }
   0xd   : > { %2396 = vmatprep.subr.msk.bf16.mxu0 (!%p152_p3), %vm285_vm0, %v2922_v5  ;;  %293 = vmatpush1.bf16.msra.mxu1 (!%p152_p3), %v287_v3  ;;  %v1224_v10 = vcombine.high (!%p152_p3), %v2422_v9, %v2422_v9  ;;  %v2451_v11 = vld.sshfl [vmem:[%s3420_s1 + $0x18] sm:$0x33 pattern:$0x76325410] (!%p152_p3)  ;;  %v1250_v20 = vsel (!%p152_p3), %vm285_vm0, %v2422_v9, 0  ;;  %s2311_s23 = sshll.u32 (!%p152_p3), %s2839_s12, 3 }
   0xe   : > { %1046 = vmatpush1.bf16.msra.mxu0 (!%p152_p3), %v2925_v6  ;;  %2329 = vmatprep.subr.msk.bf16.mxu1 (!%p152_p3), %vm285_vm0, %v413_v8  ;;  %v2955_v12 = vld.sshfl [vmem:[%s3420_s1 + $0x8] sm:$0x33 pattern:$0x76325410] (!%p152_p3)  ;;  %v1437_v21 = vcombine.high (!%p152_p3), %v2451_v11, %v2451_v11  ;;  %v1463_v36 = vsel (!%p152_p3), %vm285_vm0, %v2451_v11, 0  ;;  %p188_p6 = scmp.lt.s32.totalorder (!%p152_p3), %s2311_s23, 15 }
   0xf   : > { %2423 = vmatprep.subr.msk.bf16.mxu0 (!%p152_p3), %vm285_vm0, %v1224_v10  ;;  %v591_v22 = vcombine.high (!%p152_p3), %v2955_v12, %v2955_v12  ;;  %v3005_v34 = vld.sshfl [vmem:[%s3420_s1 + $0x1c] sm:$0x33 pattern:$0x76325410] (!%p152_p3)  ;;  %v617_v63 = vsel (!%p152_p3), %vm285_vm0, %v2955_v12, 0 }
  0x10   : > { %s3434_s13 = smov (!%p180_p5, %s2843_s13), 1  ;;  %v1647_v37 = vcombine.high %v3005_v34, %v3005_v34  ;;  %v3068_v61 = vld.sshfl [vmem:[%s3420_s1 + $0xc] sm:$0x33 pattern:$0x76325410]  ;;  %s3436_s23 = smov (!%p188_p6, %s2311_s23), 15 }
  0x11   : > { %s2775_s28 = smul.u32 432, %s3434_s13  ;;  %v804_v0 = vcombine.high %v3068_v61, %v3068_v61  ;;  %s2312_s24 = sshll.u32 %s3436_s23, 2 }
  0x12   : > { %s2313_s25 = sshll.u32 %s3434_s13, 6 }
  0x13   : > { %s184_s4 = scalar_lea.vmem %s3419_s0, %s2775_s28  ;;  %s192_s12 = sadd.s32 %s2313_s25, %s2312_s24 }
  0x14   : > { %s2950_s7 = scalar_lea.vmem %s184_s4, %s2316_s27  ;;  %s2314_s28 = sshll.u32 %s192_s12, 3 }
  0x15   : > { %v225_v13 = vld [vmem:[%s2950_s7 + $0x1] sm:$0xff]  ;;  %v226_v14 = vld [vmem:[%s2950_s7 + $0x9] sm:$0xff]  ;;  %v2378_v15 = vld [vmem:[%s2950_s7 + $0x19] sm:$0xff]  ;;  %s3332_s30 = scalar_lea.vmem %s3422_s3, %s2314_s28 }
  0x16   : > { %v241_v16 = vpack.c.bf16 %v226_v14, %v225_v13  ;;  %v2379_v18 = vld [vmem:[%s2950_s7 + $0x21] sm:$0xff]  ;;  %v2380_v23 = vld [vmem:[%s2950_s7 + $0x31] sm:$0xff]  ;;  %v2381_v24 = vld [vmem:[%s2950_s7 + $0x39] sm:$0xff] }
  0x17   : > { %v996_v19 = vpack.c.bf16 %v2379_v18, %v2378_v15  ;;  %v2973_v25 = vpack.c.bf16 %v2381_v24, %v2380_v23  ;;  %v2382_v26 = vld [vmem:[%s2950_s7 + $0x49] sm:$0xff]  ;;  %v2383_v27 = vld [vmem:[%s2950_s7 + $0x51] sm:$0xff]  ;;  %v2384_v29 = vld [vmem:[%s2950_s7 + $0x61] sm:$0xff] }
  0x18   : > { %2320 = vmatmul.mubr.msk.bf16.vlgmr.msra.gmra.mrb[0].mxu1 %vm260_vm1, %v241_v16  ;;  %v2982_v28 = vpack.c.bf16 %v2383_v27, %v2382_v26  ;;  %v2385_v30 = vld [vmem:[%s2950_s7 + $0x69] sm:$0xff]  ;;  %v2405_v32 = vld [vmem:[%s2950_s7 + $0x1a] sm:$0xff]  ;;  %v2407_v40 = vld [vmem:[%s2950_s7 + $0x32] sm:$0xff]  ;;  %v1673_v27 = vsel %vm285_vm0, %v3005_v34, 0 }
  0x19   : > { %445 = vmatpush1.bf16.msra.mxu1 %v439_v17  ;;  %2397 = vmatmul.mubr.msk.bf16.vlgmr.msra.gmra.mrb[0].mxu0 %vm260_vm1, %v996_v19  ;;  %v2992_v31 = vpack.c.bf16 %v2385_v30, %v2384_v29  ;;  %v2406_v33 = vld [vmem:[%s2950_s7 + $0x22] sm:$0xff]  ;;  %v235_v38 = vld [vmem:[%s2950_s7 + $0x79] sm:$0xff]  ;;  %v237_v44 = vld [vmem:[%s2950_s7 + $0x91] sm:$0xff] }
  0x1a   : > { %1256 = vmatpush1.bf16.msra.mxu0 %v1250_v20  ;;  %334 = vmatprep.mubr.bf16.mxu1 %v2857_v4  ;;  %v3007_v35 = vpack.c.bf16 %v2406_v33, %v2405_v32  ;;  %v236_v39 = vld [vmem:[%s2950_s7 + $0x81] sm:$0xff]  ;;  %v238_v45 = vld [vmem:[%s2950_s7 + $0x99] sm:$0xff]  ;;  %v2409_v46 = vld [vmem:[%s2950_s7 + $0x4a] sm:$0xff] }
  0x1b   : > { %1087 = vmatprep.mubr.bf16.mxu0 %v2857_v4  ;;  %2452 = vmatprep.subr.msk.bf16.mxu0 %vm285_vm0, %v1437_v21  ;;  %v2408_v41 = vld [vmem:[%s2950_s7 + $0x3a] sm:$0xff]  ;;  %v3023_v42 = vpack.c.bf16 %v236_v39, %v235_v38  ;;  %v2410_v47 = vld [vmem:[%s2950_s7 + $0x52] sm:$0xff]  ;;  %v3037_v48 = vpack.c.bf16 %v238_v45, %v237_v44  ;;  %v239_v50 = vld [vmem:[%s2950_s7 + $0xa9] sm:$0xff] }
  0x1c   : > { %2340 = vmatprep.subr.msk.bf16.mxu1 %vm285_vm0, %v591_v22  ;;  %v3025_v43 = vpack.c.bf16 %v2408_v41, %v2407_v40  ;;  %v3039_v49 = vpack.c.bf16 %v2410_v47, %v2409_v46  ;;  %v240_v51 = vld [vmem:[%s2950_s7 + $0xb1] sm:$0xff]  ;;  %v2411_v52 = vld [vmem:[%s2950_s7 + $0x62] sm:$0xff]  ;;  %v2413_v58 = vld [vmem:[%s2950_s7 + $0x7a] sm:$0xff]  ;;  %v830_v46 = vsel %vm285_vm0, %v3068_v61, 0 }
  0x1d   : > { %v2412_v53 = vld [vmem:[%s2950_s7 + $0x6a] sm:$0xff]  ;;  %v3051_v54 = vpack.c.bf16 %v240_v51, %v239_v50  ;;  %v200_v56 = vld [vmem:[%s2950_s7] sm:$0xff]  ;;  %v202_v1 = vld [vmem:[%s2950_s7 + $0x18] sm:$0xff] }
  0x1e   : > { %v3053_v55 = vpack.c.bf16 %v2412_v53, %v2411_v52  ;;  %v201_v57 = vld [vmem:[%s2950_s7 + $0x8] sm:$0xff]  ;;  %v203_v2 = vld [vmem:[%s2950_s7 + $0x20] sm:$0xff]  ;;  %v2415_v3 = vld [vmem:[%s2950_s7 + $0x92] sm:$0xff] }
  0x1f   : > { %v2414_v59 = vld [vmem:[%s2950_s7 + $0x82] sm:$0xff]  ;;  %v216_v60 = vpack.c.bf16 %v201_v57, %v200_v56  ;;  %v2416_v7 = vld [vmem:[%s2950_s7 + $0x9a] sm:$0xff]  ;;  %v3086_v8 = vpack.c.bf16 %v203_v2, %v202_v1  ;;  %v204_v10 = vld [vmem:[%s2950_s7 + $0x30] sm:$0xff]  ;;  %v2035_v2 = vlaneseq }
  0x20   : > { %2321 = vmatmul.mubr.msk.bf16.gmra.mrb[4].mxu1 %vm260_vm1, %v996_v19  ;;  %v3070_v62 = vpack.c.bf16 %v2414_v59, %v2413_v58  ;;  %v3088_v9 = vpack.c.bf16 %v2416_v7, %v2415_v3  ;;  %v205_v11 = vld [vmem:[%s2950_s7 + $0x38] sm:$0xff]  ;;  %v2417_v12 = vld [vmem:[%s2950_s7 + $0xaa] sm:$0xff]  ;;  %v2419_v18 = vld [vmem:[%s2950_s7 + $0xc2] sm:$0xff] }
  0x21   : > { %2398 = vmatmul.mubr.msk.bf16.gmra.mrb[4].mxu0 %vm260_vm1, %v2973_v25  ;;  %344 = vmatprep.mubr.bf16.mxu1 %v2857_v4  ;;  %v2418_v13 = vld [vmem:[%s2950_s7 + $0xb2] sm:$0xff]  ;;  %v3100_v14 = vpack.c.bf16 %v205_v11, %v204_v10  ;;  %v206_v16 = vld [vmem:[%s2950_s7 + $0x48] sm:$0xff]  ;;  %v208_v22 = vld [vmem:[%s2950_s7 + $0x60] sm:$0xff]  ;;  %v2036_v7 = vshrl.u32 %v2035_v2, 7 }
  0x22   : > { %1097 = vmatprep.mubr.bf16.mxu0 %v2857_v4  ;;  %v3102_v15 = vpack.c.bf16 %v2418_v13, %v2417_v12  ;;  %v207_v17 = vld [vmem:[%s2950_s7 + $0x50] sm:$0xff]  ;;  %v209_v23 = vld [vmem:[%s2950_s7 + $0x68] sm:$0xff]  ;;  %v2505_v26 = vld.sshfl [vmem:[%s3420_s1 + $0x20] sm:$0x33 pattern:$0x76325410] }
  0x23   : > { %v2420_v19 = vld [vmem:[%s2950_s7 + $0xca] sm:$0xff]  ;;  %v3114_v20 = vpack.c.bf16 %v207_v17, %v206_v16  ;;  %v3126_v24 = vpack.c.bf16 %v209_v23, %v208_v22  ;;  %v1857_v29 = vcombine.high %v2505_v26, %v2505_v26  ;;  %v210_v30 = vld [vmem:[%s2950_s7 + $0x78] sm:$0xff]  ;;  %v211_v32 = vld [vmem:[%s2950_s7 + $0x80] sm:$0xff]  ;;  %v1883_v53 = vsel %vm285_vm0, %v2505_v26, 0 }
  0x24   : > { %v3116_v21 = vpack.c.bf16 %v2420_v19, %v2419_v18  ;;  %v3142_v33 = vpack.c.bf16 %v211_v32, %v210_v30  ;;  %v212_v34 = vld [vmem:[%s2950_s7 + $0x90] sm:$0xff]  ;;  %v214_v38 = vld [vmem:[%s2950_s7 + $0xa8] sm:$0xff]  ;;  %v2446_v47 = vld [vmem:[%s2950_s7 + $0xc0] sm:$0xff]  ;;  %v2037_v11 = vsub.s32 0, %v2036_v7  ;;  %v2041_v13 = vsub.s32 1, %v2036_v7 }
  0x25   : > { %v215_v39 = vld [vmem:[%s2950_s7 + $0xb0] sm:$0xff]  ;;  %v557_v41 = vld [vmem:[%s2950_s7 + $0x2] sm:$0xff]  ;;  %v2033_v12 = vld [vmem:[%s3421_s2] sm:$0x3] }
  0x26   : > { %v3162_v40 = vpack.c.bf16 %v215_v39, %v214_v38  ;;  %v558_v44 = vld [vmem:[%s2950_s7 + $0xa] sm:$0xff]  ;;  %v2476_v56 = vld [vmem:[%s2950_s7 + $0xe1] sm:$0xff]  ;;  %v3325_v16 = vrot.slane %v2033_v12, %v2041_v13 }
  0x27   : > { %v573_v45 = vpack.c.bf16 %v558_v44, %v557_v41  ;;  %v2447_v50 = vld [vmem:[%s2950_s7 + $0xc8] sm:$0xff] }
  0x28   : > { %2322 = vmatmul.mubr.msk.bf16.gmra.mrb[8].mxu1 %vm260_vm1, %v2973_v25  ;;  %v3189_v51 = vpack.c.bf16 %v2447_v50, %v2446_v47 }
  0x29   : > { %2399 = vmatmul.mubr.msk.bf16.gmra.mrb[8].mxu0 %vm260_vm1, %v2982_v28  ;;  %354 = vmatprep.mubr.bf16.mxu1 %v2857_v4 }
  0x2a   : > { %1107 = vmatprep.mubr.bf16.mxu0 %v2857_v4 }
  0x30   : > { %2323 = vmatmul.mubr.msk.bf16.gmra.mrb[12].mxu1 %vm260_vm1, %v2982_v28 }
  0x31   : > { %2400 = vmatmul.mubr.msk.bf16.gmra.mrb[12].mxu0 %vm260_vm1, %v2992_v31  ;;  %364 = vmatprep.mubr.bf16.mxu1 %v2857_v4 }
  0x32   : > { %1287 = vmatprep.mubr.bf16.mxu0 %v2857_v4 }
  0x38   : > { %2324 = vmatmul.mubr.msk.bf16.gmra.mrb[16].mxu1 %vm260_vm1, %v2992_v31 }
  0x39   : > { %2424 = vmatmul.mubr.msk.bf16.vlgmr.msra.gmra.mrb[0].mxu0 %vm260_vm1, %v3007_v35  ;;  %374 = vmatprep.mubr.bf16.mxu1 %v2857_v4 }
  0x3a   : > { %1469 = vmatpush1.bf16.msra.mxu0 %v1463_v36  ;;  %1297 = vmatprep.mubr.bf16.mxu0 %v2857_v4  ;;  %v213_v36 = vld [vmem:[%s2950_s7 + $0x98] sm:$0xff] }
  0x3b   : > { %2479 = vmatprep.subr.msk.bf16.mxu0 %vm285_vm0, %v1647_v37  ;;  %v3152_v37 = vpack.c.bf16 %v213_v36, %v212_v34 }
  0x40   : > { %2325 = vmatmul.mubr.msk.bf16.gmra.mrb[20].mxu1 %vm260_vm1, %v3023_v42 }
  0x41   : > { %2425 = vmatmul.mubr.msk.bf16.gmra.mrb[4].mxu0 %vm260_vm1, %v3025_v43  ;;  %384 = vmatprep.mubr.bf16.mxu1 %v2857_v4 }
  0x42   : > { %1307 = vmatprep.mubr.bf16.mxu0 %v2857_v4 }
  0x48   : > { %2326 = vmatmul.mubr.msk.bf16.gmra.mrb[24].mxu1 %vm260_vm1, %v3037_v48 }
  0x49   : > { %2426 = vmatmul.mubr.msk.bf16.gmra.mrb[8].mxu0 %vm260_vm1, %v3039_v49  ;;  %394 = vmatprep.mubr.bf16.mxu1 %v2857_v4 }
  0x4a   : > { %1317 = vmatprep.mubr.bf16.mxu0 %v2857_v4 }
  0x50   : > { %2327 = vmatmul.mubr.msk.bf16.gmra.mrb[28].mxu1 %vm260_vm1, %v3051_v54 }
  0x51   : > { %2427 = vmatmul.mubr.msk.bf16.gmra.mrb[12].mxu0 %vm260_vm1, %v3053_v55  ;;  %476 = vmatprep.mubr.bf16.mxu1 %v2857_v4 }
  0x52   : > { %1327 = vmatprep.mubr.bf16.mxu0 %v2857_v4 }
  0x58   : > { %2330 = vmatmul.mubr.msk.bf16.vlgmr.msra.gmra.mrb[0].mxu1 %vm260_vm1, %v216_v60 }
  0x59   : > { %623 = vmatpush1.bf16.msra.mxu1 %v617_v63  ;;  %2428 = vmatmul.mubr.msk.bf16.gmra.mrb[16].mxu0 %vm260_vm1, %v3070_v62 }
  0x5a   : > { %486 = vmatprep.mubr.bf16.mxu1 %v2857_v4  ;;  %1337 = vmatprep.mubr.bf16.mxu0 %v2857_v4 }
  0x5b   : > { %2369 = vmatprep.subr.msk.bf16.mxu1 %vm285_vm0, %v804_v0 }
  0x60   : > { %2331 = vmatmul.mubr.msk.bf16.gmra.mrb[4].mxu1 %vm260_vm1, %v3086_v8 }
  0x61   : > { %2429 = vmatmul.mubr.msk.bf16.gmra.mrb[20].mxu0 %vm260_vm1, %v3088_v9  ;;  %496 = vmatprep.mubr.bf16.mxu1 %v2857_v4 }
  0x62   : > { %1347 = vmatprep.mubr.bf16.mxu0 %v2857_v4 }
  0x68   : > { %2332 = vmatmul.mubr.msk.bf16.gmra.mrb[8].mxu1 %vm260_vm1, %v3100_v14 }
  0x69   : > { %2430 = vmatmul.mubr.msk.bf16.gmra.mrb[24].mxu0 %vm260_vm1, %v3102_v15  ;;  %506 = vmatprep.mubr.bf16.mxu1 %v2857_v4 }
  0x6a   : > { %1357 = vmatprep.mubr.bf16.mxu0 %v2857_v4 }
  0x70   : > { %2333 = vmatmul.mubr.msk.bf16.gmra.mrb[12].mxu1 %vm260_vm1, %v3114_v20 }
  0x71   : > { %2431 = vmatmul.mubr.msk.bf16.gmra.mrb[28].mxu0 %vm260_vm1, %v3116_v21  ;;  %516 = vmatprep.mubr.bf16.mxu1 %v2857_v4 }
  0x72   : > { %1500 = vmatprep.mubr.bf16.mxu0 %v2857_v4 }
  0x78   : > { %2334 = vmatmul.mubr.msk.bf16.gmra.mrb[16].mxu1 %vm260_vm1, %v3126_v24 }
  0x79   : > { %2453 = vmatmul.mubr.msk.bf16.vlgmr.msra.gmra.mrb[0].mxu0 %vm260_vm1, %v3100_v14  ;;  %526 = vmatprep.mubr.bf16.mxu1 %v2857_v4 }
  0x7a   : > { %1679 = vmatpush1.bf16.msra.mxu0 %v1673_v27  ;;  %1510 = vmatprep.mubr.bf16.mxu0 %v2857_v4 }
  0x7b   : > { %2506 = vmatprep.subr.msk.bf16.mxu0 %vm285_vm0, %v1857_v29 }
  0x80   : > { %2335 = vmatmul.mubr.msk.bf16.gmra.mrb[20].mxu1 %vm260_vm1, %v3142_v33 }
  0x81   : > { %2454 = vmatmul.mubr.msk.bf16.gmra.mrb[4].mxu0 %vm260_vm1, %v3114_v20  ;;  %536 = vmatprep.mubr.bf16.mxu1 %v2857_v4 }
  0x82   : > { %1520 = vmatprep.mubr.bf16.mxu0 %v2857_v4 }
  0x88   : > { %2336 = vmatmul.mubr.msk.bf16.gmra.mrb[24].mxu1 %vm260_vm1, %v3152_v37 }
  0x89   : > { %2455 = vmatmul.mubr.msk.bf16.gmra.mrb[8].mxu0 %vm260_vm1, %v3126_v24  ;;  %546 = vmatprep.mubr.bf16.mxu1 %v2857_v4 }
  0x8a   : > { %1530 = vmatprep.mubr.bf16.mxu0 %v2857_v4 }
  0x90   : > { %2337 = vmatmul.mubr.msk.bf16.gmra.mrb[28].mxu1 %vm260_vm1, %v3162_v40 }
  0x91   : > { %2456 = vmatmul.mubr.msk.bf16.gmra.mrb[12].mxu0 %vm260_vm1, %v3142_v33  ;;  %654 = vmatprep.mubr.bf16.mxu1 %v2857_v4 }
  0x92   : > { %1540 = vmatprep.mubr.bf16.mxu0 %v2857_v4 }
  0x98   : > { %2341 = vmatmul.mubr.msk.bf16.vlgmr.msra.gmra.mrb[0].mxu1 %vm260_vm1, %v573_v45 }
  0x99   : > { %836 = vmatpush1.bf16.msra.mxu1 %v830_v46  ;;  %2457 = vmatmul.mubr.msk.bf16.gmra.mrb[16].mxu0 %vm260_vm1, %v3152_v37 }
  0x9a   : > { %664 = vmatprep.mubr.bf16.mxu1 %v2857_v4  ;;  %1550 = vmatprep.mubr.bf16.mxu0 %v2857_v4 }
  0x9b   : > { %2517 = vmatprep.subr.msk.bf16.mxu1 %vm285_vm0, %v2922_v5  ;;  %v2448_v5 = vld [vmem:[%s2950_s7 + $0xd8] sm:$0xff] }
  0xa0   : > { %2342 = vmatmul.mubr.msk.bf16.gmra.mrb[4].mxu1 %vm260_vm1, %v3007_v35  ;;  %v2449_v35 = vld [vmem:[%s2950_s7 + $0xe0] sm:$0xff] }
  0xa1   : > { %2458 = vmatmul.mubr.msk.bf16.gmra.mrb[20].mxu0 %vm260_vm1, %v3162_v40  ;;  %674 = vmatprep.mubr.bf16.mxu1 %v2857_v4  ;;  %v1426_v52 = vpack.c.bf16 %v2449_v35, %v2448_v5 }
  0xa2   : > { %1560 = vmatprep.mubr.bf16.mxu0 %v2857_v4 }
  0xa8   : > { %2343 = vmatmul.mubr.msk.bf16.gmra.mrb[8].mxu1 %vm260_vm1, %v3025_v43 }
  0xa9   : > { %2459 = vmatmul.mubr.msk.bf16.gmra.mrb[24].mxu0 %vm260_vm1, %v3189_v51  ;;  %684 = vmatprep.mubr.bf16.mxu1 %v2857_v4 }
  0xaa   : > { %1570 = vmatprep.mubr.bf16.mxu0 %v2857_v4 }
  0xb0   : > { %2344 = vmatmul.mubr.msk.bf16.gmra.mrb[12].mxu1 %vm260_vm1, %v3039_v49 }
  0xb1   : > { %2460 = vmatmul.mubr.msk.bf16.gmra.mrb[28].mxu0 %vm260_vm1, %v1426_v52  ;;  %694 = vmatprep.mubr.bf16.mxu1 %v2857_v4 }
  0xb2   : > { %1710 = vmatprep.mubr.bf16.mxu0 %v2857_v4 }
  0xb8   : > { %2345 = vmatmul.mubr.msk.bf16.gmra.mrb[16].mxu1 %vm260_vm1, %v3053_v55 }
  0xb9   : > { %2480 = vmatmul.mubr.msk.bf16.vlgmr.msra.gmra.mrb[0].mxu0 %vm260_vm1, %v2973_v25  ;;  %704 = vmatprep.mubr.bf16.mxu1 %v2857_v4  ;;  %v2473_v25 = vld [vmem:[%s2950_s7 + $0xc1] sm:$0xff] }
  0xba   : > { %1889 = vmatpush1.bf16.msra.mxu0 %v1883_v53  ;;  %1720 = vmatprep.mubr.bf16.mxu0 %v2857_v4 }
  0xc0   : > { %2346 = vmatmul.mubr.msk.bf16.gmra.mrb[20].mxu1 %vm260_vm1, %v3070_v62 }
  0xc1   : > { %2481 = vmatmul.mubr.msk.bf16.gmra.mrb[4].mxu0 %vm260_vm1, %v2982_v28  ;;  %714 = vmatprep.mubr.bf16.mxu1 %v2857_v4 }
  0xc2   : > { %1730 = vmatprep.mubr.bf16.mxu0 %v2857_v4 }
  0xc8   : > { %2347 = vmatmul.mubr.msk.bf16.gmra.mrb[24].mxu1 %vm260_vm1, %v3088_v9 }
  0xc9   : > { %2482 = vmatmul.mubr.msk.bf16.gmra.mrb[8].mxu0 %vm260_vm1, %v2992_v31  ;;  %724 = vmatprep.mubr.bf16.mxu1 %v2857_v4  ;;  %v2475_v31 = vld [vmem:[%s2950_s7 + $0xd9] sm:$0xff] }
  0xca   : > { %1740 = vmatprep.mubr.bf16.mxu0 %v2857_v4  ;;  %v1636_v57 = vpack.c.bf16 %v2476_v56, %v2475_v31 }
  0xd0   : > { %2348 = vmatmul.mubr.msk.bf16.gmra.mrb[28].mxu1 %vm260_vm1, %v3102_v15 }
  0xd1   : > { %2483 = vmatmul.mubr.msk.bf16.gmra.mrb[12].mxu0 %vm260_vm1, %v3023_v42  ;;  %867 = vmatprep.mubr.bf16.mxu1 %v2857_v4 }
  0xd2   : > { %1750 = vmatprep.mubr.bf16.mxu0 %v2857_v4 }
  0xd8   : > { %2370 = vmatmul.mubr.msk.bf16.vlgmr.msra.gmra.mrb[0].mxu1 %vm260_vm1, %v3086_v8 }
  0xd9   : > { %2518 = vmatpush1.bf16.msra.mxu1 %v2925_v6  ;;  %2484 = vmatmul.mubr.msk.bf16.gmra.mrb[16].mxu0 %vm260_vm1, %v3037_v48  ;;  %v2474_v6 = vld [vmem:[%s2950_s7 + $0xc9] sm:$0xff] }
  0xda   : > { %877 = vmatprep.mubr.bf16.mxu1 %v2857_v4  ;;  %1760 = vmatprep.mubr.bf16.mxu0 %v2857_v4  ;;  %v1635_v28 = vpack.c.bf16 %v2474_v6, %v2473_v25 }
  0xe0   : > { %2371 = vmatmul.mubr.msk.bf16.gmra.mrb[4].mxu1 %vm260_vm1, %v3100_v14  ;;  %v3323_v14 = vrot.slane %v2033_v12, %v2037_v11 }
  0xe1   : > { %2485 = vmatmul.mubr.msk.bf16.gmra.mrb[20].mxu0 %vm260_vm1, %v3051_v54  ;;  %887 = vmatprep.mubr.bf16.mxu1 %v2857_v4 }
  0xe2   : > { %1770 = vmatprep.mubr.bf16.mxu0 %v2857_v4 }
  0xe8   : > { %2372 = vmatmul.mubr.msk.bf16.gmra.mrb[8].mxu1 %vm260_vm1, %v3114_v20 }
  0xe9   : > { %2486 = vmatmul.mubr.msk.bf16.gmra.mrb[24].mxu0 %vm260_vm1, %v1635_v28  ;;  %897 = vmatprep.mubr.bf16.mxu1 %v2857_v4 }
  0xea   : > { %1780 = vmatprep.mubr.bf16.mxu0 %v2857_v4 }
  0xf0   : > { %2373 = vmatmul.mubr.msk.bf16.gmra.mrb[12].mxu1 %vm260_vm1, %v3126_v24 }
  0xf1   : > { %2487 = vmatmul.mubr.msk.bf16.gmra.mrb[28].mxu0 %vm260_vm1, %v1636_v57  ;;  %907 = vmatprep.mubr.bf16.mxu1 %v2857_v4 }
  0xf2   : > { %1920 = vmatprep.mubr.bf16.mxu0 %v2857_v4 }
  0xf8   : > { %2374 = vmatmul.mubr.msk.bf16.gmra.mrb[16].mxu1 %vm260_vm1, %v3142_v33 }
  0xf9   : > { %2507 = vmatmul.mubr.msk.bf16.vlgmr.msra.gmra.mrb[0].mxu0 %vm260_vm1, %v3025_v43  ;;  %917 = vmatprep.mubr.bf16.mxu1 %v2857_v4  ;;  %v2503_v43 = vld [vmem:[%s2950_s7 + $0xe2] sm:$0xff] }
  0xfa   : > { %1930 = vmatprep.mubr.bf16.mxu0 %v2857_v4 }
 0x100   : > { %2375 = vmatmul.mubr.msk.bf16.gmra.mrb[20].mxu1 %vm260_vm1, %v3152_v37 }
 0x101   : > { %2508 = vmatmul.mubr.msk.bf16.gmra.mrb[4].mxu0 %vm260_vm1, %v3039_v49  ;;  %927 = vmatprep.mubr.bf16.mxu1 %v2857_v4 }
 0x102   : > { %1940 = vmatprep.mubr.bf16.mxu0 %v2857_v4 }
 0x108   : > { %2376 = vmatmul.mubr.msk.bf16.gmra.mrb[24].mxu1 %vm260_vm1, %v3162_v40 }
 0x109   : > { %2509 = vmatmul.mubr.msk.bf16.gmra.mrb[8].mxu0 %vm260_vm1, %v3053_v55  ;;  %937 = vmatprep.mubr.bf16.mxu1 %v2857_v4 }
 0x10a   : > { %1950 = vmatprep.mubr.bf16.mxu0 %v2857_v4 }
 0x110   : > { %2377 = vmatmul.mubr.msk.bf16.gmra.mrb[28].mxu1 %vm260_vm1, %v3189_v51 }
 0x111   : > { %2510 = vmatmul.mubr.msk.bf16.gmra.mrb[12].mxu0 %vm260_vm1, %v3070_v62  ;;  %1117 = vmatprep.mubr.bf16.mxu1 %v2857_v4 }
 0x112   : > { %1960 = vmatprep.mubr.bf16.mxu0 %v2857_v4 }
 0x118   : > { %2401 = vmatmul.mubr.msk.bf16.vlgmr.msra.gmra.mrb[16].mxu1 %vm260_vm1, %v3023_v42  ;;  %v2502_v42 = vld [vmem:[%s2950_s7 + $0xda] sm:$0xff] }
 0x119   : > { %2511 = vmatmul.mubr.msk.bf16.gmra.mrb[16].mxu0 %vm260_vm1, %v3088_v9  ;;  %1127 = vmatprep.mubr.bf16.mxu1 %v2857_v4 }
 0x11a   : > { %1970 = vmatprep.mubr.bf16.mxu0 %v2857_v4 }
 0x120   : > { %2402 = vmatmul.mubr.msk.bf16.gmra.mrb[20].mxu1 %vm260_vm1, %v3037_v48  ;;  %v1846_v48 = vpack.c.bf16 %v2503_v43, %v2502_v42 }
 0x121   : > { %2512 = vmatmul.mubr.msk.bf16.gmra.mrb[20].mxu0 %vm260_vm1, %v3102_v15  ;;  %1137 = vmatprep.mubr.bf16.mxu1 %v2857_v4 }
 0x122   : > { %1980 = vmatprep.mubr.bf16.mxu0 %v2857_v4 }
 0x128   : > { %2403 = vmatmul.mubr.msk.bf16.gmra.mrb[24].mxu1 %vm260_vm1, %v3051_v54 }
 0x129   : > { %2513 = vmatmul.mubr.msk.bf16.gmra.mrb[24].mxu0 %vm260_vm1, %v3116_v21  ;;  %1147 = vmatprep.mubr.bf16.mxu1 %v2857_v4 }
 0x12a   : > { %1990 = vmatprep.mubr.bf16.mxu0 %v2857_v4 }
 0x130   : > { %2404 = vmatmul.mubr.msk.bf16.gmra.mrb[28].mxu1 %vm260_vm1, %v1635_v28 }
 0x131   : > { %2514 = vmatmul.mubr.msk.bf16.gmra.mrb[28].mxu0 %vm260_vm1, %v1846_v48 }
 0x1ab   : > { %v869_v49 = vpop.f32.mrb[0].mxu1 }
 0x1ac   : > { %v871_v55 = vpop.f32.mrb[1].mxu1 }
 0x1ad   : > { %v873_v58 = vpop.f32.mrb[2].mxu1 }
 0x1ae   : > { %v875_v59 = vpop.f32.mrb[3].mxu1 }
 0x1b3   : > { %v879_v54 = vpop.f32.mrb[4].mxu1 }
 0x1b4   : > { %v881_v60 = vpop.f32.mrb[5].mxu1 }
 0x1b5   : > { %v883_v61 = vpop.f32.mrb[6].mxu1 }
 0x1b6   : > { %v885_v62 = vpop.f32.mrb[7].mxu1 }
 0x1bb   : > { %v3302_v63 = vpop.f32.mrb[8].mxu1 }
 0x1bc   : > { %v3304_v4 = vpop.f32.mrb[9].mxu1 }
 0x1bd   : > { %v3306_v0 = vpop.f32.mrb[10].mxu1 }
 0x1be   : > { %v3309_v1 = vpop.f32.mrb[11].mxu1 }
 0x1c3   : > { %v3311_v3 = vpop.f32.mrb[12].mxu1 }
 0x1c4   : > { %v3313_v8 = vpop.f32.mrb[13].mxu1 }
 0x1c5   : > { %v3315_v9 = vpop.f32.mrb[14].mxu1 }
 0x1c6   : > { %v3317_v10 = vpop.f32.mrb[15].mxu1 }
 0x1cc   : > { %v1922_v15 = vpop.f32.mrb[0].mxu0 }
 0x1cd   : > { %v2519_v17 = vadd.f32 %v1922_v15, %v869_v49  ;;  %v1924_v18 = vpop.f32.mrb[1].mxu0 }
 0x1ce   : > { %v2520_v19 = vadd.f32 %v1924_v18, %v871_v55  ;;  %v1926_v20 = vpop.f32.mrb[2].mxu0 }
 0x1cf   : > { %v2045_v21 = vadd.f32 %v2519_v17, %v3323_v14  ;;  %v2521_v22 = vadd.f32 %v1926_v20, %v873_v58  ;;  %v1928_v23 = vpop.f32.mrb[3].mxu0 }
 0x1d0   : > { %v2046_v24 = vadd.f32 %v2520_v19, %v3325_v16  ;;  %v2522_v26 = vadd.f32 %v1928_v23, %v875_v59 }
 0x1d1   : > { %vm2077_vm2 = vcmp.gt.f32.partialorder %v2045_v21, 0.0  ;;  %v2109_v27 = vmul.f32 0.01, %v2045_v21  ;;  %v2047_v29 = vadd.f32 %v2521_v22, %v3323_v14 }
 0x1d2   : > { %vm2078_vm3 = vcmp.gt.f32.partialorder %v2046_v24, 0.0  ;;  %v2110_v30 = vmul.f32 0.01, %v2046_v24  ;;  %v2048_v32 = vadd.f32 %v2522_v26, %v3325_v16 }
 0x1d3   : > { %v2141_v33 = vsel %vm2077_vm2, %v2045_v21, %v2109_v27  ;;  %vm2079_vm4 = vcmp.gt.f32.partialorder %v2047_v29, 0.0  ;;  %v2111_v34 = vmul.f32 0.01, %v2047_v29 }
 0x1d4   : > { %2173 = vst [vmem:[%s3332_s30] sm:$0xff] %v2141_v33  ;;  %v2142_v36 = vsel %vm2078_vm3, %v2046_v24, %v2110_v30  ;;  %vm2080_vm5 = vcmp.gt.f32.partialorder %v2048_v32, 0.0  ;;  %v2112_v37 = vmul.f32 0.01, %v2048_v32  ;;  %v1932_v38 = vpop.f32.mrb[4].mxu0 }
 0x1d5   : > { %2174 = vst [vmem:[%s3332_s30 + $0x8] sm:$0xff] %v2142_v36  ;;  %v2143_v39 = vsel %vm2079_vm4, %v2047_v29, %v2111_v34  ;;  %v2523_v40 = vadd.f32 %v1932_v38, %v879_v54  ;;  %v1934_v41 = vpop.f32.mrb[5].mxu0 }
 0x1d6   : > { %2175 = vst [vmem:[%s3332_s30 + $0x10] sm:$0xff] %v2143_v39  ;;  %v2144_v44 = vsel %vm2080_vm5, %v2048_v32, %v2112_v37  ;;  %v2524_v45 = vadd.f32 %v1934_v41, %v881_v60  ;;  %v1936_v46 = vpop.f32.mrb[6].mxu0 }
 0x1d7   : > { %2176 = vst [vmem:[%s3332_s30 + $0x18] sm:$0xff] %v2144_v44  ;;  %v2049_v47 = vadd.f32 %v2523_v40, %v3323_v14  ;;  %v2525_v50 = vadd.f32 %v1936_v46, %v883_v61  ;;  %v1938_v51 = vpop.f32.mrb[7].mxu0 }
 0x1d8   : > { %v2050_v5 = vadd.f32 %v2524_v45, %v3325_v16  ;;  %v2526_v35 = vadd.f32 %v1938_v51, %v885_v62 }
 0x1d9   : > { %vm2081_vm6 = vcmp.gt.f32.partialorder %v2049_v47, 0.0  ;;  %v2113_v52 = vmul.f32 0.01, %v2049_v47  ;;  %v2051_v53 = vadd.f32 %v2525_v50, %v3323_v14 }
 0x1da   : > { %vm2082_vm7 = vcmp.gt.f32.partialorder %v2050_v5, 0.0  ;;  %v2114_v25 = vmul.f32 0.01, %v2050_v5  ;;  %v2052_v6 = vadd.f32 %v2526_v35, %v3325_v16 }
 0x1db   : > { %v2145_v28 = vsel %vm2081_vm6, %v2049_v47, %v2113_v52  ;;  %vm2083_vm8 = vcmp.gt.f32.partialorder %v2051_v53, 0.0  ;;  %v2115_v31 = vmul.f32 0.01, %v2051_v53 }
 0x1dc   : > { %2177 = vst [vmem:[%s3332_s30 + $0x20] sm:$0xff] %v2145_v28  ;;  %v2146_v56 = vsel %vm2082_vm7, %v2050_v5, %v2114_v25  ;;  %vm2084_vm9 = vcmp.gt.f32.partialorder %v2052_v6, 0.0  ;;  %v2116_v57 = vmul.f32 0.01, %v2052_v6  ;;  %v1942_v42 = vpop.f32.mrb[8].mxu0 }
 0x1dd   : > { %2178 = vst [vmem:[%s3332_s30 + $0x28] sm:$0xff] %v2146_v56  ;;  %v2147_v43 = vsel %vm2083_vm8, %v2051_v53, %v2115_v31  ;;  %v2527_v48 = vadd.f32 %v1942_v42, %v3302_v63  ;;  %v1944_v49 = vpop.f32.mrb[9].mxu0 }
 0x1de   : > { %2179 = vst [vmem:[%s3332_s30 + $0x30] sm:$0xff] %v2147_v43  ;;  %v2148_v55 = vsel %vm2084_vm9, %v2052_v6, %v2116_v57  ;;  %v2528_v58 = vadd.f32 %v1944_v49, %v3304_v4  ;;  %v1946_v59 = vpop.f32.mrb[10].mxu0 }
 0x1df   : > { %2180 = vst [vmem:[%s3332_s30 + $0x38] sm:$0xff] %v2148_v55  ;;  %v2053_v54 = vadd.f32 %v2527_v48, %v3323_v14  ;;  %v2529_v60 = vadd.f32 %v1946_v59, %v3306_v0  ;;  %v1948_v61 = vpop.f32.mrb[11].mxu0 }
 0x1e0   : > { %v2054_v62 = vadd.f32 %v2528_v58, %v3325_v16  ;;  %v2530_v2 = vadd.f32 %v1948_v61, %v3309_v1 }
 0x1e1   : > { %vm2085_vm10 = vcmp.gt.f32.partialorder %v2053_v54, 0.0  ;;  %v2117_v63 = vmul.f32 0.01, %v2053_v54  ;;  %v2055_v7 = vadd.f32 %v2529_v60, %v3323_v14 }
 0x1e2   : > { %vm2086_vm11 = vcmp.gt.f32.partialorder %v2054_v62, 0.0  ;;  %v2118_v4 = vmul.f32 0.01, %v2054_v62  ;;  %v2056_v11 = vadd.f32 %v2530_v2, %v3325_v16 }
 0x1e3   : > { %v2149_v12 = vsel %vm2085_vm10, %v2053_v54, %v2117_v63  ;;  %vm2087_vm12 = vcmp.gt.f32.partialorder %v2055_v7, 0.0  ;;  %v2119_v13 = vmul.f32 0.01, %v2055_v7 }
 0x1e4   : > { %2181 = vst [vmem:[%s3332_s30 + $0x40] sm:$0xff] %v2149_v12  ;;  %v2150_v0 = vsel %vm2086_vm11, %v2054_v62, %v2118_v4  ;;  %vm2088_vm13 = vcmp.gt.f32.partialorder %v2056_v11, 0.0  ;;  %v2120_v15 = vmul.f32 0.01, %v2056_v11  ;;  %v1952_v17 = vpop.f32.mrb[12].mxu0 }
 0x1e5   : > { %2182 = vst [vmem:[%s3332_s30 + $0x48] sm:$0xff] %v2150_v0  ;;  %v2151_v1 = vsel %vm2087_vm12, %v2055_v7, %v2119_v13  ;;  %v2531_v18 = vadd.f32 %v1952_v17, %v3311_v3  ;;  %v1954_v19 = vpop.f32.mrb[13].mxu0 }
 0x1e6   : > { %2183 = vst [vmem:[%s3332_s30 + $0x50] sm:$0xff] %v2151_v1  ;;  %v2152_v20 = vsel %vm2088_vm13, %v2056_v11, %v2120_v15  ;;  %v2532_v21 = vadd.f32 %v1954_v19, %v3313_v8  ;;  %v1956_v22 = vpop.f32.mrb[14].mxu0 }
 0x1e7   : > { %2184 = vst [vmem:[%s3332_s30 + $0x58] sm:$0xff] %v2152_v20  ;;  %v2057_v23 = vadd.f32 %v2531_v18, %v3323_v14  ;;  %v2533_v24 = vadd.f32 %v1956_v22, %v3315_v9  ;;  %v1958_v26 = vpop.f32.mrb[15].mxu0 }
 0x1e8   : > { %v2058_v27 = vadd.f32 %v2532_v21, %v3325_v16  ;;  %v2534_v29 = vadd.f32 %v1958_v26, %v3317_v10 }
 0x1e9   : > { %vm2089_vm14 = vcmp.gt.f32.partialorder %v2057_v23, 0.0  ;;  %v2121_v3 = vmul.f32 0.01, %v2057_v23  ;;  %v2059_v30 = vadd.f32 %v2533_v24, %v3323_v14 }
 0x1ea   : > { %vm2090_vm15 = vcmp.gt.f32.partialorder %v2058_v27, 0.0  ;;  %v2122_v32 = vmul.f32 0.01, %v2058_v27  ;;  %v2060_v8 = vadd.f32 %v2534_v29, %v3325_v16 }
 0x1eb   : > { %v2153_v33 = vsel %vm2089_vm14, %v2057_v23, %v2121_v3  ;;  %vm2091_vm0 = vcmp.gt.f32.partialorder %v2059_v30, 0.0  ;;  %v2123_v34 = vmul.f32 0.01, %v2059_v30  ;;  %v1119_v36 = vpop.f32.mrb[16].mxu1 }
 0x1ec   : > { %2185 = vst [vmem:[%s3332_s30 + $0x60] sm:$0xff] %v2153_v33  ;;  %v2154_v9 = vsel %vm2090_vm15, %v2058_v27, %v2122_v32  ;;  %vm2092_vm1 = vcmp.gt.f32.partialorder %v2060_v8, 0.0  ;;  %v2124_v37 = vmul.f32 0.01, %v2060_v8  ;;  %v1962_v10 = vpop.f32.mrb[16].mxu0  ;;  %v1121_v38 = vpop.f32.mrb[17].mxu1 }
 0x1ed   : > { %2186 = vst [vmem:[%s3332_s30 + $0x68] sm:$0xff] %v2154_v9  ;;  %v2155_v39 = vsel %vm2091_vm0, %v2059_v30, %v2123_v34  ;;  %v2535_v40 = vadd.f32 %v1962_v10, %v1119_v36  ;;  %v1964_v41 = vpop.f32.mrb[17].mxu0  ;;  %v1123_v44 = vpop.f32.mrb[18].mxu1 }
 0x1ee   : > { %2187 = vst [vmem:[%s3332_s30 + $0x70] sm:$0xff] %v2155_v39  ;;  %v2156_v45 = vsel %vm2092_vm1, %v2060_v8, %v2124_v37  ;;  %v2536_v46 = vadd.f32 %v1964_v41, %v1121_v38  ;;  %v1966_v47 = vpop.f32.mrb[18].mxu0  ;;  %v1125_v50 = vpop.f32.mrb[19].mxu1 }
 0x1ef   : > { %2188 = vst [vmem:[%s3332_s30 + $0x78] sm:$0xff] %v2156_v45  ;;  %v2061_v51 = vadd.f32 %v2535_v40, %v3323_v14  ;;  %v2537_v5 = vadd.f32 %v1966_v47, %v1123_v44  ;;  %v1968_v35 = vpop.f32.mrb[19].mxu0 }
 0x1f0   : > { %v2062_v52 = vadd.f32 %v2536_v46, %v3325_v16  ;;  %v2538_v53 = vadd.f32 %v1968_v35, %v1125_v50 }
 0x1f1   : > { %vm2093_vm2 = vcmp.gt.f32.partialorder %v2061_v51, 0.0  ;;  %v2125_v25 = vmul.f32 0.01, %v2061_v51  ;;  %v2063_v6 = vadd.f32 %v2537_v5, %v3323_v14 }
 0x1f2   : > { %vm2094_vm3 = vcmp.gt.f32.partialorder %v2062_v52, 0.0  ;;  %v2126_v28 = vmul.f32 0.01, %v2062_v52  ;;  %v2064_v31 = vadd.f32 %v2538_v53, %v3325_v16 }
 0x1f3   : > { %v2157_v56 = vsel %vm2093_vm2, %v2061_v51, %v2125_v25  ;;  %vm2095_vm4 = vcmp.gt.f32.partialorder %v2063_v6, 0.0  ;;  %v2127_v57 = vmul.f32 0.01, %v2063_v6  ;;  %v1129_v42 = vpop.f32.mrb[20].mxu1 }
 0x1f4   : > { %2189 = vst [vmem:[%s3332_s30 + $0x80] sm:$0xff] %v2157_v56  ;;  %v2158_v43 = vsel %vm2094_vm3, %v2062_v52, %v2126_v28  ;;  %vm2096_vm5 = vcmp.gt.f32.partialorder %v2064_v31, 0.0  ;;  %v2128_v48 = vmul.f32 0.01, %v2064_v31  ;;  %v1972_v49 = vpop.f32.mrb[20].mxu0  ;;  %v1131_v55 = vpop.f32.mrb[21].mxu1 }
 0x1f5   : > { %2190 = vst [vmem:[%s3332_s30 + $0x88] sm:$0xff] %v2158_v43  ;;  %v2159_v58 = vsel %vm2095_vm4, %v2063_v6, %v2127_v57  ;;  %v2539_v59 = vadd.f32 %v1972_v49, %v1129_v42  ;;  %v1974_v54 = vpop.f32.mrb[21].mxu0  ;;  %v1133_v60 = vpop.f32.mrb[22].mxu1 }
 0x1f6   : > { %2191 = vst [vmem:[%s3332_s30 + $0x90] sm:$0xff] %v2159_v58  ;;  %v2160_v61 = vsel %vm2096_vm5, %v2064_v31, %v2128_v48  ;;  %v2540_v62 = vadd.f32 %v1974_v54, %v1131_v55  ;;  %v1976_v2 = vpop.f32.mrb[22].mxu0  ;;  %v1135_v63 = vpop.f32.mrb[23].mxu1 }
 0x1f7   : > { %2192 = vst [vmem:[%s3332_s30 + $0x98] sm:$0xff] %v2160_v61  ;;  %v2065_v7 = vadd.f32 %v2539_v59, %v3323_v14  ;;  %v2541_v4 = vadd.f32 %v1976_v2, %v1133_v60  ;;  %v1978_v11 = vpop.f32.mrb[23].mxu0 }
 0x1f8   : > { %v2066_v12 = vadd.f32 %v2540_v62, %v3325_v16  ;;  %v2542_v13 = vadd.f32 %v1978_v11, %v1135_v63 }
 0x1f9   : > { %vm2097_vm6 = vcmp.gt.f32.partialorder %v2065_v7, 0.0  ;;  %v2129_v0 = vmul.f32 0.01, %v2065_v7  ;;  %v2067_v15 = vadd.f32 %v2541_v4, %v3323_v14 }
 0x1fa   : > { %vm2098_vm7 = vcmp.gt.f32.partialorder %v2066_v12, 0.0  ;;  %v2130_v17 = vmul.f32 0.01, %v2066_v12  ;;  %v2068_v1 = vadd.f32 %v2542_v13, %v3325_v16 }
 0x1fb   : > { %v2161_v18 = vsel %vm2097_vm6, %v2065_v7, %v2129_v0  ;;  %vm2099_vm8 = vcmp.gt.f32.partialorder %v2067_v15, 0.0  ;;  %v2131_v19 = vmul.f32 0.01, %v2067_v15  ;;  %v1139_v20 = vpop.f32.mrb[24].mxu1 }
 0x1fc   : > { %2193 = vst [vmem:[%s3332_s30 + $0xa0] sm:$0xff] %v2161_v18  ;;  %v2162_v21 = vsel %vm2098_vm7, %v2066_v12, %v2130_v17  ;;  %vm2100_vm9 = vcmp.gt.f32.partialorder %v2068_v1, 0.0  ;;  %v2132_v22 = vmul.f32 0.01, %v2068_v1  ;;  %v1982_v23 = vpop.f32.mrb[24].mxu0  ;;  %v1141_v24 = vpop.f32.mrb[25].mxu1 }
 0x1fd   : > { %2194 = vst [vmem:[%s3332_s30 + $0xa8] sm:$0xff] %v2162_v21  ;;  %v2163_v26 = vsel %vm2099_vm8, %v2067_v15, %v2131_v19  ;;  %v2543_v27 = vadd.f32 %v1982_v23, %v1139_v20  ;;  %v1984_v29 = vpop.f32.mrb[25].mxu0  ;;  %v1143_v3 = vpop.f32.mrb[26].mxu1 }
 0x1fe   : > { %2195 = vst [vmem:[%s3332_s30 + $0xb0] sm:$0xff] %v2163_v26  ;;  %v2164_v30 = vsel %vm2100_vm9, %v2068_v1, %v2132_v22  ;;  %v2544_v32 = vadd.f32 %v1984_v29, %v1141_v24  ;;  %v1986_v8 = vpop.f32.mrb[26].mxu0  ;;  %v1145_v33 = vpop.f32.mrb[27].mxu1 }
 0x1ff   : > { %2196 = vst [vmem:[%s3332_s30 + $0xb8] sm:$0xff] %v2164_v30  ;;  %v2069_v34 = vadd.f32 %v2543_v27, %v3323_v14  ;;  %v2545_v36 = vadd.f32 %v1986_v8, %v1143_v3  ;;  %v1988_v9 = vpop.f32.mrb[27].mxu0 }
 0x200   : > { %v2070_v37 = vadd.f32 %v2544_v32, %v3325_v16  ;;  %v2546_v10 = vadd.f32 %v1988_v9, %v1145_v33 }
 0x201   : > { %vm2101_vm10 = vcmp.gt.f32.partialorder %v2069_v34, 0.0  ;;  %v2133_v38 = vmul.f32 0.01, %v2069_v34  ;;  %v2071_v39 = vadd.f32 %v2545_v36, %v3323_v14 }
 0x202   : > { %vm2102_vm11 = vcmp.gt.f32.partialorder %v2070_v37, 0.0  ;;  %v2134_v40 = vmul.f32 0.01, %v2070_v37  ;;  %v2072_v41 = vadd.f32 %v2546_v10, %v3325_v16 }
 0x203   : > { %v2165_v44 = vsel %vm2101_vm10, %v2069_v34, %v2133_v38  ;;  %vm2103_vm12 = vcmp.gt.f32.partialorder %v2071_v39, 0.0  ;;  %v2135_v45 = vmul.f32 0.01, %v2071_v39  ;;  %v1149_v46 = vpop.f32.mrb[28].mxu1 }
 0x204   : > { %2197 = vst [vmem:[%s3332_s30 + $0xc0] sm:$0xff] %v2165_v44  ;;  %v2166_v47 = vsel %vm2102_vm11, %v2070_v37, %v2134_v40  ;;  %vm2104_vm13 = vcmp.gt.f32.partialorder %v2072_v41, 0.0  ;;  %v2136_v50 = vmul.f32 0.01, %v2072_v41  ;;  %v1992_v51 = vpop.f32.mrb[28].mxu0  ;;  %v1151_v5 = vpop.f32.mrb[29].mxu1 }
 0x205   : > { %2198 = vst [vmem:[%s3332_s30 + $0xc8] sm:$0xff] %v2166_v47  ;;  %v2167_v35 = vsel %vm2103_vm12, %v2071_v39, %v2135_v45  ;;  %v2547_v52 = vadd.f32 %v1992_v51, %v1149_v46  ;;  %v1994_v53 = vpop.f32.mrb[29].mxu0  ;;  %v1153_v25 = vpop.f32.mrb[30].mxu1 }
 0x206   : > { %2199 = vst [vmem:[%s3332_s30 + $0xd0] sm:$0xff] %v2167_v35  ;;  %v2168_v6 = vsel %vm2104_vm13, %v2072_v41, %v2136_v50  ;;  %v2548_v28 = vadd.f32 %v1994_v53, %v1151_v5  ;;  %v1996_v31 = vpop.f32.mrb[30].mxu0  ;;  %v1155_v56 = vpop.f32.mrb[31].mxu1 }
 0x207   : > { %2200 = vst [vmem:[%s3332_s30 + $0xd8] sm:$0xff] %v2168_v6  ;;  %v2073_v57 = vadd.f32 %v2547_v52, %v3323_v14  ;;  %v2549_v42 = vadd.f32 %v1996_v31, %v1153_v25  ;;  %v1998_v43 = vpop.f32.mrb[31].mxu0 }
 0x208   : > { %v2074_v48 = vadd.f32 %v2548_v28, %v3325_v16  ;;  %v2550_v49 = vadd.f32 %v1998_v43, %v1155_v56 }
 0x209   : > { %vm2105_vm14 = vcmp.gt.f32.partialorder %v2073_v57, 0.0  ;;  %v2137_v55 = vmul.f32 0.01, %v2073_v57  ;;  %v2075_v58 = vadd.f32 %v2549_v42, %v3323_v14 }
 0x20a   : > { %vm2106_vm15 = vcmp.gt.f32.partialorder %v2074_v48, 0.0  ;;  %v2138_v59 = vmul.f32 0.01, %v2074_v48  ;;  %v2076_v54 = vadd.f32 %v2550_v49, %v3325_v16 }
 0x20b   : > { %v2169_v60 = vsel %vm2105_vm14, %v2073_v57, %v2137_v55  ;;  %vm2107_vm0 = vcmp.gt.f32.partialorder %v2075_v58, 0.0  ;;  %v2139_v61 = vmul.f32 0.01, %v2075_v58 }
 0x20c   : > { %2201 = vst [vmem:[%s3332_s30 + $0xe0] sm:$0xff] %v2169_v60  ;;  %v2170_v62 = vsel %vm2106_vm15, %v2074_v48, %v2138_v59  ;;  %vm2108_vm1 = vcmp.gt.f32.partialorder %v2076_v54, 0.0  ;;  %v2140_v2 = vmul.f32 0.01, %v2076_v54 }
 0x20d   : > { %2202 = vst [vmem:[%s3332_s30 + $0xe8] sm:$0xff] %v2170_v62  ;;  %v2171_v63 = vsel %vm2107_vm0, %v2075_v58, %v2139_v61 }
 0x20e   : > { %2203 = vst [vmem:[%s3332_s30 + $0xf0] sm:$0xff] %v2171_v63  ;;  %v2172_v7 = vsel %vm2108_vm1, %v2076_v54, %v2140_v2 }
 0x20f   : > { %2204 = vst [vmem:[%s3332_s30 + $0xf8] sm:$0xff] %v2172_v7 }
 0x210 PF: > { %s13_s16 = sadd.s32 1, %s2855_s16   ;;  %s3423_s12 = smov %s2847_s14 }
 0x211   : > { %p10_p7 = scmp.ge.s32.totalorder %s13_s16, 6   ;;  %s3424_s13 = smov %s2851_s15 }
 0x212   : > { %s3425_s14 = smov %s3428_s17  ;;  %s3426_s15 = smov %s3432_s18 }
 0x213   :  { %12 = sbr.rel (!%p10_p7) target bundleno = 3 (0x3), region = 73 }

// kernel: encoder_forward.5
= control target key start
LH: loop header
LB: loop body
LE: loop exit
PB: predicated region body
PF: predicated region fallthrough
CT: control target
= control target key end

     0   :  { %8 = vsyncpa [#allocation3], 0  ;;  %s3923_s0 = inlined_call_operand.vmem [shape: f32[2,18,18,128], index: 0, kind: input, shape index: {}]   ;;  %s3924_s1 = inlined_call_operand.vmem [shape: bf16[3,3,128,128], index: 1, kind: input, shape index: {}]   ;;  %s3925_s2 = inlined_call_operand.vmem [shape: f32[1,128], index: 2, kind: input, shape index: {}]   ;;  %s3926_s3 = inlined_call_operand.hbm [shape: f32[2,16,16,128], index: 3, kind: output, shape index: {}]  }
   0x1   :  { %10 = vsyncpa [#allocation3 + $0x1], 0  ;;  %s3328_s12 = smov 0   ;;  %s3330_s13 = smov 0  }
   0x2   :  { %s3332_s14 = smov 0   ;;  %s3334_s15 = smov 0  }
   0x3   :  { %s3336_s16 = smov 0   ;;  %s3338_s17 = smov 0  }
   0x4   :  { %s3340_s18 = smov 0   ;;  %s3342_s19 = smov 0  }
   0x5 LB: > { %s2169_s20 = sadd.s32 4294967295, %s3303_s19   ;;  %s2170_s21 = sadd.s32 4294967294, %s3303_s19   ;;  %s3303_s19 = sphi %s3342_s19, %s16_s19   ;;  %s3299_s18 = sphi %s3340_s18, %s3935_s18   ;;  %s3295_s17 = sphi %s3338_s17, %s3934_s17   ;;  %s3291_s16 = sphi %s3336_s16, %s3933_s16   ;;  %s3287_s15 = sphi %s3334_s15, %s3932_s15   ;;  %s3283_s14 = sphi %s3332_s14, %s3931_s14   ;;  %s3279_s13 = sphi %s3330_s13, %s3930_s13   ;;  %s3275_s12 = sphi %s3328_s12, %s3929_s12  }
   0x6   : > { %s25_s22 = sadd.s32 1, %s3295_s17  ;;  %s28_s23 = sadd.s32 1, %s3299_s18 }
   0x7   : > { %p26_p0 = scmp.ge.s32.totalorder %s25_s22, 2  ;;  %p115_p1 = scmp.ne.s32.totalorder %s3283_s14, %s3279_s13 }
   0x8   : > { %p116_p2 = scmp.eq.s32.totalorder %s2169_s20, 3  ;;  %p121_p5 = scmp.ne.s32.totalorder %s3279_s13, %s3275_s12 }
   0x9   : > { %s3937_s22 = smov (%p26_p0, %s25_s22), 0  ;;  %s3939_s23 = smov (!%p26_p0, %s28_s23), %s3299_s18 }
   0xa   : > { %s101_s24 = ssub.s32 %s3295_s17, %s3937_s22  ;;  %p3379_p3 = por %p116_p2, %p115_p1 }
   0xb   : > { %p30_p4 = scmp.ge.s32.totalorder %s3939_s23, 2  ;;  %p122_p6 = scmp.eq.s32.totalorder %s2170_s21, 3 }
   0xc   : > { %p2173_p7 = scmp.ge.s32.totalorder %s3303_s19, 1  ;;  %p154_p9 = scmp.lt.s32.totalorder %s3303_s19, 5 }
   0xd   : > { %s3941_s23 = smov (%p30_p4, %s3939_s23), 0  ;;  %p3388_p8 = por %p122_p6, %p121_p5 }
   0xe   : > { %s100_s27 = ssub.s32 %s3299_s18, %s3941_s23  ;;  %s105_s28 = sadd.s32 1, %s3283_s14 }
   0xf   : > { %s102_s29 = sor.u32 %s101_s24, %s100_s27  ;;  %p155_p10 = pnand %p2173_p7, %p154_p9 }
  0x10   : > { %p103_p11 = scmp.eq.s32.totalorder %s102_s29, 0  ;;  %v3137_v0 = vld [vmem:[%s3924_s1 + $0x40] sm:$0xff] (!%p155_p10)   ;;  %p178_p12 = scmp.lt.s32.totalorder (!%p155_p10), %s3291_s16, 1  ;;  %v3139_v2 = vld [vmem:[%s3924_s1 + $0x48] sm:$0xff] (!%p155_p10)   ;;  %v3141_v4 = vld [vmem:[%s3924_s1 + $0x50] sm:$0xff] (!%p155_p10)  }
  0x11   : > { %158 = sbr.rel (%p155_p10) target bundleno = 429 (0x1ad), region = 32  ;;  %v3138_v1 = vld [vmem:[%s3924_s1 + $0x100] sm:$0xff] (!%p155_p10)   ;;  %2631 = vmatprep.subr.bf16.mxu1 (!%p155_p10), %v3137_v0  ;;  %v3140_v3 = vld [vmem:[%s3924_s1 + $0x108] sm:$0xff] (!%p155_p10)   ;;  %v3142_v5 = vld [vmem:[%s3924_s1 + $0x110] sm:$0xff] (!%p155_p10)   ;;  %s2486_s24 = sshll.u32 (!%p155_p10), %s3287_s15, 4 }
  0x12   : > { %s3397_s30 = scalar_select %p103_p11, %s3283_s14, %s105_s28  }
  0x13   : > { %2759 = vmatprep.subr.bf16.mxu0 (!%p155_p10), %v3138_v1  ;;  %2632 = vmatpush3.bf16.msra.mxu1 (!%p155_p10), %v3137_v0  ;;  %v3143_v6 = vld [vmem:[%s3924_s1 + $0x58] sm:$0xff] (!%p155_p10)   ;;  %s2177_s8 = smul.u32 (!%p155_p10), 192, %s3287_s15  ;;  %v3145_v8 = vld [vmem:[%s3924_s1 + $0x60] sm:$0xff] (!%p155_p10)   ;;  %v3147_v10 = vld [vmem:[%s3924_s1 + $0x68] sm:$0xff] (!%p155_p10)   ;;  %s2482_s27 = sshll.u32 (!%p155_p10), %s3291_s16, 5 }
  0x14   : > { %2760 = vmatpush3.bf16.msra.mxu0 (!%p155_p10), %v3138_v1  ;;  %2633 = vmatprep.subr.bf16.mxu1 (!%p155_p10), %v3139_v2  ;;  %v3144_v7 = vld [vmem:[%s3924_s1 + $0x118] sm:$0xff] (!%p155_p10)   ;;  %v3146_v9 = vld [vmem:[%s3924_s1 + $0x120] sm:$0xff] (!%p155_p10)   ;;  %v3148_v11 = vld [vmem:[%s3924_s1 + $0x128] sm:$0xff] (!%p155_p10)   ;;  %s2080_s15 = sadd.s32 (!%p155_p10), %s2486_s24, %s2482_s27  ;;  %s3305_s9 = smov (!%p155_p10), [#allocation2]  }
  0x15   : > { %2761 = vmatprep.subr.bf16.mxu0 (!%p155_p10), %v3140_v3  ;;  %v3149_v18 = vld [vmem:[%s3924_s1 + $0x70] sm:$0xff] (!%p155_p10)   ;;  %v3151_v20 = vld [vmem:[%s3924_s1 + $0x78] sm:$0xff] (!%p155_p10)   ;;  %v3153_v22 = vld [vmem:[%s3924_s1] sm:$0xff] (!%p155_p10)   ;;  %s3213_s11 = sshll.u32 (!%p155_p10), %s3305_s9, 4  ;;  %s3214_s11 = int_to_ptr.vmem [resolvable:$false] %s3213_s11 }
  0x16   : > { %v3150_v19 = vld [vmem:[%s3924_s1 + $0x130] sm:$0xff] (!%p155_p10)   ;;  %v3152_v21 = vld [vmem:[%s3924_s1 + $0x138] sm:$0xff] (!%p155_p10)   ;;  %v3154_v25 = vld [vmem:[%s3924_s1 + $0x140] sm:$0xff] (!%p155_p10)  }
  0x17   : > { %2634 = vmatpush3.bf16.msra.mxu1 (!%p155_p10), %v3139_v2  ;;  %v3155_v29 = vld [vmem:[%s3924_s1 + $0x8] sm:$0xff] (!%p155_p10)   ;;  %v3157_v32 = vld [vmem:[%s3924_s1 + $0x10] sm:$0xff] (!%p155_p10)   ;;  %v3159_v39 = vld [vmem:[%s3924_s1 + $0x18] sm:$0xff] (!%p155_p10)  }
  0x18   : > { %s179_s10 = scalar_select %p178_p12, %s3291_s16, 1  ;;  %2762 = vmatpush3.bf16.msra.mxu0 %v3140_v3  ;;  %2635 = vmatprep.subr.bf16.mxu1 %v3141_v4  ;;  %v3156_v30 = vld [vmem:[%s3924_s1 + $0x148] sm:$0xff]   ;;  %v3158_v35 = vld [vmem:[%s3924_s1 + $0x150] sm:$0xff]   ;;  %v3160_v40 = vld [vmem:[%s3924_s1 + $0x158] sm:$0xff]  }
  0x19   : > { %2763 = vmatprep.subr.bf16.mxu0 %v3142_v5  ;;  %v3161_v42 = vld [vmem:[%s3924_s1 + $0x20] sm:$0xff]   ;;  %v3163_v49 = vld [vmem:[%s3924_s1 + $0x28] sm:$0xff]   ;;  %v3165_v52 = vld [vmem:[%s3924_s1 + $0x30] sm:$0xff]   ;;  %s2483_s16 = sshll.u32 %s2080_s15, 7 }
  0x1a   : > { %s3063_s29 = smul.u32 432, %s179_s10  ;;  %v3162_v45 = vld [vmem:[%s3924_s1 + $0x160] sm:$0xff]   ;;  %v3164_v50 = vld [vmem:[%s3924_s1 + $0x168] sm:$0xff]   ;;  %v3166_v55 = vld [vmem:[%s3924_s1 + $0x170] sm:$0xff]   ;;  %s3861_s6 = scalar_lea.hbm %s3926_s3, %s2483_s16 }
  0x1b   : > { %2636 = vmatpush3.bf16.msra.mxu1 %v3141_v4  ;;  %v3167_v61 = vld [vmem:[%s3924_s1 + $0x38] sm:$0xff]   ;;  %v3169_v3 = vld [vmem:[%s3924_s1 + $0x80] sm:$0xff]  }
  0x1c   : > { %s182_s20 = scalar_lea.vmem %s3923_s0, %s3063_s29  ;;  %2764 = vmatpush3.bf16.msra.mxu0 %v3142_v5  ;;  %2637 = vmatprep.subr.bf16.mxu1 %v3143_v6  ;;  %v3168_v62 = vld [vmem:[%s3924_s1 + $0x178] sm:$0xff]  }
  0x1d   : > { %2765 = vmatprep.subr.bf16.mxu0 %v3144_v7  ;;  %s3435_s28 = scalar_lea.vmem %s182_s20, %s2177_s8  ;;  %s3215_s20 = scalar_lea.vmem %s3214_s11, 4096 }
  0x1e   : > { %v228_v12 = vld [vmem:[%s3435_s28 + $0x1] sm:$0xff]  ;;  %v229_v13 = vld [vmem:[%s3435_s28 + $0x9] sm:$0xff]  ;;  %v2276_v14 = vld [vmem:[%s3435_s28 + $0x19] sm:$0xff] }
  0x1f   : > { %2638 = vmatpush3.bf16.msra.mxu1 %v3143_v6  ;;  %v244_v15 = vpack.c.bf16 %v229_v13, %v228_v12  ;;  %v2277_v16 = vld [vmem:[%s3435_s28 + $0x21] sm:$0xff]  ;;  %v2278_v23 = vld [vmem:[%s3435_s28 + $0x31] sm:$0xff]  ;;  %v2279_v24 = vld [vmem:[%s3435_s28 + $0x39] sm:$0xff] }
  0x20   : > { %2766 = vmatpush3.bf16.msra.mxu0 %v3144_v7  ;;  %2639 = vmatprep.subr.bf16.mxu1 %v3145_v8  ;;  %v982_v17 = vpack.c.bf16 %v2277_v16, %v2276_v14  ;;  %v2280_v26 = vld [vmem:[%s3435_s28 + $0x49] sm:$0xff]  ;;  %v3468_v27 = vpack.c.bf16 %v2279_v24, %v2278_v23  ;;  %v2281_v28 = vld [vmem:[%s3435_s28 + $0x51] sm:$0xff]  ;;  %v2282_v33 = vld [vmem:[%s3435_s28 + $0x61] sm:$0xff] }
  0x21   : > { %2767 = vmatprep.subr.bf16.mxu0 %v3146_v9  ;;  %2647 = vmatprep.mubr.bf16.mxu1 %v244_v15  ;;  %v3477_v31 = vpack.c.bf16 %v2281_v28, %v2280_v26  ;;  %v2283_v34 = vld [vmem:[%s3435_s28 + $0x69] sm:$0xff]  ;;  %v2284_v37 = vld [vmem:[%s3435_s28 + $0x79] sm:$0xff]  ;;  %v2285_v38 = vld [vmem:[%s3435_s28 + $0x81] sm:$0xff] }
  0x22   : > { %2775 = vmatprep.mubr.bf16.mxu0 %v982_v17  ;;  %v3490_v36 = vpack.c.bf16 %v2283_v34, %v2282_v33  ;;  %v3501_v41 = vpack.c.bf16 %v2285_v38, %v2284_v37  ;;  %v2286_v43 = vld [vmem:[%s3435_s28 + $0x91] sm:$0xff]  ;;  %v2287_v44 = vld [vmem:[%s3435_s28 + $0x99] sm:$0xff]  ;;  %v2288_v47 = vld [vmem:[%s3435_s28 + $0xa9] sm:$0xff] }
  0x23   : > { %2640 = vmatpush3.bf16.msra.mxu1 %v3145_v8  ;;  %v3514_v46 = vpack.c.bf16 %v2287_v44, %v2286_v43  ;;  %v2289_v48 = vld [vmem:[%s3435_s28 + $0xb1] sm:$0xff]  ;;  %v2290_v53 = vld [vmem:[%s3435_s28 + $0xc1] sm:$0xff]  ;;  %v2291_v54 = vld [vmem:[%s3435_s28 + $0xc9] sm:$0xff] }
  0x24   : > { %2768 = vmatpush3.bf16.msra.mxu0 %v3146_v9  ;;  %2641 = vmatprep.subr.bf16.mxu1 %v3147_v10  ;;  %v3525_v51 = vpack.c.bf16 %v2289_v48, %v2288_v47  ;;  %v188_v56 = vld [vmem:[%s3435_s28] sm:$0xff]  ;;  %v189_v57 = vld [vmem:[%s3435_s28 + $0x8] sm:$0xff]  ;;  %v3541_v59 = vpack.c.bf16 %v2291_v54, %v2290_v53  ;;  %v190_v1 = vld [vmem:[%s3435_s28 + $0x18] sm:$0xff] }
  0x25   : > { %2769 = vmatprep.subr.bf16.mxu0 %v3148_v11  ;;  %v2316_v58 = vld [vmem:[%s3435_s28 + $0x1a] sm:$0xff]  ;;  %v2317_v60 = vld [vmem:[%s3435_s28 + $0x22] sm:$0xff]  ;;  %v204_v63 = vpack.c.bf16 %v189_v57, %v188_v56  ;;  %v2318_v4 = vld [vmem:[%s3435_s28 + $0x32] sm:$0xff] }
  0x26   : > { %v3551_v0 = vpack.c.bf16 %v2317_v60, %v2316_v58  ;;  %v191_v2 = vld [vmem:[%s3435_s28 + $0x20] sm:$0xff]  ;;  %v192_v7 = vld [vmem:[%s3435_s28 + $0x30] sm:$0xff]  ;;  %v193_v8 = vld [vmem:[%s3435_s28 + $0x38] sm:$0xff] }
  0x27   : > { %2642 = vmatpush3.bf16.msra.mxu1 %v3147_v10  ;;  %v2319_v5 = vld [vmem:[%s3435_s28 + $0x3a] sm:$0xff]  ;;  %v3567_v9 = vpack.c.bf16 %v191_v2, %v190_v1  ;;  %v2320_v10 = vld [vmem:[%s3435_s28 + $0x4a] sm:$0xff]  ;;  %v2321_v12 = vld [vmem:[%s3435_s28 + $0x52] sm:$0xff]  ;;  %v3579_v15 = vpack.c.bf16 %v193_v8, %v192_v7 }
  0x28   : > { %2770 = vmatpush3.bf16.msra.mxu0 %v3148_v11  ;;  %2643 = vmatprep.subr.bf16.mxu1 %v3149_v18  ;;  %v3170_v6 = vld [vmem:[%s3924_s1 + $0x180] sm:$0xff]   ;;  %v3570_v11 = vpack.c.bf16 %v2319_v5, %v2318_v4  ;;  %v3171_v13 = vld [vmem:[%s3924_s1 + $0x88] sm:$0xff]   ;;  %v3175_v26 = vld [vmem:[%s3924_s1 + $0x98] sm:$0xff]  }
  0x29   : > { %2771 = vmatprep.subr.bf16.mxu0 %v3150_v19  ;;  %v3172_v14 = vld [vmem:[%s3924_s1 + $0x188] sm:$0xff]   ;;  %v196_v23 = vld [vmem:[%s3435_s28 + $0x60] sm:$0xff]  ;;  %v198_v34 = vld [vmem:[%s3435_s28 + $0x78] sm:$0xff] }
  0x2a   : > { %v194_v16 = vld [vmem:[%s3435_s28 + $0x48] sm:$0xff]  ;;  %v2324_v28 = vld [vmem:[%s3435_s28 + $0x7a] sm:$0xff]  ;;  %v200_v43 = vld [vmem:[%s3435_s28 + $0x90] sm:$0xff] }
  0x2b   : > { %2644 = vmatpush3.bf16.msra.mxu1 %v3149_v18  ;;  %v3584_v18 = vpack.c.bf16 %v2321_v12, %v2320_v10  ;;  %v197_v24 = vld [vmem:[%s3435_s28 + $0x68] sm:$0xff]  ;;  %v3177_v38 = vld [vmem:[%s3924_s1 + $0xa0] sm:$0xff]   ;;  %v201_v47 = vld [vmem:[%s3435_s28 + $0x98] sm:$0xff] }
  0x2c   : > { %2772 = vmatpush3.bf16.msra.mxu0 %v3150_v19  ;;  %2645 = vmatprep.subr.bf16.mxu1 %v3151_v20  ;;  %v3173_v19 = vld [vmem:[%s3924_s1 + $0x90] sm:$0xff]   ;;  %v3611_v33 = vpack.c.bf16 %v197_v24, %v196_v23  ;;  %v3643_v53 = vpack.c.bf16 %v201_v47, %v200_v43  ;;  %v202_v54 = vld [vmem:[%s3435_s28 + $0xa8] sm:$0xff]  ;;  %v3184_v4 = vld [vmem:[%s3924_s1 + $0x1b8] sm:$0xff]  }
  0x2d   : > { %2773 = vmatprep.subr.bf16.mxu0 %v3152_v21  ;;  %v3181_v57 = vld [vmem:[%s3924_s1 + $0xb0] sm:$0xff]   ;;  %v2330_v58 = vld [vmem:[%s3435_s28 + $0xc2] sm:$0xff] }
  0x2e   : > { %v2331_v60 = vld [vmem:[%s3435_s28 + $0xca] sm:$0xff]  ;;  %v3186_v7 = vld [vmem:[%s3924_s1 + $0x1c0] sm:$0xff]  }
  0x2f   : > { %2646 = vmatpush3.bf16.msra.mxu1 %v3151_v20  ;;  %v2322_v20 = vld [vmem:[%s3435_s28 + $0x62] sm:$0xff]  ;;  %v560_v1 = vld [vmem:[%s3435_s28 + $0xa] sm:$0xff]  ;;  %v3665_v2 = vpack.c.bf16 %v2331_v60, %v2330_v58 }
  0x30   : > { %2774 = vmatpush3.bf16.msra.mxu0 %v3152_v21  ;;  %2663 = vmatprep.subr.bf16.mxu1 %v3153_v22  ;;  %v2323_v21 = vld [vmem:[%s3435_s28 + $0x6a] sm:$0xff] }
  0x31   : > { %2791 = vmatprep.subr.bf16.mxu0 %v3154_v25  ;;  %v3187_v8 = vld [vmem:[%s3924_s1 + $0xc8] sm:$0xff]   ;;  %v3189_v12 = vld [vmem:[%s3924_s1 + $0xd0] sm:$0xff]  }
  0x32   : > { %2648 = vmatmul.mubr.bf16.vlgmr.msra.gmra.mrb[0].mxu1 %v982_v17  ;;  %v195_v17 = vld [vmem:[%s3435_s28 + $0x50] sm:$0xff]  ;;  %v3188_v10 = vld [vmem:[%s3924_s1 + $0x1c8] sm:$0xff]  }
  0x33   : > { %2776 = vmatmul.mubr.bf16.vlgmr.msra.gmra.mrb[0].mxu0 %v3468_v27  ;;  %2664 = vmatpush3.bf16.msra.mxu1 %v3153_v22  ;;  %v3174_v22 = vld [vmem:[%s3924_s1 + $0x190] sm:$0xff]  }
  0x34   : > { %2792 = vmatpush3.bf16.msra.mxu0 %v3154_v25  ;;  %2665 = vmatprep.subr.bf16.mxu1 %v3155_v29  ;;  %v3599_v25 = vpack.c.bf16 %v195_v17, %v194_v16  ;;  %v3193_v16 = vld [vmem:[%s3924_s1 + $0xe0] sm:$0xff]   ;;  %v3197_v24 = vld [vmem:[%s3924_s1 + $0xf0] sm:$0xff]  }
  0x35   : > { %2793 = vmatprep.subr.bf16.mxu0 %v3156_v30  ;;  %2651 = vmatprep.mubr.bf16.mxu1 %v3468_v27  ;;  %v3194_v17 = vld [vmem:[%s3924_s1 + $0x1e0] sm:$0xff]  }
  0x36   : > { %2779 = vmatprep.mubr.bf16.mxu0 %v3477_v31 }
  0x37   : > { %2666 = vmatpush3.bf16.msra.mxu1 %v3155_v29  ;;  %v3605_v29 = vpack.c.bf16 %v2323_v21, %v2322_v20  ;;  %v2371_v20 = vld [vmem:[%s3435_s28 + $0xc8] sm:$0xff] }
  0x38   : > { %2794 = vmatpush3.bf16.msra.mxu0 %v3156_v30  ;;  %2667 = vmatprep.subr.bf16.mxu1 %v3157_v32  ;;  %v2325_v30 = vld [vmem:[%s3435_s28 + $0x82] sm:$0xff] }
  0x39   : > { %2795 = vmatprep.subr.bf16.mxu0 %v3158_v35  ;;  %v3616_v37 = vpack.c.bf16 %v2325_v30, %v2324_v28  ;;  %v3195_v21 = vld [vmem:[%s3924_s1 + $0xe8] sm:$0xff]   ;;  %v2373_v28 = vld [vmem:[%s3435_s28 + $0xe0] sm:$0xff]  ;;  %v3198_v30 = vld [vmem:[%s3924_s1 + $0x1f0] sm:$0xff]  }
  0x3a   : > { %2652 = vmatmul.mubr.bf16.gmra.mrb[4].mxu1 %v3477_v31 }
  0x3b   : > { %2780 = vmatmul.mubr.bf16.gmra.mrb[4].mxu0 %v3490_v36  ;;  %2668 = vmatpush3.bf16.msra.mxu1 %v3157_v32  ;;  %v3176_v32 = vld [vmem:[%s3924_s1 + $0x198] sm:$0xff]  }
  0x3c   : > { %2796 = vmatpush3.bf16.msra.mxu0 %v3158_v35  ;;  %2669 = vmatprep.subr.bf16.mxu1 %v3159_v39  ;;  %v199_v35 = vld [vmem:[%s3435_s28 + $0x80] sm:$0xff] }
  0x3d   : > { %2797 = vmatprep.subr.bf16.mxu0 %v3160_v40  ;;  %2655 = vmatprep.mubr.bf16.mxu1 %v3490_v36  ;;  %v3630_v44 = vpack.c.bf16 %v199_v35, %v198_v34  ;;  %v3199_v34 = vld [vmem:[%s3924_s1 + $0xf8] sm:$0xff]  }
  0x3e   : > { %2783 = vmatprep.mubr.bf16.mxu0 %v3501_v41  ;;  %v3200_v35 = vld [vmem:[%s3924_s1 + $0x1f8] sm:$0xff]  }
  0x3f   : > { %2670 = vmatpush3.bf16.msra.mxu1 %v3159_v39  ;;  %v2326_v39 = vld [vmem:[%s3435_s28 + $0x92] sm:$0xff] }
  0x40   : > { %2798 = vmatpush3.bf16.msra.mxu0 %v3160_v40  ;;  %2671 = vmatprep.subr.bf16.mxu1 %v3161_v42  ;;  %v2327_v40 = vld [vmem:[%s3435_s28 + $0x9a] sm:$0xff] }
  0x41   : > { %2799 = vmatprep.subr.bf16.mxu0 %v3162_v45  ;;  %v3636_v48 = vpack.c.bf16 %v2327_v40, %v2326_v39  ;;  %v3202_v39 = vld [vmem:[%s3924_s1 + $0x208] sm:$0xff]  }
  0x42   : > { %2656 = vmatmul.mubr.bf16.gmra.mrb[8].mxu1 %v3501_v41 }
  0x43   : > { %2784 = vmatmul.mubr.bf16.gmra.mrb[8].mxu0 %v3514_v46  ;;  %2672 = vmatpush3.bf16.msra.mxu1 %v3161_v42  ;;  %v3178_v42 = vld [vmem:[%s3924_s1 + $0x1a0] sm:$0xff]  }
  0x44   : > { %2800 = vmatpush3.bf16.msra.mxu0 %v3162_v45  ;;  %2673 = vmatprep.subr.bf16.mxu1 %v3163_v49  ;;  %v3179_v45 = vld [vmem:[%s3924_s1 + $0xa8] sm:$0xff]  }
  0x45   : > { %2801 = vmatprep.subr.bf16.mxu0 %v3164_v50  ;;  %2659 = vmatprep.mubr.bf16.mxu1 %v3514_v46 }
  0x46   : > { %2787 = vmatprep.mubr.bf16.mxu0 %v3525_v51 }
  0x47   : > { %2674 = vmatpush3.bf16.msra.mxu1 %v3163_v49  ;;  %v2328_v49 = vld [vmem:[%s3435_s28 + $0xaa] sm:$0xff] }
  0x48   : > { %2802 = vmatpush3.bf16.msra.mxu0 %v3164_v50  ;;  %2675 = vmatprep.subr.bf16.mxu1 %v3165_v52  ;;  %v2329_v50 = vld [vmem:[%s3435_s28 + $0xb2] sm:$0xff] }
  0x49   : > { %2803 = vmatprep.subr.bf16.mxu0 %v3166_v55  ;;  %v3648_v56 = vpack.c.bf16 %v2329_v50, %v2328_v49 }
  0x4a   : > { %2660 = vmatmul.mubr.bf16.gmra.mrb[12].mxu1 %v3525_v51 }
  0x4b   : > { %2788 = vmatmul.mubr.bf16.gmra.mrb[12].mxu0 %v3541_v59  ;;  %2676 = vmatpush3.bf16.msra.mxu1 %v3165_v52  ;;  %v3180_v52 = vld [vmem:[%s3924_s1 + $0x1a8] sm:$0xff]  }
  0x4c   : > { %2804 = vmatpush3.bf16.msra.mxu0 %v3166_v55  ;;  %2677 = vmatprep.subr.bf16.mxu1 %v3167_v61  ;;  %v203_v55 = vld [vmem:[%s3435_s28 + $0xb0] sm:$0xff] }
  0x4d   : > { %2805 = vmatprep.subr.bf16.mxu0 %v3168_v62  ;;  %2679 = vmatprep.mubr.bf16.mxu1 %v204_v63  ;;  %v3662_v63 = vpack.c.bf16 %v203_v55, %v202_v54 }
  0x4e   : > { %2807 = vmatprep.mubr.bf16.mxu0 %v3551_v0 }
  0x4f   : > { %2678 = vmatpush3.bf16.msra.mxu1 %v3167_v61  ;;  %v3182_v61 = vld [vmem:[%s3924_s1 + $0x1b0] sm:$0xff]  }
  0x50   : > { %2806 = vmatpush3.bf16.msra.mxu0 %v3168_v62  ;;  %2695 = vmatprep.subr.bf16.mxu1 %v3169_v3  ;;  %v559_v62 = vld [vmem:[%s3435_s28 + $0x2] sm:$0xff] }
  0x51   : > { %2823 = vmatprep.subr.bf16.mxu0 %v3170_v6  ;;  %v575_v5 = vpack.c.bf16 %v560_v1, %v559_v62 }
  0x52   : > { %2680 = vmatmul.mubr.bf16.vlgmr.msra.gmra.mrb[0].mxu1 %v3567_v9 }
  0x53   : > { %2808 = vmatmul.mubr.bf16.vlgmr.msra.gmra.mrb[0].mxu0 %v3570_v11  ;;  %2696 = vmatpush3.bf16.msra.mxu1 %v3169_v3  ;;  %v3183_v3 = vld [vmem:[%s3924_s1 + $0xb8] sm:$0xff]  }
  0x54   : > { %2824 = vmatpush3.bf16.msra.mxu0 %v3170_v6  ;;  %2697 = vmatprep.subr.bf16.mxu1 %v3171_v13  ;;  %v3185_v6 = vld [vmem:[%s3924_s1 + $0xc0] sm:$0xff]  }
  0x55   : > { %2825 = vmatprep.subr.bf16.mxu0 %v3172_v14  ;;  %2683 = vmatprep.mubr.bf16.mxu1 %v3579_v15 }
  0x56   : > { %2811 = vmatprep.mubr.bf16.mxu0 %v3584_v18 }
  0x57   : > { %2698 = vmatpush3.bf16.msra.mxu1 %v3171_v13  ;;  %v3190_v13 = vld [vmem:[%s3924_s1 + $0x1d0] sm:$0xff]  }
  0x58   : > { %2826 = vmatpush3.bf16.msra.mxu0 %v3172_v14  ;;  %2699 = vmatprep.subr.bf16.mxu1 %v3173_v19  ;;  %v3192_v14 = vld [vmem:[%s3924_s1 + $0x1d8] sm:$0xff]  }
  0x59   : > { %2827 = vmatprep.subr.bf16.mxu0 %v3174_v22 }
  0x5a   : > { %2684 = vmatmul.mubr.bf16.gmra.mrb[4].mxu1 %v3599_v25 }
  0x5b   : > { %2812 = vmatmul.mubr.bf16.gmra.mrb[4].mxu0 %v3605_v29  ;;  %2700 = vmatpush3.bf16.msra.mxu1 %v3173_v19  ;;  %v2370_v19 = vld [vmem:[%s3435_s28 + $0xc0] sm:$0xff] }
  0x5c   : > { %2828 = vmatpush3.bf16.msra.mxu0 %v3174_v22  ;;  %2701 = vmatprep.subr.bf16.mxu1 %v3175_v26  ;;  %v3196_v22 = vld [vmem:[%s3924_s1 + $0x1e8] sm:$0xff]   ;;  %v3723_v23 = vpack.c.bf16 %v2371_v20, %v2370_v19 }
  0x5d   : > { %2829 = vmatprep.subr.bf16.mxu0 %v3176_v32  ;;  %2687 = vmatprep.mubr.bf16.mxu1 %v3611_v33 }
  0x5e   : > { %2815 = vmatprep.mubr.bf16.mxu0 %v3616_v37 }
  0x5f   : > { %2702 = vmatpush3.bf16.msra.mxu1 %v3175_v26  ;;  %v2372_v26 = vld [vmem:[%s3435_s28 + $0xd8] sm:$0xff] }
  0x60   : > { %2830 = vmatpush3.bf16.msra.mxu0 %v3176_v32  ;;  %2703 = vmatprep.subr.bf16.mxu1 %v3177_v38  ;;  %v1396_v32 = vpack.c.bf16 %v2373_v28, %v2372_v26 }
  0x61   : > { %2831 = vmatprep.subr.bf16.mxu0 %v3178_v42 }
  0x62   : > { %2688 = vmatmul.mubr.bf16.gmra.mrb[8].mxu1 %v3630_v44 }
  0x63   : > { %2816 = vmatmul.mubr.bf16.gmra.mrb[8].mxu0 %v3636_v48  ;;  %2704 = vmatpush3.bf16.msra.mxu1 %v3177_v38  ;;  %v3201_v38 = vld [vmem:[%s3924_s1 + $0x200] sm:$0xff]  }
  0x64   : > { %2832 = vmatpush3.bf16.msra.mxu0 %v3178_v42  ;;  %2705 = vmatprep.subr.bf16.mxu1 %v3179_v45 }
  0x65   : > { %2833 = vmatprep.subr.bf16.mxu0 %v3180_v52  ;;  %2691 = vmatprep.mubr.bf16.mxu1 %v3643_v53 }
  0x66   : > { %2819 = vmatprep.mubr.bf16.mxu0 %v3648_v56 }
  0x67   : > { %2706 = vmatpush3.bf16.msra.mxu1 %v3179_v45 }
  0x68   : > { %2834 = vmatpush3.bf16.msra.mxu0 %v3180_v52  ;;  %2707 = vmatprep.subr.bf16.mxu1 %v3181_v57 }
  0x69   : > { %2835 = vmatprep.subr.bf16.mxu0 %v3182_v61 }
  0x6a   : > { %2692 = vmatmul.mubr.bf16.gmra.mrb[12].mxu1 %v3662_v63 }
  0x6b   : > { %2820 = vmatmul.mubr.bf16.gmra.mrb[12].mxu0 %v3665_v2  ;;  %2708 = vmatpush3.bf16.msra.mxu1 %v3181_v57 }
  0x6c   : > { %2836 = vmatpush3.bf16.msra.mxu0 %v3182_v61  ;;  %2709 = vmatprep.subr.bf16.mxu1 %v3183_v3 }
  0x6d   : > { %2837 = vmatprep.subr.bf16.mxu0 %v3184_v4  ;;  %2711 = vmatprep.mubr.bf16.mxu1 %v575_v5 }
  0x6e   : > { %2839 = vmatprep.mubr.bf16.mxu0 %v3579_v15 }
  0x6f   : > { %2710 = vmatpush3.bf16.msra.mxu1 %v3183_v3 }
  0x70   : > { %2838 = vmatpush3.bf16.msra.mxu0 %v3184_v4  ;;  %2727 = vmatprep.subr.bf16.mxu1 %v3185_v6 }
  0x71   : > { %2855 = vmatprep.subr.bf16.mxu0 %v3186_v7 }
  0x72   : > { %2712 = vmatmul.mubr.bf16.vlgmr.msra.gmra.mrb[0].mxu1 %v3551_v0  ;;  %v3191_v0 = vld [vmem:[%s3924_s1 + $0xd8] sm:$0xff]  }
  0x73   : > { %2840 = vmatmul.mubr.bf16.vlgmr.msra.gmra.mrb[0].mxu0 %v3599_v25  ;;  %2728 = vmatpush3.bf16.msra.mxu1 %v3185_v6 }
  0x74   : > { %2856 = vmatpush3.bf16.msra.mxu0 %v3186_v7  ;;  %2729 = vmatprep.subr.bf16.mxu1 %v3187_v8 }
  0x75   : > { %2857 = vmatprep.subr.bf16.mxu0 %v3188_v10  ;;  %2715 = vmatprep.mubr.bf16.mxu1 %v3570_v11 }
  0x76   : > { %2843 = vmatprep.mubr.bf16.mxu0 %v3611_v33 }
  0x77   : > { %2730 = vmatpush3.bf16.msra.mxu1 %v3187_v8 }
  0x78   : > { %2858 = vmatpush3.bf16.msra.mxu0 %v3188_v10  ;;  %2731 = vmatprep.subr.bf16.mxu1 %v3189_v12 }
  0x79   : > { %2859 = vmatprep.subr.bf16.mxu0 %v3190_v13 }
  0x7a   : > { %2716 = vmatmul.mubr.bf16.gmra.mrb[4].mxu1 %v3584_v18 }
  0x7b   : > { %2844 = vmatmul.mubr.bf16.gmra.mrb[4].mxu0 %v3630_v44  ;;  %2732 = vmatpush3.bf16.msra.mxu1 %v3189_v12  ;;  %v3813_v12 = vld [vmem:[%s3925_s2] ss:$0 sm:$0xff] }
  0x7c   : > { %2860 = vmatpush3.bf16.msra.mxu0 %v3190_v13  ;;  %2733 = vmatprep.subr.bf16.mxu1 %v3191_v0 }
  0x7d   : > { %2861 = vmatprep.subr.bf16.mxu0 %v3192_v14  ;;  %2719 = vmatprep.mubr.bf16.mxu1 %v3605_v29 }
  0x7e   : > { %2847 = vmatprep.mubr.bf16.mxu0 %v3643_v53 }
  0x7f   : > { %2734 = vmatpush3.bf16.msra.mxu1 %v3191_v0 }
  0x80   : > { %2862 = vmatpush3.bf16.msra.mxu0 %v3192_v14  ;;  %2735 = vmatprep.subr.bf16.mxu1 %v3193_v16 }
  0x81   : > { %2863 = vmatprep.subr.bf16.mxu0 %v3194_v17 }
  0x82   : > { %2720 = vmatmul.mubr.bf16.gmra.mrb[8].mxu1 %v3616_v37 }
  0x83   : > { %2848 = vmatmul.mubr.bf16.gmra.mrb[8].mxu0 %v3662_v63  ;;  %2736 = vmatpush3.bf16.msra.mxu1 %v3193_v16 }
  0x84   : > { %2864 = vmatpush3.bf16.msra.mxu0 %v3194_v17  ;;  %2737 = vmatprep.subr.bf16.mxu1 %v3195_v21 }
  0x85   : > { %2865 = vmatprep.subr.bf16.mxu0 %v3196_v22  ;;  %2723 = vmatprep.mubr.bf16.mxu1 %v3636_v48 }
  0x86   : > { %2851 = vmatprep.mubr.bf16.mxu0 %v3723_v23 }
  0x87   : > { %2738 = vmatpush3.bf16.msra.mxu1 %v3195_v21 }
  0x88   : > { %2866 = vmatpush3.bf16.msra.mxu0 %v3196_v22  ;;  %2739 = vmatprep.subr.bf16.mxu1 %v3197_v24 }
  0x89   : > { %2867 = vmatprep.subr.bf16.mxu0 %v3198_v30 }
  0x8a   : > { %2724 = vmatmul.mubr.bf16.gmra.mrb[12].mxu1 %v3648_v56 }
  0x8b   : > { %2852 = vmatmul.mubr.bf16.gmra.mrb[12].mxu0 %v1396_v32  ;;  %2740 = vmatpush3.bf16.msra.mxu1 %v3197_v24 }
  0x8c   : > { %2868 = vmatpush3.bf16.msra.mxu0 %v3198_v30  ;;  %2741 = vmatprep.subr.bf16.mxu1 %v3199_v34 }
  0x8d   : > { %2869 = vmatprep.subr.bf16.mxu0 %v3200_v35  ;;  %2743 = vmatprep.mubr.bf16.mxu1 %v3567_v9  ;;  %v3203_v9 = vld [vmem:[%s3924_s1 + $0x210] sm:$0xff]  }
  0x8e   : > { %2871 = vmatprep.mubr.bf16.mxu0 %v3468_v27  ;;  %v3204_v27 = vld [vmem:[%s3924_s1 + $0x218] sm:$0xff]  }
  0x8f   : > { %2742 = vmatpush3.bf16.msra.mxu1 %v3199_v34 }
  0x90   : > { %2870 = vmatpush3.bf16.msra.mxu0 %v3200_v35  ;;  %2919 = vmatprep.subr.bf16.mxu1 %v3201_v38 }
  0x91   : > { %2887 = vmatprep.subr.bf16.mxu0 %v3201_v38 }
  0x92   : > { %2744 = vmatmul.mubr.bf16.vlgmr.msra.gmra.mrb[0].mxu1 %v3579_v15  ;;  %v2413_v15 = vld [vmem:[%s3435_s28 + $0xe1] sm:$0xff] }
  0x93   : > { %2872 = vmatmul.mubr.bf16.vlgmr.msra.gmra.mrb[0].mxu0 %v3477_v31  ;;  %2927 = vmatpush3.bf16.msra.mxu1 %v3201_v38  ;;  %v3205_v31 = vld [vmem:[%s3924_s1 + $0x220] sm:$0xff]  }
  0x94   : > { %2888 = vmatpush3.bf16.msra.mxu0 %v3201_v38  ;;  %2920 = vmatprep.subr.bf16.mxu1 %v3202_v39 }
  0x95   : > { %2889 = vmatprep.subr.bf16.mxu0 %v3202_v39  ;;  %2747 = vmatprep.mubr.bf16.mxu1 %v3599_v25 }
  0x96   : > { %2875 = vmatprep.mubr.bf16.mxu0 %v3490_v36  ;;  %v3206_v36 = vld [vmem:[%s3924_s1 + $0x228] sm:$0xff]  }
  0x97   : > { %2928 = vmatpush3.bf16.msra.mxu1 %v3202_v39 }
  0x98   : > { %2890 = vmatpush3.bf16.msra.mxu0 %v3202_v39  ;;  %2921 = vmatprep.subr.bf16.mxu1 %v3203_v9 }
  0x99   : > { %2891 = vmatprep.subr.bf16.mxu0 %v3203_v9 }
  0x9a   : > { %2748 = vmatmul.mubr.bf16.gmra.mrb[4].mxu1 %v3611_v33  ;;  %v2453_v33 = vld [vmem:[%s3435_s28 + $0xe2] sm:$0xff] }
  0x9b   : > { %2876 = vmatmul.mubr.bf16.gmra.mrb[4].mxu0 %v3501_v41  ;;  %2929 = vmatpush3.bf16.msra.mxu1 %v3203_v9  ;;  %v2412_v41 = vld [vmem:[%s3435_s28 + $0xd9] sm:$0xff] }
  0x9c   : > { %2892 = vmatpush3.bf16.msra.mxu0 %v3203_v9  ;;  %2922 = vmatprep.subr.bf16.mxu1 %v3204_v27  ;;  %v1598_v25 = vpack.c.bf16 %v2413_v15, %v2412_v41 }
  0x9d   : > { %2893 = vmatprep.subr.bf16.mxu0 %v3204_v27  ;;  %2751 = vmatprep.mubr.bf16.mxu1 %v3630_v44 }
  0x9e   : > { %2879 = vmatprep.mubr.bf16.mxu0 %v3514_v46  ;;  %v3207_v46 = vld [vmem:[%s3924_s1 + $0x230] sm:$0xff]  }
  0x9f   : > { %2930 = vmatpush3.bf16.msra.mxu1 %v3204_v27 }
  0xa0   : > { %2894 = vmatpush3.bf16.msra.mxu0 %v3204_v27  ;;  %2923 = vmatprep.subr.bf16.mxu1 %v3205_v31 }
  0xa1   : > { %2895 = vmatprep.subr.bf16.mxu0 %v3205_v31 }
  0xa2   : > { %2752 = vmatmul.mubr.bf16.gmra.mrb[8].mxu1 %v3643_v53 }
  0xa3   : > { %2880 = vmatmul.mubr.bf16.gmra.mrb[8].mxu0 %v3525_v51  ;;  %2931 = vmatpush3.bf16.msra.mxu1 %v3205_v31  ;;  %v3208_v51 = vld [vmem:[%s3924_s1 + $0x238] sm:$0xff]  }
  0xa4   : > { %2896 = vmatpush3.bf16.msra.mxu0 %v3205_v31  ;;  %2924 = vmatprep.subr.bf16.mxu1 %v3206_v36 }
  0xa5   : > { %2897 = vmatprep.subr.bf16.mxu0 %v3206_v36  ;;  %2755 = vmatprep.mubr.bf16.mxu1 %v3662_v63 }
  0xa6   : > { %2883 = vmatprep.mubr.bf16.mxu0 %v3541_v59  ;;  %v2452_v59 = vld [vmem:[%s3435_s28 + $0xda] sm:$0xff]  ;;  %s175_s28 = sand.u32 1, %s3279_s13  }
  0xa7   : > { %2932 = vmatpush3.bf16.msra.mxu1 %v3206_v36  ;;  %v1800_v40 = vpack.c.bf16 %v2453_v33, %v2452_v59  ;;  %s2174_s10 = sshll.u32 %s175_s28, 7  ;;  %s3871_s7 = scalar_lea.sflag [#allocation3], %s175_s28 }
  0xa8   : > { %2898 = vmatpush3.bf16.msra.mxu0 %v3206_v36  ;;  %2925 = vmatprep.subr.bf16.mxu1 %v3207_v46  ;;  %s3823_s21 = scalar_lea.vmem [#allocation2], %s2174_s10 }
  0xa9   : > { %2899 = vmatprep.subr.bf16.mxu0 %v3207_v46  ;;  %s2083_s4 = sshll.u32 %s3823_s21, 4  ;;  %s3863_s4 = int_to_ptr.vmem [resolvable:$true] %s2083_s4 }
  0xaa   : > { %2756 = vmatmul.mubr.bf16.gmra.mrb[12].mxu1 %v3723_v23  ;;  %s3209_s8 = scalar_lea.vmem %s3863_s4, 2048  ;;  %p3216_p2 = scmp.lt.s32.totalorder %s3863_s4, %s3214_s11 }
  0xab   : > { %2884 = vmatmul.mubr.bf16.gmra.mrb[12].mxu0 %v1598_v25  ;;  %2933 = vmatpush3.bf16.msra.mxu1 %v3207_v46  ;;  %p3210_p13 = scmp.ne.s32.totalorder %s3863_s4, %s3209_s8  ;;  %p3217_p4 = scmp.lt.s32.totalorder %s3215_s20, %s3209_s8 }
  0xac   : > { %2900 = vmatpush3.bf16.msra.mxu0 %v3207_v46  ;;  %2926 = vmatprep.subr.bf16.mxu1 %v3208_v51 }
  0xad   : > { %2901 = vmatprep.subr.bf16.mxu0 %v3208_v51  ;;  %2903 = vmatprep.mubr.bf16.mxu0 %v3570_v11  ;;  %p3211_p0 = pnand %p3210_p13, %p3379_p3  ;;  %p3218_p5 = por %p3217_p4, %p3216_p2 }
  0xae   : > { %2911 = vmatprep.mubr.bf16.mxu1 %v3636_v48 }
  0xaf   : > { %2934 = vmatpush3.bf16.msra.mxu1 %v3208_v51  ;;  %p3212_p1 = pneg %p3211_p0 }
  0xb0   : > { %2902 = vmatpush3.bf16.msra.mxu0 %v3208_v51 }
  0xb1   : > { %p3219_p6 = pnand %p3218_p5, %p3212_p1 }
  0xb2   : > { %2912 = vmatmul.mubr.bf16.vlgmr.msra.gmra.mrb[16].mxu1 %v3648_v56 }
  0xb3   : > { %2904 = vmatmul.mubr.bf16.vlgmr.msra.gmra.mrb[0].mxu0 %v3584_v18  ;;  %2915 = vmatprep.mubr.bf16.mxu1 %v3665_v2 }
  0xb4   : > { %2907 = vmatprep.mubr.bf16.mxu0 %v3605_v29 }
  0xba   : > { %2916 = vmatmul.mubr.bf16.gmra.mrb[20].mxu1 %v1800_v40 }
  0xbb   : > { %2908 = vmatmul.mubr.bf16.gmra.mrb[4].mxu0 %v3616_v37 }
 0x165   : > { %v2745_v42 = vpop.f32.mrb[0].mxu1 }
 0x166   : > { %v887_v11 = vpop.f32.mrb[1].mxu1 }
 0x167   : > { %v2746_v43 = vpop.f32.mrb[2].mxu1 }
 0x168   : > { %v3793_v44 = vpop.f32.mrb[3].mxu1 }
 0x16d   : > { %v3795_v45 = vpop.f32.mrb[4].mxu1 }
 0x16e   : > { %v3797_v47 = vpop.f32.mrb[5].mxu1 }
 0x16f   : > { %v3799_v18 = vpop.f32.mrb[6].mxu1 }
 0x170   : > { %v3801_v48 = vpop.f32.mrb[7].mxu1 }
 0x175   : > { %v2753_v49 = vpop.f32.mrb[8].mxu1 }
 0x176   : > { %v2881_v50 = vpop.f32.mrb[8].mxu0  ;;  %v919_v29 = vpop.f32.mrb[9].mxu1 }
 0x177   : > { %v2943_v52 = vadd.f32 %v2881_v50, %v2753_v49  ;;  %v1730_v53 = vpop.f32.mrb[9].mxu0  ;;  %v2754_v54 = vpop.f32.mrb[10].mxu1 }
 0x178   : > { %v2945_v37 = vadd.f32 %v1730_v53, %v919_v29  ;;  %v2882_v55 = vpop.f32.mrb[10].mxu0  ;;  %v922_v56 = vpop.f32.mrb[11].mxu1 }
 0x179   : > { %v2947_v57 = vadd.f32 %v2882_v55, %v2754_v54  ;;  %v1733_v58 = vpop.f32.mrb[11].mxu0 }
 0x17a   : > { %v2949_v60 = vadd.f32 %v1733_v58, %v922_v56 }
 0x17d   : > { %v2757_v61 = vpop.f32.mrb[12].mxu1 }
 0x17e   : > { %v2885_v62 = vpop.f32.mrb[12].mxu0  ;;  %v935_v63 = vpop.f32.mrb[13].mxu1 }
 0x17f   : > { %v2951_v1 = vadd.f32 %v2885_v62, %v2757_v61  ;;  %v1746_v2 = vpop.f32.mrb[13].mxu0  ;;  %v2758_v3 = vpop.f32.mrb[14].mxu1 }
 0x180   : > { %v3803_v4 = vadd.f32 %v1746_v2, %v935_v63  ;;  %v2886_v5 = vpop.f32.mrb[14].mxu0  ;;  %v938_v6 = vpop.f32.mrb[15].mxu1 }
 0x181   : > { %v3805_v7 = vadd.f32 %v2886_v5, %v2758_v3  ;;  %v1749_v8 = vpop.f32.mrb[15].mxu0 }
 0x182   : > { %v3807_v10 = vadd.f32 %v1749_v8, %v938_v6 }
 0x185   : > { %v2913_v13 = vpop.f32.mrb[16].mxu1 }
 0x186   : > { %v2905_v0 = vpop.f32.mrb[0].mxu0  ;;  %v2944_v14 = vadd.f32 %v2943_v52, %v2913_v13  ;;  %v1932_v16 = vpop.f32.mrb[17].mxu1 }
 0x187   : > { %v2935_v17 = vadd.f32 %v2905_v0, %v2745_v42  ;;  %v1900_v19 = vpop.f32.mrb[1].mxu0  ;;  %v2946_v20 = vadd.f32 %v2945_v37, %v1932_v16  ;;  %v2914_v21 = vpop.f32.mrb[18].mxu1 }
 0x188   : > { %v1996_v22 = vadd.f32 %v2944_v14, %v3813_v12  ;;  %v2936_v23 = vadd.f32 %v1900_v19, %v887_v11  ;;  %v2906_v24 = vpop.f32.mrb[2].mxu0  ;;  %v2948_v26 = vadd.f32 %v2947_v57, %v2914_v21  ;;  %v1935_v28 = vpop.f32.mrb[19].mxu1 }
 0x189   : > { %v1988_v30 = vadd.f32 %v2935_v17, %v3813_v12  ;;  %v1994_v32 = vadd.f32 %v2946_v20, %v3813_v12  ;;  %v2937_v34 = vadd.f32 %v2906_v24, %v2746_v43  ;;  %v1903_v35 = vpop.f32.mrb[3].mxu0  ;;  %v2950_v38 = vadd.f32 %v2949_v60, %v1935_v28 }
 0x18a   : > { %vm2012_vm0 = vcmp.gt.f32.partialorder %v1996_v22, 0.0  ;;  %v2028_v39 = vmul.f32 0.01, %v1996_v22  ;;  %v1986_v9 = vadd.f32 %v2936_v23, %v3813_v12  ;;  %v1997_v27 = vadd.f32 %v2948_v26, %v3813_v12 }
 0x18b   : > { %vm2004_vm1 = vcmp.gt.f32.partialorder %v1988_v30, 0.0  ;;  %v2020_v31 = vmul.f32 0.01, %v1988_v30  ;;  %vm2010_vm2 = vcmp.gt.f32.partialorder %v1994_v32, 0.0  ;;  %v2026_v36 = vmul.f32 0.01, %v1994_v32 }
 0x18c   : > { %v2044_v41 = vsel %vm2012_vm0, %v1996_v22, %v2028_v39  ;;  %vm2002_vm3 = vcmp.gt.f32.partialorder %v1986_v9, 0.0  ;;  %v2018_v15 = vmul.f32 0.01, %v1986_v9  ;;  %v1989_v46 = vadd.f32 %v2937_v34, %v3813_v12 }
 0x18d   : > { %v2036_v25 = vsel %vm2004_vm1, %v1988_v30, %v2020_v31  ;;  %2060 = vst [vmem:[%s3823_s21 + $0x50] sm:$0xff] %v2044_v41  ;;  %v2042_v51 = vsel %vm2010_vm2, %v1994_v32, %v2026_v36  ;;  %vm2013_vm4 = vcmp.gt.f32.partialorder %v1997_v27, 0.0  ;;  %v2029_v59 = vmul.f32 0.01, %v1997_v27  ;;  %v2917_v33 = vpop.f32.mrb[20].mxu1 }
 0x18e   : > { %2052 = vst [vmem:[%s3823_s21 + $0x10] sm:$0xff] %v2036_v25  ;;  %v2034_v40 = vsel %vm2002_vm3, %v1986_v9, %v2018_v15  ;;  %2058 = vst [vmem:[%s3823_s21 + $0x40] sm:$0xff] %v2042_v51  ;;  %vm2005_vm5 = vcmp.gt.f32.partialorder %v1989_v46, 0.0  ;;  %v2021_v42 = vmul.f32 0.01, %v1989_v46  ;;  %v2938_v11 = vadd.f32 %v1903_v35, %v3793_v44  ;;  %v2909_v43 = vpop.f32.mrb[4].mxu0 }
 0x18f   : > { %v1948_v49 = vpop.f32.mrb[21].mxu1  ;;  %2050 = vst [vmem:[%s3823_s21] sm:$0xff] %v2034_v40  ;;  %v2045_v50 = vsel %vm2013_vm4, %v1997_v27, %v2029_v59  ;;  %v1995_v29 = vadd.f32 %v2950_v38, %v3813_v12  ;;  %v2939_v52 = vadd.f32 %v2909_v43, %v3795_v45  ;;  %v2952_v53 = vadd.f32 %v2951_v1, %v2917_v33  ;;  %v1916_v54 = vpop.f32.mrb[5].mxu0 }
 0x190   : > { %v2918_v37 = vpop.f32.mrb[22].mxu1  ;;  %v2037_v55 = vsel %vm2005_vm5, %v1989_v46, %v2021_v42  ;;  %2061 = vst [vmem:[%s3823_s21 + $0x58] sm:$0xff] %v2045_v50  ;;  %v1987_v56 = vadd.f32 %v2938_v11, %v3813_v12  ;;  %v2940_v44 = vadd.f32 %v1916_v54, %v3797_v47  ;;  %v2954_v57 = vadd.f32 %v3803_v4, %v1948_v49  ;;  %v2910_v58 = vpop.f32.mrb[6].mxu0 }
 0x191   : > { %v1951_v60 = vpop.f32.mrb[23].mxu1  ;;  %2053 = vst [vmem:[%s3823_s21 + $0x18] sm:$0xff] %v2037_v55  ;;  %vm2011_vm6 = vcmp.gt.f32.partialorder %v1995_v29, 0.0  ;;  %v2027_v61 = vmul.f32 0.01, %v1995_v29  ;;  %v1992_v45 = vadd.f32 %v2939_v52, %v3813_v12  ;;  %v2000_v62 = vadd.f32 %v2952_v53, %v3813_v12  ;;  %v1919_v63 = vpop.f32.mrb[7].mxu0 }
 0x192   : > { %vm2003_vm7 = vcmp.gt.f32.partialorder %v1987_v56, 0.0  ;;  %v2019_v1 = vmul.f32 0.01, %v1987_v56  ;;  %v1990_v2 = vadd.f32 %v2940_v44, %v3813_v12  ;;  %v1998_v47 = vadd.f32 %v2954_v57, %v3813_v12 }
 0x193   : > { %v2043_v3 = vsel %vm2011_vm6, %v1995_v29, %v2027_v61  ;;  %vm2008_vm8 = vcmp.gt.f32.partialorder %v1992_v45, 0.0  ;;  %v2024_v4 = vmul.f32 0.01, %v1992_v45  ;;  %vm2016_vm9 = vcmp.gt.f32.partialorder %v2000_v62, 0.0 }
 0x194   : > { %v2035_v5 = vsel %vm2003_vm7, %v1987_v56, %v2019_v1  ;;  %2059 = vst [vmem:[%s3823_s21 + $0x48] sm:$0xff] %v2043_v3  ;;  %v2032_v6 = vmul.f32 0.01, %v2000_v62  ;;  %vm2006_vm10 = vcmp.gt.f32.partialorder %v1990_v2, 0.0  ;;  %v2022_v8 = vmul.f32 0.01, %v1990_v2 }
 0x195   : > { %2051 = vst [vmem:[%s3823_s21 + $0x8] sm:$0xff] %v2035_v5  ;;  %v2040_v13 = vsel %vm2008_vm8, %v1992_v45, %v2024_v4  ;;  %vm2014_vm11 = vcmp.gt.f32.partialorder %v1998_v47, 0.0  ;;  %v2030_v0 = vmul.f32 0.01, %v1998_v47  ;;  %v2941_v14 = vadd.f32 %v2910_v58, %v3799_v18 }
 0x196   : > { %2056 = vst [vmem:[%s3823_s21 + $0x30] sm:$0xff] %v2040_v13  ;;  %v2048_v16 = vsel %vm2016_vm9, %v2000_v62, %v2032_v6  ;;  %v2038_v17 = vsel %vm2006_vm10, %v1990_v2, %v2022_v8  ;;  %v2956_v19 = vadd.f32 %v3805_v7, %v2918_v37  ;;  %v2942_v20 = vadd.f32 %v1919_v63, %v3801_v48 }
 0x197   : > { %2064 = vst [vmem:[%s3823_s21 + $0x70] sm:$0xff] %v2048_v16  ;;  %2054 = vst [vmem:[%s3823_s21 + $0x20] sm:$0xff] %v2038_v17  ;;  %v2046_v21 = vsel %vm2014_vm11, %v1998_v47, %v2030_v0  ;;  %v1993_v22 = vadd.f32 %v2941_v14, %v3813_v12  ;;  %v2958_v23 = vadd.f32 %v3807_v10, %v1951_v60 }
 0x198   : > { %2062 = vst [vmem:[%s3823_s21 + $0x60] sm:$0xff] %v2046_v21  ;;  %v2001_v24 = vadd.f32 %v2956_v19, %v3813_v12  ;;  %v1991_v18 = vadd.f32 %v2942_v20, %v3813_v12 }
 0x199   : > { %vm2009_vm12 = vcmp.gt.f32.partialorder %v1993_v22, 0.0  ;;  %v2025_v7 = vmul.f32 0.01, %v1993_v22  ;;  %v1999_v48 = vadd.f32 %v2958_v23, %v3813_v12 }
 0x19a   : > { %vm2017_vm13 = vcmp.gt.f32.partialorder %v2001_v24, 0.0  ;;  %v2033_v26 = vmul.f32 0.01, %v2001_v24  ;;  %vm2007_vm14 = vcmp.gt.f32.partialorder %v1991_v18, 0.0  ;;  %v2023_v10 = vmul.f32 0.01, %v1991_v18 }
 0x19b   : > { %v2041_v28 = vsel %vm2009_vm12, %v1993_v22, %v2025_v7  ;;  %vm2015_vm15 = vcmp.gt.f32.partialorder %v1999_v48, 0.0  ;;  %v2031_v30 = vmul.f32 0.01, %v1999_v48 }
 0x19c   : > { %2057 = vst [vmem:[%s3823_s21 + $0x38] sm:$0xff] %v2041_v28  ;;  %v2049_v12 = vsel %vm2017_vm13, %v2001_v24, %v2033_v26  ;;  %v2039_v32 = vsel %vm2007_vm14, %v1991_v18, %v2023_v10 }
 0x19d   : > { %2065 = vst [vmem:[%s3823_s21 + $0x78] sm:$0xff] %v2049_v12  ;;  %2055 = vst [vmem:[%s3823_s21 + $0x28] sm:$0xff] %v2039_v32  ;;  %v2047_v34 = vsel %vm2015_vm15, %v1999_v48, %v2031_v30 }
 0x19e   : > { %2063 = vst [vmem:[%s3823_s21 + $0x68] sm:$0xff] %v2047_v34 }
 0x19f   : > { %3222 = shalt.err (!%p3219_p6)
}
 0x1a0   : > { %s3223_s28 = scalar_lea.hbm %s3861_s6, 2048  ;;  %s3227_s24 = scalar_lea.hbm %s3926_s3, 8192 }
 0x1a1   : > { %p3224_p7 = scmp.ne.s32.totalorder %s3861_s6, %s3223_s28  ;;  %p3228_p11 = scmp.lt.u32.totalorder %s3861_s6, %s3926_s3 }
 0x1a2   : > { %p3229_p12 = scmp.lt.u32.totalorder %s3227_s24, %s3223_s28  ;;  %p3231_p0 = scmp.lt.u32.totalorder %s3223_s28, %s3861_s6 }
 0x1a3   : > { %p3225_p9 = pnand %p3224_p7, %p3379_p3 }
 0x1a4   : > { %p3230_p13 = por %p3229_p12, %p3228_p11 }
 0x1a5   : > { %p3226_p10 = pneg %p3225_p9 }
 0x1a6   : > { %p3232_p1 = por %p3231_p0, %p3230_p13 }
 0x1a8   : > { %p3233_p2 = pnand %p3232_p1, %p3226_p10 }
 0x1aa   : > { %3236 = shalt.err (!%p3233_p2)
}
 0x1ab   : > { %s3306_s16 = smov 128   ;;  %s3307_s5 = smov 8  }
 0x1ac   : > { %3064 = dma.vmem_to_hbm [thread:$0]  (%p3379_p3), %s3863_s4, 2048, %s3861_s6, %s3871_s7, %s3306_s16, %s3306_s16, %s3307_s5  }
 0x1ad PF: > { %p3070_p4 = scmp.ge.s32.totalorder %s3303_s19, 2  ;;  %s2098_s29 = sand.u32 1, %s3275_s12  }
 0x1ae   : > { %s2099_s8 = scalar_lea.sflag [#allocation3], %s2098_s29 }
 0x1af   : > { %p3067_p5 = pnand %p3070_p4, %p3388_p8 }
 0x1b1   : > { %3270 = dma.done.wait (!%p3067_p5), %s2099_s8, 2048  }
 0x1b2   : > { %3272 = vsyncadd (!%p3067_p5), %s2099_s8, 4294965248  ;;  %s16_s19 = sadd.s32 1, %s3303_s19   ;;  %s3929_s12 = smov %s3279_s13 }
 0x1b3   : > { %p13_p6 = scmp.ge.s32.totalorder %s16_s19, 6   ;;  %s3930_s13 = smov %s3283_s14 }
 0x1b4   : > { %s3931_s14 = smov %s3397_s30  ;;  %s3932_s15 = smov %s3295_s17 }
 0x1b5   : > { %s3933_s16 = smov %s3299_s18  ;;  %s3934_s17 = smov %s3937_s22 }
 0x1b6   : > { %s3935_s18 = smov %s3941_s23  ;;  %15 = sbr.rel (!%p13_p6) target bundleno = 5 (0x5), region = 78 }
 0x1bd   :  { %2104 = vsyncpa [#allocation3], 1 }
 0x1be   :  { %2106 = vsyncpa [#allocation3 + $0x1], 1 }

// kernel: encoder_forward.4
= control target key start
LH: loop header
LB: loop body
LE: loop exit
PB: predicated region body
PF: predicated region fallthrough
CT: control target
= control target key end

     0   :  { %s5404_s12 = smov 0   ;;  %s5406_s13 = smov 0   ;;  %s6875_s0 = inlined_call_operand.vmem [shape: f32[2,18,18,256], index: 0, kind: input, shape index: {}]   ;;  %s6876_s1 = inlined_call_operand.vmem [shape: bf16[3,3,256,128], index: 1, kind: input, shape index: {}]   ;;  %s6877_s2 = inlined_call_operand.vmem [shape: f32[1,128], index: 2, kind: input, shape index: {}]   ;;  %s6878_s3 = inlined_call_operand.vmem [shape: f32[2,16,16,128], index: 3, kind: output, shape index: {}]  }
   0x1   :  { %s5408_s14 = smov 0   ;;  %s5410_s15 = smov 0  }
   0x2   :  { %s5412_s16 = smov 0  }
   0x3 LB: > { %s22_s17 = sadd.s32 1, %s5374_s14  ;;  %s25_s18 = sadd.s32 1, %s5378_s15  ;;  %s5382_s16 = sphi %s5412_s16, %s13_s16   ;;  %s5378_s15 = sphi %s5410_s15, %s6882_s15   ;;  %s5374_s14 = sphi %s5408_s14, %s6881_s14   ;;  %s5370_s13 = sphi %s5406_s13, %s6880_s13   ;;  %s5366_s12 = sphi %s5404_s12, %s6879_s12  }
   0x4   : > { %p23_p0 = scmp.ge.s32.totalorder %s22_s17, 2  ;;  %p3923_p1 = scmp.ge.s32.totalorder %s5382_s16, 1 }
   0x5   : > { %p151_p2 = scmp.lt.s32.totalorder %s5382_s16, 5 }
   0x6   : > { %s6884_s17 = smov (%p23_p0, %s22_s17), 0  ;;  %s6886_s18 = smov (!%p23_p0, %s25_s18), %s5378_s15 }
   0x7   : > { %p152_p3 = pnand %p3923_p1, %p151_p2  ;;  %p27_p4 = scmp.ge.s32.totalorder %s6886_s18, 2 }
   0x8   : > { %v5197_v0 = vld [vmem:[%s6876_s1 + $0xc0] sm:$0xff] (!%p152_p3)   ;;  %p180_p5 = scmp.lt.s32.totalorder (!%p152_p3), %s5370_s13, 1  ;;  %v5199_v2 = vld [vmem:[%s6876_s1 + $0xc8] sm:$0xff] (!%p152_p3)   ;;  %v5201_v4 = vld [vmem:[%s6876_s1 + $0xd0] sm:$0xff] (!%p152_p3)   ;;  %s4563_s7 = smul.u32 (!%p152_p3), 384, %s5366_s12  ;;  %vm361_vm0 = vcmask (!%p152_p3), 1046528  }
   0x9   : > { %s6888_s18 = smov (%p27_p4, %s6886_s18), 0  ;;  %155 = sbr.rel (%p152_p3) target bundleno = 550 (0x226), region = 32 }
   0xa   : > { %v5198_v1 = vld [vmem:[%s6876_s1 + $0x80] sm:$0xff] (!%p152_p3)   ;;  %4564 = vmatprep.subr.bf16.mxu0 (!%p152_p3), %v5197_v0  ;;  %5140 = vmatprep.subr.bf16.mxu1 (!%p152_p3), %v5197_v0  ;;  %v5200_v3 = vld [vmem:[%s6876_s1 + $0x88] sm:$0xff] (!%p152_p3)   ;;  %v5202_v5 = vld [vmem:[%s6876_s1 + $0x90] sm:$0xff] (!%p152_p3)   ;;  %vm973_vm1 = vcmask (!%p152_p3), 1045504  }
   0xb   : > { %4565 = vmatpush3.bf16.msra.mxu0 (!%p152_p3), %v5198_v1  ;;  %5148 = vmatpush3.bf16.msra.mxu1 (!%p152_p3), %v5198_v1  ;;  %v5203_v6 = vld [vmem:[%s6876_s1 + $0xd8] sm:$0xff] (!%p152_p3)   ;;  %v5205_v8 = vld [vmem:[%s6876_s1 + $0xe0] sm:$0xff] (!%p152_p3)   ;;  %v5207_v10 = vld [vmem:[%s6876_s1 + $0xe8] sm:$0xff] (!%p152_p3)  }
   0xc   : > { %4566 = vmatprep.subr.bf16.mxu0 (!%p152_p3), %v5199_v2  ;;  %5141 = vmatprep.subr.bf16.mxu1 (!%p152_p3), %v5199_v2  ;;  %v5204_v7 = vld [vmem:[%s6876_s1 + $0x98] sm:$0xff] (!%p152_p3)   ;;  %v5206_v9 = vld [vmem:[%s6876_s1 + $0xa0] sm:$0xff] (!%p152_p3)   ;;  %v5208_v19 = vld [vmem:[%s6876_s1 + $0xa8] sm:$0xff] (!%p152_p3)  }
   0xd   : > { %v5209_v30 = vld [vmem:[%s6876_s1 + $0xf0] sm:$0xff] (!%p152_p3)   ;;  %v5211_v44 = vld [vmem:[%s6876_s1 + $0xf8] sm:$0xff] (!%p152_p3)   ;;  %v5213_v50 = vld [vmem:[%s6876_s1 + $0x40] sm:$0xff] (!%p152_p3)  }
   0xe   : > { %v5210_v36 = vld [vmem:[%s6876_s1 + $0xb0] sm:$0xff] (!%p152_p3)   ;;  %v5212_v45 = vld [vmem:[%s6876_s1 + $0xb8] sm:$0xff] (!%p152_p3)   ;;  %v5214_v51 = vld [vmem:[%s6876_s1 + $0x140] sm:$0xff] (!%p152_p3)  }
   0xf   : > { %4567 = vmatpush3.bf16.msra.mxu0 (!%p152_p3), %v5200_v3  ;;  %5149 = vmatpush3.bf16.msra.mxu1 (!%p152_p3), %v5200_v3  ;;  %v5215_v52 = vld [vmem:[%s6876_s1] sm:$0xff] (!%p152_p3)   ;;  %v5217_v58 = vld [vmem:[%s6876_s1 + $0x48] sm:$0xff] (!%p152_p3)  }
  0x10   : > { %s6890_s13 = smov (!%p180_p5, %s5370_s13), 1  ;;  %4568 = vmatprep.subr.bf16.mxu0 %v5201_v4  ;;  %5142 = vmatprep.subr.bf16.mxu1 %v5201_v4  ;;  %v5216_v53 = vld [vmem:[%s6876_s1 + $0x100] sm:$0xff]   ;;  %v5218_v59 = vld [vmem:[%s6876_s1 + $0x148] sm:$0xff]  }
  0x11   : > { %s5156_s29 = smul.u32 864, %s6890_s13  ;;  %s3927_s27 = sshll.u32 %s6890_s13, 5 }
  0x13   : > { %s184_s10 = scalar_lea.vmem %s6875_s0, %s5156_s29  ;;  %4569 = vmatpush3.bf16.msra.mxu0 %v5202_v5  ;;  %5150 = vmatpush3.bf16.msra.mxu1 %v5202_v5 }
  0x14   : > { %4570 = vmatprep.subr.bf16.mxu0 %v5203_v6  ;;  %5143 = vmatprep.subr.bf16.mxu1 %v5203_v6  ;;  %s5470_s22 = scalar_lea.vmem %s184_s10, %s4563_s7 }
  0x15   : > { %v5479_v11 = vld [vmem:[%s5470_s22 + $0x18] sm:$0xff]  ;;  %v282_v12 = vld [vmem:[%s5470_s22 + $0x8] sm:$0xfe]  ;;  %v284_v13 = vld [vmem:[%s5470_s22 + $0x28] sm:$0x1] }
  0x16   : > { %v365_v14 = vrot.slane %v282_v12, 1  ;;  %v366_v15 = vrot.slane %v5479_v11, 1  ;;  %v370_v16 = vrot.slane %v284_v13, 1  ;;  %v5485_v17 = vld [vmem:[%s5470_s22 + $0xd8] sm:$0xff]  ;;  %v298_v18 = vld [vmem:[%s5470_s22 + $0xc8] sm:$0xfe] }
  0x17   : > { %4571 = vmatpush3.bf16.msra.mxu0 %v5204_v7  ;;  %5151 = vmatpush3.bf16.msra.mxu1 %v5204_v7  ;;  %v300_v20 = vld [vmem:[%s5470_s22 + $0xe8] sm:$0x1]  ;;  %v405_v21 = vrot.slane %v298_v18, 1  ;;  %v406_v22 = vrot.slane %v5485_v17, 1  ;;  %v5494_v23 = vld [vmem:[%s5470_s22 + $0x10] sm:$0xff]  ;;  %v5553_v0 = vld [vmem:[%s5470_s22 + $0x40] sm:$0xff] }
  0x18   : > { %4572 = vmatprep.subr.bf16.mxu0 %v5205_v8  ;;  %5144 = vmatprep.subr.bf16.mxu1 %v5205_v8  ;;  %v367_v24 = vsel %vm361_vm0, %v365_v14, %v366_v15  ;;  %v371_v25 = vsel %vm361_vm0, %v366_v15, %v370_v16  ;;  %v410_v26 = vrot.slane %v300_v20, 1  ;;  %v281_v27 = vld [vmem:[%s5470_s22] sm:$0xfe]  ;;  %v283_v28 = vld [vmem:[%s5470_s22 + $0x20] sm:$0x1]  ;;  %v5501_v29 = vld [vmem:[%s5470_s22 + $0xd0] sm:$0xff] }
  0x19   : > { %v475_v31 = vpack.c.bf16 %v371_v25, %v367_v24  ;;  %v407_v32 = vsel %vm361_vm0, %v405_v21, %v406_v22  ;;  %v363_v33 = vrot.slane %v5494_v23, 1  ;;  %v297_v34 = vld [vmem:[%s5470_s22 + $0xc0] sm:$0xfe]  ;;  %v299_v35 = vld [vmem:[%s5470_s22 + $0xe0] sm:$0x1]  ;;  %v362_v38 = vrot.slane %v281_v27, 1 }
  0x1a   : > { %v411_v37 = vsel %vm361_vm0, %v406_v22, %v410_v26  ;;  %v368_v39 = vrot.slane %v283_v28, 1  ;;  %v402_v40 = vrot.slane %v297_v34, 1  ;;  %v403_v42 = vrot.slane %v5501_v29, 1  ;;  %v5538_v54 = vld [vmem:[%s5470_s22 + $0x48] sm:$0xff]  ;;  %v286_v55 = vld [vmem:[%s5470_s22 + $0x38] sm:$0xfe] }
  0x1b   : > { %4573 = vmatpush3.bf16.msra.mxu0 %v5206_v9  ;;  %5152 = vmatpush3.bf16.msra.mxu1 %v5206_v9  ;;  %v483_v41 = vpack.c.bf16 %v411_v37, %v407_v32  ;;  %v408_v43 = vrot.slane %v299_v35, 1  ;;  %v364_v46 = vsel %vm361_vm0, %v362_v38, %v363_v33  ;;  %v288_v60 = vld [vmem:[%s5470_s22 + $0x58] sm:$0x1]  ;;  %v375_v61 = vrot.slane %v286_v55, 1  ;;  %v5550_v63 = vld [vmem:[%s5470_s22 + $0x108] sm:$0xff]  ;;  %v5567_v16 = vld [vmem:[%s5470_s22 + $0x100] sm:$0xff] }
  0x1c   : > { %4574 = vmatprep.subr.bf16.mxu0 %v5207_v10  ;;  %5145 = vmatprep.subr.bf16.mxu1 %v5207_v10  ;;  %v369_v47 = vsel %vm361_vm0, %v363_v33, %v368_v39  ;;  %v404_v48 = vsel %vm361_vm0, %v402_v40, %v403_v42  ;;  %v376_v62 = vrot.slane %v5538_v54, 1  ;;  %v380_v1 = vrot.slane %v288_v60, 1  ;;  %v302_v2 = vld [vmem:[%s5470_s22 + $0xf8] sm:$0xfe]  ;;  %v304_v3 = vld [vmem:[%s5470_s22 + $0x118] sm:$0x1] }
  0x1d   : > { %651 = vmatprep.mubr.bf16.mxu0 %v475_v31  ;;  %683 = vmatprep.mubr.bf16.mxu1 %v483_v41  ;;  %v409_v49 = vsel %vm361_vm0, %v403_v42, %v408_v43  ;;  %v474_v56 = vpack.c.bf16 %v369_v47, %v364_v46  ;;  %v416_v4 = vrot.slane %v5550_v63, 1  ;;  %v415_v6 = vrot.slane %v302_v2, 1  ;;  %v285_v8 = vld [vmem:[%s5470_s22 + $0x30] sm:$0xfe]  ;;  %v287_v9 = vld [vmem:[%s5470_s22 + $0x50] sm:$0x1] }
  0x1e   : > { %v482_v57 = vpack.c.bf16 %v409_v49, %v404_v48  ;;  %v377_v5 = vsel %vm361_vm0, %v375_v61, %v376_v62  ;;  %v420_v7 = vrot.slane %v304_v3, 1  ;;  %v5219_v10 = vld [vmem:[%s6876_s1 + $0x8] sm:$0xff]   ;;  %v381_v12 = vsel %vm361_vm0, %v376_v62, %v380_v1  ;;  %v301_v18 = vld [vmem:[%s5470_s22 + $0xf0] sm:$0xfe]  ;;  %v303_v24 = vld [vmem:[%s5470_s22 + $0x110] sm:$0x1] }
  0x1f   : > { %4575 = vmatpush3.bf16.msra.mxu0 %v5208_v19  ;;  %5153 = vmatpush3.bf16.msra.mxu1 %v5208_v19  ;;  %v372_v13 = vrot.slane %v285_v8, 1  ;;  %v373_v14 = vrot.slane %v5553_v0, 1  ;;  %v378_v15 = vrot.slane %v287_v9, 1  ;;  %v5220_v19 = vld [vmem:[%s6876_s1 + $0x108] sm:$0xff]   ;;  %v477_v20 = vpack.c.bf16 %v381_v12, %v377_v5  ;;  %v5221_v31 = vld [vmem:[%s6876_s1 + $0x50] sm:$0xff]   ;;  %v5225_v40 = vld [vmem:[%s6876_s1 + $0x58] sm:$0xff]  }
  0x20   : > { %4576 = vmatprep.subr.bf16.mxu0 %v5209_v30  ;;  %5146 = vmatprep.subr.bf16.mxu1 %v5209_v30  ;;  %v417_v21 = vsel %vm361_vm0, %v415_v6, %v416_v4  ;;  %v421_v22 = vsel %vm361_vm0, %v416_v4, %v420_v7  ;;  %v412_v25 = vrot.slane %v301_v18, 1  ;;  %v413_v30 = vrot.slane %v5567_v16, 1  ;;  %v5222_v33 = vld [vmem:[%s6876_s1 + $0x150] sm:$0xff]   ;;  %v5226_v41 = vld [vmem:[%s6876_s1 + $0x158] sm:$0xff]   ;;  %v292_v46 = vld [vmem:[%s5470_s22 + $0x88] sm:$0x1] }
  0x21   : > { %v485_v26 = vpack.c.bf16 %v421_v22, %v417_v21  ;;  %v374_v27 = vsel %vm361_vm0, %v372_v13, %v373_v14  ;;  %v379_v28 = vsel %vm361_vm0, %v373_v14, %v378_v15  ;;  %v418_v32 = vrot.slane %v303_v24, 1  ;;  %v5223_v35 = vld [vmem:[%s6876_s1 + $0x10] sm:$0xff]   ;;  %v5227_v42 = vld [vmem:[%s6876_s1 + $0x18] sm:$0xff]   ;;  %v291_v60 = vld [vmem:[%s5470_s22 + $0x80] sm:$0x1] }
  0x22   : > { %v414_v34 = vsel %vm361_vm0, %v412_v25, %v413_v30  ;;  %v5224_v38 = vld [vmem:[%s6876_s1 + $0x110] sm:$0xff]   ;;  %v5228_v43 = vld [vmem:[%s6876_s1 + $0x118] sm:$0xff]   ;;  %v388_v2 = vrot.slane %v291_v60, 1  ;;  %v305_v4 = vld [vmem:[%s5470_s22 + $0x120] sm:$0xfe] }
  0x23   : > { %4577 = vmatpush3.bf16.msra.mxu0 %v5210_v36  ;;  %5154 = vmatpush3.bf16.msra.mxu1 %v5210_v36  ;;  %v476_v36 = vpack.c.bf16 %v379_v28, %v374_v27  ;;  %v419_v37 = vsel %vm361_vm0, %v413_v30, %v418_v32  ;;  %v5612_v49 = vld [vmem:[%s5470_s22 + $0x138] sm:$0xff]  ;;  %v5628_v3 = vld [vmem:[%s5470_s22 + $0x130] sm:$0xff]  ;;  %v307_v8 = vld [vmem:[%s5470_s22 + $0x140] sm:$0x1]  ;;  %v422_v9 = vrot.slane %v305_v4, 1 }
  0x24   : > { %4578 = vmatprep.subr.bf16.mxu0 %v5211_v44  ;;  %5147 = vmatprep.subr.bf16.mxu1 %v5211_v44  ;;  %v484_v39 = vpack.c.bf16 %v419_v37, %v414_v34  ;;  %v5606_v44 = vld [vmem:[%s5470_s22 + $0x78] sm:$0xff]  ;;  %v426_v55 = vrot.slane %v5612_v49, 1  ;;  %v423_v15 = vrot.slane %v5628_v3, 1  ;;  %v5230_v18 = vld [vmem:[%s6876_s1 + $0x160] sm:$0xff]   ;;  %v5233_v27 = vld [vmem:[%s6876_s1 + $0x68] sm:$0xff]  }
  0x25   : > { %v386_v48 = vrot.slane %v5606_v44, 1  ;;  %v5231_v21 = vld [vmem:[%s6876_s1 + $0x20] sm:$0xff]   ;;  %v5234_v28 = vld [vmem:[%s6876_s1 + $0x168] sm:$0xff]   ;;  %v296_v34 = vld [vmem:[%s5470_s22 + $0xb8] sm:$0x1] }
  0x26   : > { %v424_v22 = vsel %vm361_vm0, %v422_v9, %v423_v15  ;;  %v5232_v25 = vld [vmem:[%s6876_s1 + $0x120] sm:$0xff]   ;;  %v5235_v30 = vld [vmem:[%s6876_s1 + $0x28] sm:$0xff]  }
  0x27   : > { %4579 = vmatpush3.bf16.msra.mxu0 %v5212_v45  ;;  %5155 = vmatpush3.bf16.msra.mxu1 %v5212_v45  ;;  %v290_v45 = vld [vmem:[%s5470_s22 + $0x68] sm:$0xfe] }
  0x28   : > { %4628 = vmatprep.subr.bf16.mxu1 %v5213_v50  ;;  %4692 = vmatprep.subr.bf16.mxu0 %v5214_v51  ;;  %v385_v47 = vrot.slane %v290_v45, 1  ;;  %v5615_v50 = vld [vmem:[%s5470_s22 + $0x70] sm:$0xff]  ;;  %v390_v51 = vrot.slane %v292_v46, 1  ;;  %v5666_v32 = vld [vmem:[%s5470_s22 + $0xa8] sm:$0xff] }
  0x29   : > { %v5625_v1 = vrot.slane %v5615_v50, 1  ;;  %v5674_v37 = vld [vmem:[%s5470_s22 + $0x168] sm:$0xff] }
  0x2a   : > { %652 = vmatmul.mubr.bf16.vlgmr.msra.gmra.mrb[0].mxu0 %v474_v56  ;;  %684 = vmatmul.mubr.bf16.vlgmr.msra.gmra.mrb[0].mxu1 %v482_v57  ;;  %v387_v56 = vsel %vm361_vm0, %v385_v47, %v386_v48  ;;  %v391_v61 = vsel %vm361_vm0, %v386_v48, %v390_v51  ;;  %v293_v47 = vld [vmem:[%s5470_s22 + $0x90] sm:$0xfe]  ;;  %v295_v48 = vld [vmem:[%s5470_s22 + $0xb0] sm:$0x1] }
  0x2b   : > { %4629 = vmatpush3.bf16.msra.mxu1 %v5215_v52  ;;  %4693 = vmatpush3.bf16.msra.mxu0 %v5216_v53  ;;  %v306_v52 = vld [vmem:[%s5470_s22 + $0x128] sm:$0xfe]  ;;  %v308_v53 = vld [vmem:[%s5470_s22 + $0x148] sm:$0x1]  ;;  %v479_v5 = vpack.c.bf16 %v391_v61, %v387_v56  ;;  %v389_v14 = vsel %vm361_vm0, %v5625_v1, %v388_v2  ;;  %v5692_v56 = vld [vmem:[%s5470_s22 + $0x160] sm:$0xff] }
  0x2c   : > { %4630 = vmatprep.subr.bf16.mxu1 %v5217_v58  ;;  %4694 = vmatprep.subr.bf16.mxu0 %v5218_v59  ;;  %v425_v57 = vrot.slane %v306_v52, 1  ;;  %v430_v58 = vrot.slane %v308_v53, 1  ;;  %v289_v59 = vld [vmem:[%s5470_s22 + $0x60] sm:$0xfe]  ;;  %v392_v52 = vrot.slane %v293_v47, 1  ;;  %v5237_v2 = vld [vmem:[%s6876_s1 + $0x70] sm:$0xff]  }
  0x2d   : > { %659 = vmatprep.mubr.bf16.mxu0 %v477_v20  ;;  %691 = vmatprep.mubr.bf16.mxu1 %v485_v26  ;;  %v382_v62 = vrot.slane %v289_v59, 1  ;;  %v428_v20 = vrot.slane %v307_v8, 1  ;;  %v311_v61 = vld [vmem:[%s5470_s22 + $0x170] sm:$0x1]  ;;  %v5246_v47 = vld [vmem:[%s6876_s1 + $0x180] sm:$0xff]  }
  0x2e   : > { %v427_v6 = vsel %vm361_vm0, %v425_v57, %v426_v55  ;;  %v431_v7 = vsel %vm361_vm0, %v426_v55, %v430_v58  ;;  %v398_v55 = vrot.slane %v295_v48, 1  ;;  %v309_v57 = vld [vmem:[%s5470_s22 + $0x150] sm:$0xfe] }
  0x2f   : > { %4631 = vmatpush3.bf16.msra.mxu1 %v5219_v10  ;;  %4695 = vmatpush3.bf16.msra.mxu0 %v5220_v19  ;;  %v5229_v10 = vld [vmem:[%s6876_s1 + $0x60] sm:$0xff]   ;;  %v487_v12 = vpack.c.bf16 %v431_v7, %v427_v6  ;;  %v384_v13 = vsel %vm361_vm0, %v382_v62, %v5625_v1  ;;  %v429_v24 = vsel %vm361_vm0, %v423_v15, %v428_v20  ;;  %v432_v62 = vrot.slane %v309_v57, 1  ;;  %v5238_v8 = vld [vmem:[%s6876_s1 + $0x170] sm:$0xff]   ;;  %v5242_v20 = vld [vmem:[%s6876_s1 + $0x178] sm:$0xff]  }
  0x30   : > { %4632 = vmatprep.subr.bf16.mxu1 %v5221_v31  ;;  %4696 = vmatprep.subr.bf16.mxu0 %v5222_v33  ;;  %v478_v19 = vpack.c.bf16 %v389_v14, %v384_v13  ;;  %v486_v26 = vpack.c.bf16 %v429_v24, %v424_v22  ;;  %v5236_v31 = vld [vmem:[%s6876_s1 + $0x128] sm:$0xff]   ;;  %v294_v33 = vld [vmem:[%s5470_s22 + $0x98] sm:$0xfe]  ;;  %v433_v7 = vrot.slane %v5692_v56, 1  ;;  %v5240_v15 = vld [vmem:[%s6876_s1 + $0x130] sm:$0xff]   ;;  %v978_v22 = vrot.slane %v5479_v11, 2 }
  0x31   : > { %v975_v24 = vrot.slane %v5494_v23, 2  ;;  %v5756_v57 = vld [vmem:[%s5470_s22 + $0x38] sm:$0xff] }
  0x32   : > { %660 = vmatmul.mubr.bf16.gmra.mrb[4].mxu0 %v476_v36  ;;  %692 = vmatmul.mubr.bf16.gmra.mrb[4].mxu1 %v484_v39  ;;  %v5671_v36 = vrot.slane %v5666_v32, 1  ;;  %v400_v39 = vrot.slane %v296_v34, 1  ;;  %v434_v13 = vsel %vm361_vm0, %v432_v62, %v433_v7  ;;  %v909_v34 = vld [vmem:[%s5470_s22] sm:$0xfc]  ;;  %v5764_v62 = vld [vmem:[%s5470_s22 + $0x30] sm:$0xff] }
  0x33   : > { %4633 = vmatpush3.bf16.msra.mxu1 %v5223_v35  ;;  %4697 = vmatpush3.bf16.msra.mxu0 %v5224_v38  ;;  %v395_v35 = vrot.slane %v294_v33, 1  ;;  %v5677_v38 = vld [vmem:[%s5470_s22 + $0xa0] sm:$0xff] }
  0x34   : > { %4634 = vmatprep.subr.bf16.mxu1 %v5225_v40  ;;  %4698 = vmatprep.subr.bf16.mxu0 %v5226_v41  ;;  %v310_v40 = vld [vmem:[%s5470_s22 + $0x158] sm:$0xfe]  ;;  %v312_v41 = vld [vmem:[%s5470_s22 + $0x178] sm:$0x1]  ;;  %v401_v51 = vsel %vm361_vm0, %v5671_v36, %v400_v39  ;;  %v5689_v53 = vrot.slane %v5677_v38, 1  ;;  %v201_v33 = vld [vmem:[%s5470_s22] sm:$0xff] }
  0x35   : > { %667 = vmatprep.mubr.bf16.mxu0 %v479_v5  ;;  %699 = vmatprep.mubr.bf16.mxu1 %v487_v12  ;;  %v435_v45 = vrot.slane %v310_v40, 1  ;;  %v440_v46 = vrot.slane %v312_v41, 1  ;;  %v5239_v12 = vld [vmem:[%s6876_s1 + $0x30] sm:$0xff]   ;;  %v911_v39 = vld [vmem:[%s5470_s22 + $0x20] sm:$0x3]  ;;  %v974_v40 = vrot.slane %v909_v34, 2 }
  0x36   : > { %v394_v5 = vsel %vm361_vm0, %v392_v52, %v5689_v53  ;;  %v399_v6 = vsel %vm361_vm0, %v5689_v53, %v398_v55  ;;  %v5248_v55 = vld [vmem:[%s6876_s1 + $0x200] sm:$0xff]  }
  0x37   : > { %4635 = vmatpush3.bf16.msra.mxu1 %v5227_v42  ;;  %4699 = vmatpush3.bf16.msra.mxu0 %v5228_v43  ;;  %v436_v42 = vrot.slane %v5674_v37, 1  ;;  %v397_v43 = vsel %vm361_vm0, %v395_v35, %v5671_v36  ;;  %v480_v9 = vpack.c.bf16 %v399_v6, %v394_v5  ;;  %v913_v6 = vld [vmem:[%s5470_s22 + $0x30] sm:$0xfc] }
  0x38   : > { %4636 = vmatprep.subr.bf16.mxu1 %v5229_v10  ;;  %4700 = vmatprep.subr.bf16.mxu0 %v5230_v18  ;;  %v481_v58 = vpack.c.bf16 %v401_v51, %v397_v43  ;;  %v438_v10 = vrot.slane %v311_v61, 1  ;;  %v980_v43 = vrot.slane %v911_v39, 2  ;;  %v916_v61 = vld [vmem:[%s5470_s22 + $0x58] sm:$0x3] }
  0x39   : > { %v437_v59 = vsel %vm361_vm0, %v435_v45, %v436_v42  ;;  %v441_v60 = vsel %vm361_vm0, %v436_v42, %v440_v46  ;;  %v233_v42 = vpack.c.bf16 %v5494_v23, %v201_v33  ;;  %v976_v46 = vsel %vm973_vm1, %v974_v40, %v975_v24  ;;  %v5247_v23 = vld [vmem:[%s6876_s1 + $0x240] sm:$0xff]  }
  0x3a   : > { %668 = vmatmul.mubr.bf16.gmra.mrb[8].mxu0 %v478_v19  ;;  %700 = vmatmul.mubr.bf16.gmra.mrb[8].mxu1 %v486_v26  ;;  %v489_v4 = vpack.c.bf16 %v441_v60, %v437_v59  ;;  %v439_v14 = vsel %vm361_vm0, %v433_v7, %v438_v10  ;;  %v5241_v19 = vld [vmem:[%s6876_s1 + $0x78] sm:$0xff]   ;;  %v202_v26 = vld [vmem:[%s5470_s22 + $0x8] sm:$0xff]  ;;  %v981_v51 = vsel %vm973_vm1, %v975_v24, %v980_v43  ;;  %v992_v5 = vrot.slane %v916_v61, 2  ;;  %v915_v7 = vld [vmem:[%s5470_s22 + $0x50] sm:$0x3] }
  0x3b   : > { %4637 = vmatpush3.bf16.msra.mxu1 %v5231_v21  ;;  %4701 = vmatpush3.bf16.msra.mxu0 %v5232_v25  ;;  %v488_v18 = vpack.c.bf16 %v439_v14, %v434_v13  ;;  %v5243_v21 = vld [vmem:[%s6876_s1 + $0x38] sm:$0xff]   ;;  %v1086_v52 = vpack.c.bf16 %v981_v51, %v976_v46  ;;  %v236_v59 = vpack.c.bf16 %v5538_v54, %v5756_v57  ;;  %v210_v24 = vld [vmem:[%s5470_s22 + $0x68] sm:$0xff]  ;;  %v917_v33 = vld [vmem:[%s5470_s22 + $0x60] sm:$0xfc] }
  0x3c   : > { %4638 = vmatprep.subr.bf16.mxu1 %v5233_v27  ;;  %4702 = vmatprep.subr.bf16.mxu0 %v5234_v28  ;;  %v5244_v25 = vld [vmem:[%s6876_s1 + $0x138] sm:$0xff]   ;;  %v910_v27 = vld [vmem:[%s5470_s22 + $0x8] sm:$0xfc]  ;;  %v234_v28 = vpack.c.bf16 %v5479_v11, %v202_v26  ;;  %v5245_v11 = vld [vmem:[%s6876_s1 + $0x1c0] sm:$0xff]   ;;  %v235_v14 = vpack.c.bf16 %v5553_v0, %v5764_v62  ;;  %v995_v26 = vrot.slane %v5615_v50, 2  ;;  %v994_v39 = vrot.slane %v917_v33, 2 }
  0x3d   : > { %675 = vmatprep.mubr.bf16.mxu0 %v481_v58  ;;  %707 = vmatprep.mubr.bf16.mxu1 %v489_v4  ;;  %v988_v58 = vrot.slane %v5538_v54, 2  ;;  %v914_v60 = vld [vmem:[%s5470_s22 + $0x38] sm:$0xfc]  ;;  %v5256_v51 = vld [vmem:[%s6876_s1 + $0x210] sm:$0xff]   ;;  %v927_v33 = vld [vmem:[%s5470_s22 + $0xe0] sm:$0x3] }
  0x3e   : > { %v987_v4 = vrot.slane %v914_v60, 2  ;;  %v996_v43 = vsel %vm973_vm1, %v994_v39, %v995_v26  ;;  %v924_v60 = vld [vmem:[%s5470_s22 + $0xb8] sm:$0x3]  ;;  %v1020_v39 = vrot.slane %v927_v33, 2  ;;  %v5270_v33 = vld [vmem:[%s6876_s1 + $0x1b0] sm:$0xff]  }
  0x3f   : > { %4639 = vmatpush3.bf16.msra.mxu1 %v5235_v30  ;;  %4703 = vmatpush3.bf16.msra.mxu0 %v5236_v31  ;;  %v912_v30 = vld [vmem:[%s5470_s22 + $0x28] sm:$0x3]  ;;  %v977_v31 = vrot.slane %v910_v27, 2  ;;  %v993_v10 = vsel %vm973_vm1, %v988_v58, %v992_v5  ;;  %v5792_v27 = vpack.c.bf16 %v5606_v44, %v210_v24  ;;  %v923_v5 = vld [vmem:[%s5470_s22 + $0xb0] sm:$0x3] }
  0x40   : > { %4640 = vmatprep.subr.bf16.mxu1 %v5237_v2  ;;  %4704 = vmatprep.subr.bf16.mxu0 %v5238_v8  ;;  %v982_v35 = vrot.slane %v912_v30, 2  ;;  %v985_v2 = vrot.slane %v5553_v0, 2  ;;  %v984_v8 = vrot.slane %v913_v6, 2  ;;  %v989_v54 = vsel %vm973_vm1, %v987_v4, %v988_v58  ;;  %v5252_v0 = vld [vmem:[%s6876_s1 + $0x208] sm:$0xff]   ;;  %v921_v4 = vld [vmem:[%s5470_s22 + $0x90] sm:$0xfc] }
  0x41   : > { %v979_v41 = vsel %vm973_vm1, %v977_v31, %v978_v22  ;;  %v1089_v13 = vpack.c.bf16 %v993_v10, %v989_v54  ;;  %v209_v31 = vld [vmem:[%s5470_s22 + $0x60] sm:$0xff]  ;;  %v213_v6 = vld [vmem:[%s5470_s22 + $0x90] sm:$0xff]  ;;  %v5257_v54 = vld [vmem:[%s6876_s1 + $0x1d8] sm:$0xff]  }
  0x42   : > { %676 = vmatmul.mubr.bf16.gmra.mrb[12].mxu0 %v480_v9  ;;  %708 = vmatmul.mubr.bf16.gmra.mrb[12].mxu1 %v488_v18  ;;  %v983_v45 = vsel %vm973_vm1, %v978_v22, %v982_v35  ;;  %v990_v9 = vrot.slane %v915_v7, 2  ;;  %v998_v22 = vrot.slane %v5606_v44, 2  ;;  %v919_v35 = vld [vmem:[%s5470_s22 + $0x80] sm:$0x3]  ;;  %v5253_v44 = vld [vmem:[%s6876_s1 + $0x1d0] sm:$0xff]   ;;  %v1004_v7 = vrot.slane %v921_v4, 2 }
  0x43   : > { %4641 = vmatpush3.bf16.msra.mxu1 %v5239_v12  ;;  %4705 = vmatpush3.bf16.msra.mxu0 %v5240_v15  ;;  %v1087_v48 = vpack.c.bf16 %v983_v45, %v979_v41  ;;  %v5249_v12 = vld [vmem:[%s6876_s1 + $0x1c8] sm:$0xff]   ;;  %v986_v15 = vsel %vm973_vm1, %v984_v8, %v985_v2  ;;  %v1000_v41 = vrot.slane %v919_v35, 2  ;;  %v1010_v8 = vrot.slane %v923_v5, 2 }
  0x44   : > { %4642 = vmatprep.subr.bf16.mxu1 %v5241_v19  ;;  %4706 = vmatprep.subr.bf16.mxu0 %v5242_v20  ;;  %v991_v18 = vsel %vm973_vm1, %v985_v2, %v990_v9  ;;  %v5250_v19 = vld [vmem:[%s6876_s1 + $0x188] sm:$0xff]   ;;  %v1012_v2 = vrot.slane %v924_v60, 2  ;;  %v931_v60 = vld [vmem:[%s5470_s22 + $0x110] sm:$0x3] }
  0x45   : > { %844 = vmatprep.mubr.bf16.mxu1 %v234_v28  ;;  %1263 = vmatprep.mubr.bf16.mxu0 %v1087_v48  ;;  %v1088_v20 = vpack.c.bf16 %v991_v18, %v986_v15  ;;  %v920_v28 = vld [vmem:[%s5470_s22 + $0x88] sm:$0x3]  ;;  %v1001_v46 = vsel %vm973_vm1, %v995_v26, %v1000_v41  ;;  %v5813_v48 = vpack.c.bf16 %v5615_v50, %v209_v31  ;;  %v1005_v50 = vrot.slane %v5677_v38, 2  ;;  %v5259_v15 = vld [vmem:[%s6876_s1 + $0x258] sm:$0xff]   ;;  %v5262_v41 = vld [vmem:[%s6876_s1 + $0x1a0] sm:$0xff]  }
  0x46   : > { %v1002_v34 = vrot.slane %v920_v28, 2  ;;  %v1018_v18 = vrot.slane %v5485_v17, 2  ;;  %v1015_v26 = vrot.slane %v5501_v29, 2 }
  0x47   : > { %4643 = vmatpush3.bf16.msra.mxu1 %v5243_v21  ;;  %4707 = vmatpush3.bf16.msra.mxu0 %v5244_v25  ;;  %v5251_v21 = vld [vmem:[%s6876_s1 + $0x248] sm:$0xff]  }
  0x48   : > { %4756 = vmatprep.subr.bf16.mxu1 %v5245_v11  ;;  %4820 = vmatprep.subr.bf16.mxu0 %v5247_v23  ;;  %v918_v25 = vld [vmem:[%s5470_s22 + $0x68] sm:$0xfc]  ;;  %v5254_v11 = vld [vmem:[%s6876_s1 + $0x190] sm:$0xff]   ;;  %v214_v23 = vld [vmem:[%s5470_s22 + $0x98] sm:$0xff] }
  0x49   : > { %v997_v30 = vrot.slane %v918_v25, 2  ;;  %v5821_v58 = vpack.c.bf16 %v5666_v32, %v214_v23  ;;  %v925_v25 = vld [vmem:[%s5470_s22 + $0xc0] sm:$0xfc]  ;;  %v932_v23 = vld [vmem:[%s5470_s22 + $0x118] sm:$0x3] }
  0x4a   : > { %845 = vmatmul.mubr.bf16.vlgmr.msra.gmra.mrb[16].mxu1 %v233_v42  ;;  %1264 = vmatmul.mubr.bf16.vlgmr.msra.gmra.mrb[16].mxu0 %v1086_v52  ;;  %v1003_v42 = vsel %vm973_vm1, %v998_v22, %v1002_v34  ;;  %v1008_v52 = vrot.slane %v5666_v32, 2  ;;  %v1014_v34 = vrot.slane %v925_v25, 2  ;;  %v935_v25 = vld [vmem:[%s5470_s22 + $0x140] sm:$0x3] }
  0x4b   : > { %4757 = vmatpush3.bf16.msra.mxu1 %v5246_v47  ;;  %852 = vmatprep.mubr.bf16.mxu1 %v236_v59  ;;  %v999_v40 = vsel %vm973_vm1, %v997_v30, %v998_v22  ;;  %v5255_v47 = vld [vmem:[%s6876_s1 + $0x250] sm:$0xff]   ;;  %v922_v59 = vld [vmem:[%s5470_s22 + $0x98] sm:$0xfc]  ;;  %v5853_v22 = vpack.c.bf16 %v5677_v38, %v213_v6  ;;  %v5261_v38 = vld [vmem:[%s6876_s1 + $0x1e0] sm:$0xff]  }
  0x4c   : > { %4821 = vmatpush3.bf16.msra.mxu0 %v5248_v55  ;;  %4758 = vmatprep.subr.bf16.mxu1 %v5249_v12  ;;  %v1091_v45 = vpack.c.bf16 %v1003_v42, %v999_v40  ;;  %v1090_v55 = vpack.c.bf16 %v1001_v46, %v996_v43  ;;  %v1007_v61 = vrot.slane %v922_v59, 2  ;;  %v1013_v32 = vsel %vm973_vm1, %v1008_v52, %v1012_v2  ;;  %v5258_v12 = vld [vmem:[%s6876_s1 + $0x198] sm:$0xff]   ;;  %v5874_v42 = vld [vmem:[%s5470_s22 + $0xc0] sm:$0xff]  ;;  %v929_v59 = vld [vmem:[%s5470_s22 + $0xf0] sm:$0xfc] }
  0x4d   : > { %1271 = vmatprep.mubr.bf16.mxu0 %v1089_v13  ;;  %4822 = vmatprep.subr.bf16.mxu0 %v5251_v21  ;;  %v1006_v13 = vsel %vm973_vm1, %v1004_v7, %v1005_v50  ;;  %v926_v21 = vld [vmem:[%s5470_s22 + $0xc8] sm:$0xfc]  ;;  %v1016_v43 = vsel %vm973_vm1, %v1014_v34, %v1015_v26  ;;  %v1028_v46 = vrot.slane %v5550_v63, 2  ;;  %v1025_v2 = vrot.slane %v5567_v16, 2 }
  0x4e   : > { %v1009_v9 = vsel %vm973_vm1, %v1007_v61, %v1008_v52  ;;  %v1017_v24 = vrot.slane %v926_v21, 2  ;;  %v1024_v7 = vrot.slane %v929_v59, 2 }
  0x4f   : > { %4759 = vmatpush3.bf16.msra.mxu1 %v5250_v19  ;;  %v1093_v10 = vpack.c.bf16 %v1013_v32, %v1009_v9  ;;  %v5260_v19 = vld [vmem:[%s6876_s1 + $0x218] sm:$0xff]   ;;  %v1030_v9 = vrot.slane %v931_v60, 2  ;;  %v5266_v32 = vld [vmem:[%s6876_s1 + $0x1a8] sm:$0xff]  }
  0x50   : > { %4823 = vmatpush3.bf16.msra.mxu0 %v5252_v0  ;;  %4760 = vmatprep.subr.bf16.mxu1 %v5253_v44  ;;  %v928_v0 = vld [vmem:[%s5470_s22 + $0xe8] sm:$0x3]  ;;  %v1019_v35 = vsel %vm973_vm1, %v1017_v24, %v1018_v18  ;;  %v5263_v44 = vld [vmem:[%s6876_s1 + $0x260] sm:$0xff]   ;;  %v5273_v60 = vld [vmem:[%s6876_s1 + $0x1f8] sm:$0xff]  }
  0x51   : > { %4824 = vmatprep.subr.bf16.mxu0 %v5255_v47  ;;  %v1022_v31 = vrot.slane %v928_v0, 2  ;;  %v5883_v47 = vld [vmem:[%s5470_s22 + $0xf8] sm:$0xff]  ;;  %v1031_v21 = vsel %vm973_vm1, %v1025_v2, %v1030_v9  ;;  %v5918_v0 = vld [vmem:[%s5470_s22 + $0x128] sm:$0xff] }
  0x52   : > { %853 = vmatmul.mubr.bf16.gmra.mrb[20].mxu1 %v235_v14  ;;  %1272 = vmatmul.mubr.bf16.gmra.mrb[20].mxu0 %v1088_v20  ;;  %v1011_v14 = vsel %vm973_vm1, %v1005_v50, %v1010_v8  ;;  %v5849_v20 = vld [vmem:[%s5470_s22 + $0xc8] sm:$0xff]  ;;  %v241_v50 = vpack.c.bf16 %v5501_v29, %v5874_v42  ;;  %v244_v4 = vpack.c.bf16 %v5550_v63, %v5883_v47  ;;  %v4127_v9 = vld [vmem:[%s5470_s22 + $0x38] sm:$0xfe] }
  0x53   : > { %860 = vmatprep.mubr.bf16.mxu1 %v5792_v27  ;;  %4761 = vmatpush3.bf16.msra.mxu1 %v5254_v11  ;;  %v1092_v28 = vpack.c.bf16 %v1011_v14, %v1006_v13  ;;  %v242_v30 = vpack.c.bf16 %v5485_v17, %v5849_v20  ;;  %v1023_v40 = vsel %vm973_vm1, %v1018_v18, %v1022_v31  ;;  %v5265_v29 = vld [vmem:[%s6876_s1 + $0x1e8] sm:$0xff]   ;;  %v5911_v13 = vld [vmem:[%s5470_s22 + $0xf0] sm:$0xff]  ;;  %v933_v18 = vld [vmem:[%s5470_s22 + $0x120] sm:$0xfc] }
  0x54   : > { %1279 = vmatprep.mubr.bf16.mxu0 %v1091_v45  ;;  %4825 = vmatpush3.bf16.msra.mxu0 %v5256_v51  ;;  %v1095_v17 = vpack.c.bf16 %v1023_v40, %v1019_v35  ;;  %v1021_v11 = vsel %vm973_vm1, %v1015_v26, %v1020_v39  ;;  %v5264_v45 = vld [vmem:[%s6876_s1 + $0x220] sm:$0xff]   ;;  %v930_v51 = vld [vmem:[%s5470_s22 + $0xf8] sm:$0xfc]  ;;  %v5267_v63 = vld [vmem:[%s6876_s1 + $0x268] sm:$0xff]   ;;  %v246_v35 = vpack.c.bf16 %v5612_v49, %v5918_v0  ;;  %v1035_v40 = vrot.slane %v5628_v3, 2 }
  0x55   : > { %4762 = vmatprep.subr.bf16.mxu1 %v5257_v54  ;;  %4826 = vmatprep.subr.bf16.mxu0 %v5259_v15  ;;  %v1027_v52 = vrot.slane %v930_v51, 2  ;;  %v1094_v61 = vpack.c.bf16 %v1021_v11, %v1016_v43  ;;  %v1038_v54 = vrot.slane %v5612_v49, 2  ;;  %v936_v14 = vld [vmem:[%s5470_s22 + $0x148] sm:$0x3]  ;;  %v5271_v39 = vld [vmem:[%s6876_s1 + $0x270] sm:$0xff]   ;;  %v1048_v43 = vrot.slane %v5674_v37, 2 }
  0x56   : > { %v1042_v24 = vrot.slane %v936_v14, 2  ;;  %v938_v49 = vld [vmem:[%s5470_s22 + $0x158] sm:$0xfc]  ;;  %v5944_v11 = vld [vmem:[%s5470_s22 + $0x120] sm:$0xff]  ;;  %v1737_v14 = vrot.slane %v4127_v9, 1 }
  0x57   : > { %4763 = vmatpush3.bf16.msra.mxu1 %v5258_v12  ;;  %v1029_v5 = vsel %vm973_vm1, %v1027_v52, %v1028_v46  ;;  %v934_v12 = vld [vmem:[%s5470_s22 + $0x128] sm:$0xfc]  ;;  %v939_v52 = vld [vmem:[%s5470_s22 + $0x170] sm:$0x3] }
  0x58   : > { %4827 = vmatpush3.bf16.msra.mxu0 %v5260_v19  ;;  %4764 = vmatprep.subr.bf16.mxu1 %v5261_v38  ;;  %v1037_v15 = vrot.slane %v934_v12, 2  ;;  %v1026_v19 = vsel %vm973_vm1, %v1024_v7, %v1025_v2  ;;  %v1043_v31 = vsel %vm973_vm1, %v1038_v54, %v1042_v24  ;;  %v1034_v38 = vrot.slane %v933_v18, 2  ;;  %v5274_v2 = vld [vmem:[%s6876_s1 + $0x1b8] sm:$0xff]   ;;  %v5981_v12 = vld [vmem:[%s5470_s22 + $0x150] sm:$0xff] }
  0x59   : > { %4828 = vmatprep.subr.bf16.mxu0 %v5263_v44  ;;  %v1096_v34 = vpack.c.bf16 %v1031_v21, %v1026_v19  ;;  %v940_v44 = vld [vmem:[%s5470_s22 + $0x178] sm:$0x3]  ;;  %v5985_v19 = vld [vmem:[%s5470_s22 + $0x40] sm:$0xff]  ;;  %v4126_v21 = vld [vmem:[%s5470_s22 + $0x30] sm:$0xfe] }
  0x5a   : > { %861 = vmatmul.mubr.bf16.gmra.mrb[24].mxu1 %v5813_v48  ;;  %1280 = vmatmul.mubr.bf16.gmra.mrb[24].mxu0 %v1090_v55  ;;  %v1032_v55 = vrot.slane %v932_v23, 2  ;;  %v1039_v26 = vsel %vm973_vm1, %v1037_v15, %v1038_v54  ;;  %v1052_v51 = vrot.slane %v940_v44, 2  ;;  %v937_v23 = vld [vmem:[%s5470_s22 + $0x150] sm:$0xfc]  ;;  %v1050_v54 = vrot.slane %v939_v52, 2 }
  0x5b   : > { %868 = vmatprep.mubr.bf16.mxu1 %v5821_v58  ;;  %1287 = vmatprep.mubr.bf16.mxu0 %v1093_v10  ;;  %v5268_v10 = vld [vmem:[%s6876_s1 + $0x228] sm:$0xff]   ;;  %v4136_v52 = vld [vmem:[%s5470_s22 + $0x80] sm:$0x1] }
  0x5c   : > { %4765 = vmatpush3.bf16.msra.mxu1 %v5262_v41  ;;  %4829 = vmatpush3.bf16.msra.mxu0 %v5264_v45  ;;  %v1033_v6 = vsel %vm973_vm1, %v1028_v46, %v1032_v55  ;;  %v1040_v41 = vrot.slane %v935_v25, 2  ;;  %v5947_v45 = vld [vmem:[%s5470_s22 + $0x158] sm:$0xff]  ;;  %v1047_v46 = vrot.slane %v938_v49, 2  ;;  %v1036_v55 = vsel %vm973_vm1, %v1034_v38, %v1035_v40 }
  0x5d   : > { %v1097_v8 = vpack.c.bf16 %v1033_v6, %v1029_v5  ;;  %4766 = vmatprep.subr.bf16.mxu1 %v5265_v29  ;;  %4830 = vmatprep.subr.bf16.mxu0 %v5267_v63  ;;  %v5275_v5 = vld [vmem:[%s6876_s1 + $0x278] sm:$0xff]   ;;  %v248_v7 = vpack.c.bf16 %v5674_v37, %v5947_v45  ;;  %v1045_v63 = vrot.slane %v5692_v56, 2  ;;  %v5277_v37 = vld [vmem:[%s6876_s1 + $0x2c0] sm:$0xff]  }
  0x5e   : > { %v1041_v59 = vsel %vm973_vm1, %v1035_v40, %v1040_v41  ;;  %v5276_v29 = vld [vmem:[%s6876_s1 + $0x238] sm:$0xff]   ;;  %v1735_v40 = vrot.slane %v5985_v19, 1 }
  0x5f   : > { %v1098_v6 = vpack.c.bf16 %v1041_v59, %v1036_v55  ;;  %v1051_v25 = vsel %vm973_vm1, %v1045_v63, %v1050_v54  ;;  %v4139_v55 = vld [vmem:[%s5470_s22 + $0x98] sm:$0xfe]  ;;  %v1380_v59 = vpack.c.bf16 %v5985_v19, %v5764_v62  ;;  %v5282_v62 = vld [vmem:[%s6876_s1 + $0x288] sm:$0xff]   ;;  %v4138_v54 = vld [vmem:[%s5470_s22 + $0x90] sm:$0xfe] }
  0x60   : > { %4767 = vmatpush3.bf16.msra.mxu1 %v5266_v32  ;;  %4831 = vmatpush3.bf16.msra.mxu0 %v5268_v10  ;;  %v1044_v32 = vrot.slane %v937_v23, 2  ;;  %v4131_v10 = vld [vmem:[%s5470_s22 + $0x58] sm:$0x1]  ;;  %v4132_v23 = vld [vmem:[%s5470_s22 + $0x60] sm:$0xfe]  ;;  %v1757_v9 = vrot.slane %v4139_v55, 1 }
  0x61   : > { %4832 = vmatprep.subr.bf16.mxu0 %v5271_v39  ;;  %v1742_v18 = vrot.slane %v4131_v10, 1  ;;  %v4137_v39 = vld [vmem:[%s5470_s22 + $0x88] sm:$0x1]  ;;  %v4142_v10 = vld [vmem:[%s5470_s22 + $0xb0] sm:$0x1]  ;;  %v5295_v55 = vld [vmem:[%s6876_s1 + $0x360] sm:$0xff]  }
  0x62   : > { %869 = vmatmul.mubr.bf16.gmra.mrb[28].mxu1 %v5853_v22  ;;  %1288 = vmatmul.mubr.bf16.gmra.mrb[28].mxu0 %v1092_v28  ;;  %v5269_v28 = vld [vmem:[%s6876_s1 + $0x1f0] sm:$0xff]   ;;  %v1046_v24 = vsel %vm973_vm1, %v1044_v32, %v1045_v63  ;;  %v5283_v32 = vld [vmem:[%s6876_s1 + $0x348] sm:$0xff]  }
  0x63   : > { %876 = vmatprep.mubr.bf16.mxu1 %v242_v30  ;;  %1295 = vmatprep.mubr.bf16.mxu0 %v1095_v17  ;;  %v243_v30 = vpack.c.bf16 %v5567_v16, %v5911_v13  ;;  %v1099_v16 = vpack.c.bf16 %v1043_v31, %v1039_v26  ;;  %v5272_v17 = vld [vmem:[%s6876_s1 + $0x230] sm:$0xff]   ;;  %v5279_v26 = vld [vmem:[%s6876_s1 + $0x340] sm:$0xff]   ;;  %v5284_v63 = vld [vmem:[%s6876_s1 + $0x308] sm:$0xff]  }
  0x64   : > { %4768 = vmatprep.subr.bf16.mxu1 %v5269_v28  ;;  %4833 = vmatpush3.bf16.msra.mxu0 %v5272_v17  ;;  %v4130_v31 = vld [vmem:[%s5470_s22 + $0x50] sm:$0x1]  ;;  %v1734_v17 = vrot.slane %v4126_v21, 1  ;;  %v6049_v21 = vld [vmem:[%s5470_s22 + $0xd8] sm:$0xff] }
  0x65   : > { %4769 = vmatpush3.bf16.msra.mxu1 %v5270_v33  ;;  %4834 = vmatprep.subr.bf16.mxu0 %v5275_v5  ;;  %v247_v33 = vpack.c.bf16 %v5692_v56, %v5981_v12  ;;  %v1740_v49 = vrot.slane %v4130_v31, 1  ;;  %v1744_v5 = vrot.slane %v4132_v23, 1 }
  0x66   : > { %4770 = vmatprep.subr.bf16.mxu1 %v5273_v60  ;;  %v5280_v60 = vld [vmem:[%s6876_s1 + $0x300] sm:$0xff]  }
  0x68   : > { %4835 = vmatpush3.bf16.msra.mxu0 %v5276_v29  ;;  %v5281_v29 = vld [vmem:[%s6876_s1 + $0x2c8] sm:$0xff]  }
  0x69   : > { %4771 = vmatpush3.bf16.msra.mxu1 %v5274_v2  ;;  %4948 = vmatprep.subr.bf16.mxu0 %v5279_v26  ;;  %v4143_v2 = vld [vmem:[%s5470_s22 + $0xb8] sm:$0x1] }
  0x6a   : > { %877 = vmatmul.mubr.bf16.gmra.mrb[32].mxu1 %v241_v50  ;;  %1296 = vmatmul.mubr.bf16.gmra.mrb[32].mxu0 %v1094_v61  ;;  %v1049_v50 = vsel %vm973_vm1, %v1047_v46, %v1048_v43  ;;  %v1053_v61 = vsel %vm973_vm1, %v1048_v43, %v1052_v51  ;;  %v1752_v43 = vrot.slane %v4137_v39, 1  ;;  %v1736_v46 = vsel %vm361_vm0, %v1734_v17, %v1735_v40  ;;  %v5278_v51 = vld [vmem:[%s6876_s1 + $0x280] sm:$0xff]  }
  0x6b   : > { %884 = vmatprep.mubr.bf16.mxu1 %v244_v4  ;;  %1303 = vmatprep.mubr.bf16.mxu0 %v1097_v8  ;;  %v245_v4 = vpack.c.bf16 %v5628_v3, %v5944_v11  ;;  %v5972_v8 = vld [vmem:[%s5470_s22 + $0x48] sm:$0xff]  ;;  %v1101_v3 = vpack.c.bf16 %v1053_v61, %v1049_v50  ;;  %v1768_v39 = vrot.slane %v6049_v21, 1  ;;  %v4148_v17 = vld [vmem:[%s5470_s22 + $0xe0] sm:$0x1] }
  0x6c   : > { %v1738_v15 = vrot.slane %v5972_v8, 1  ;;  %4884 = vmatprep.subr.bf16.mxu1 %v5277_v37  ;;  %v1381_v38 = vpack.c.bf16 %v5972_v8, %v5756_v57  ;;  %v1741_v57 = vsel %vm361_vm0, %v1735_v40, %v1740_v49  ;;  %v5285_v37 = vld [vmem:[%s6876_s1 + $0x2d0] sm:$0xff]   ;;  %v5290_v49 = vld [vmem:[%s6876_s1 + $0x298] sm:$0xff]  }
  0x6d   : > { %v6069_v40 = vld [vmem:[%s5470_s22 + $0xd0] sm:$0xff] }
  0x6e   : > { %v1739_v28 = vsel %vm361_vm0, %v1737_v14, %v1738_v15  ;;  %v5287_v14 = vld [vmem:[%s6876_s1 + $0x350] sm:$0xff]  }
  0x72   : > { %885 = vmatmul.mubr.bf16.gmra.mrb[36].mxu1 %v243_v30  ;;  %1304 = vmatmul.mubr.bf16.gmra.mrb[36].mxu0 %v1096_v34  ;;  %v1743_v30 = vsel %vm361_vm0, %v1738_v15, %v1742_v18  ;;  %v4133_v34 = vld [vmem:[%s5470_s22 + $0x68] sm:$0xfe]  ;;  %v1746_v15 = vsel %vm361_vm0, %v1744_v5, %v5625_v1 }
  0x73   : > { %892 = vmatprep.mubr.bf16.mxu1 %v246_v35  ;;  %1311 = vmatprep.mubr.bf16.mxu0 %v1099_v16  ;;  %v6000_v35 = vld [vmem:[%s5470_s22 + $0x78] sm:$0xff]  ;;  %v1100_v16 = vpack.c.bf16 %v1051_v25, %v1046_v24  ;;  %v1847_v41 = vpack.c.bf16 %v1743_v30, %v1739_v28  ;;  %v1747_v44 = vrot.slane %v4133_v34, 1  ;;  %v4145_v24 = vld [vmem:[%s5470_s22 + $0xc8] sm:$0xfe]  ;;  %v1759_v25 = vsel %vm361_vm0, %v1757_v9, %v5671_v36  ;;  %v4149_v28 = vld [vmem:[%s5470_s22 + $0xe8] sm:$0x1] }
  0x74   : > { %v1748_v56 = vrot.slane %v6000_v35, 1  ;;  %v1754_v30 = vrot.slane %v4138_v54, 1  ;;  %v1767_v34 = vrot.slane %v4145_v24, 1  ;;  %v4154_v9 = vld [vmem:[%s5470_s22 + $0x110] sm:$0x1]  ;;  %v6122_v54 = vld [vmem:[%s5470_s22 + $0x138] sm:$0xff] }
  0x75   : > { %v5300_v24 = vld [vmem:[%s6876_s1 + $0x328] sm:$0xff]  }
  0x76   : > { %v1749_v50 = vsel %vm361_vm0, %v1747_v44, %v1748_v56  ;;  %v1753_v61 = vsel %vm361_vm0, %v1748_v56, %v1752_v43  ;;  %v5291_v44 = vld [vmem:[%s6876_s1 + $0x358] sm:$0xff]   ;;  %v1756_v56 = vsel %vm361_vm0, %v1754_v30, %v5689_v53  ;;  %v1769_v23 = vsel %vm361_vm0, %v1767_v34, %v1768_v39 }
  0x77   : > { %v5292_v43 = vld [vmem:[%s6876_s1 + $0x318] sm:$0xff]  }
  0x7a   : > { %893 = vmatmul.mubr.bf16.gmra.mrb[40].mxu1 %v245_v4  ;;  %1312 = vmatmul.mubr.bf16.gmra.mrb[40].mxu0 %v1098_v6  ;;  %v1846_v4 = vpack.c.bf16 %v1741_v57, %v1736_v46  ;;  %v1750_v6 = vrot.slane %v4136_v52, 1  ;;  %v6088_v46 = vld [vmem:[%s5470_s22 + $0x108] sm:$0xff]  ;;  %v4151_v57 = vld [vmem:[%s5470_s22 + $0xf8] sm:$0xfe] }
  0x7b   : > { %900 = vmatprep.mubr.bf16.mxu1 %v248_v7  ;;  %1319 = vmatprep.mubr.bf16.mxu0 %v1101_v3  ;;  %v1849_v7 = vpack.c.bf16 %v1753_v61, %v1749_v50  ;;  %v1762_v3 = vrot.slane %v4143_v2, 1  ;;  %v1765_v50 = vrot.slane %v6069_v40, 1  ;;  %v1770_v61 = vrot.slane %v4148_v17, 1 }
  0x7c   : > { %v1751_v18 = vsel %vm361_vm0, %v5625_v1, %v1750_v6  ;;  %v1760_v1 = vrot.slane %v4142_v10, 1  ;;  %v1777_v5 = vrot.slane %v4151_v57, 1  ;;  %v1778_v6 = vrot.slane %v6088_v46, 1  ;;  %v4157_v10 = vld [vmem:[%s5470_s22 + $0x128] sm:$0xfe] }
  0x7d   : > { %v1763_v26 = vsel %vm361_vm0, %v5671_v36, %v1762_v3  ;;  %v5288_v36 = vld [vmem:[%s6876_s1 + $0x310] sm:$0xff]   ;;  %v5297_v3 = vld [vmem:[%s6876_s1 + $0x2e8] sm:$0xff]  }
  0x7e   : > { %v1851_v31 = vpack.c.bf16 %v1763_v26, %v1759_v25  ;;  %v1386_v25 = vpack.c.bf16 %v6069_v40, %v5874_v42  ;;  %v5301_v42 = vld [vmem:[%s6876_s1 + $0x2f0] sm:$0xff]  }
  0x82   : > { %901 = vmatmul.mubr.bf16.gmra.mrb[44].mxu1 %v247_v33  ;;  %1320 = vmatmul.mubr.bf16.gmra.mrb[44].mxu0 %v1100_v16  ;;  %v5286_v33 = vld [vmem:[%s6876_s1 + $0x290] sm:$0xff]   ;;  %v1772_v16 = vrot.slane %v4149_v28, 1  ;;  %v1389_v28 = vpack.c.bf16 %v6088_v46, %v5883_v47 }
  0x83   : > { %1557 = vmatprep.mubr.bf16.mxu1 %v1381_v38  ;;  %2023 = vmatprep.mubr.bf16.mxu0 %v1847_v41  ;;  %v5289_v38 = vld [vmem:[%s6876_s1 + $0x2d8] sm:$0xff]   ;;  %v4144_v41 = vld [vmem:[%s5470_s22 + $0xc0] sm:$0xfe]  ;;  %v6148_v47 = vld [vmem:[%s5470_s22 + $0x130] sm:$0xff] }
  0x8a   : > { %1558 = vmatmul.mubr.bf16.vlgmr.msra.gmra.mrb[48].mxu1 %v1380_v59  ;;  %2024 = vmatmul.mubr.bf16.vlgmr.msra.gmra.mrb[48].mxu0 %v1846_v4  ;;  %v1387_v59 = vpack.c.bf16 %v6049_v21, %v5849_v20  ;;  %v5294_v4 = vld [vmem:[%s6876_s1 + $0x2a0] sm:$0xff]  }
  0x8b   : > { %4885 = vmatpush3.bf16.msra.mxu1 %v5278_v51  ;;  %4949 = vmatpush3.bf16.msra.mxu0 %v5280_v60  ;;  %v4155_v51 = vld [vmem:[%s5470_s22 + $0x118] sm:$0x1]  ;;  %v1764_v60 = vrot.slane %v4144_v41, 1  ;;  %v5296_v20 = vld [vmem:[%s6876_s1 + $0x320] sm:$0xff]  }
  0x8c   : > { %1565 = vmatprep.mubr.bf16.mxu1 %v5792_v27  ;;  %2031 = vmatprep.mubr.bf16.mxu0 %v1849_v7  ;;  %v1848_v27 = vpack.c.bf16 %v1751_v18, %v1746_v15  ;;  %v1782_v7 = vrot.slane %v4155_v51, 1  ;;  %v4161_v18 = vld [vmem:[%s5470_s22 + $0x148] sm:$0x1]  ;;  %v4167_v51 = vld [vmem:[%s5470_s22 + $0x178] sm:$0x1] }
  0x8d   : > { %4886 = vmatprep.subr.bf16.mxu1 %v5281_v29  ;;  %4950 = vmatprep.subr.bf16.mxu0 %v5283_v32  ;;  %v6112_v29 = vld [vmem:[%s5470_s22 + $0x100] sm:$0xff]  ;;  %v1766_v32 = vsel %vm361_vm0, %v1764_v60, %v1765_v50  ;;  %v1792_v34 = vrot.slane %v4161_v18, 1 }
  0x8e   : > { %v1783_v15 = vsel %vm361_vm0, %v1778_v6, %v1782_v7  ;;  %v1775_v30 = vrot.slane %v6112_v29, 1 }
  0x8f   : > { %4887 = vmatpush3.bf16.msra.mxu1 %v5282_v62  ;;  %4951 = vmatpush3.bf16.msra.mxu0 %v5284_v63  ;;  %v4150_v62 = vld [vmem:[%s5470_s22 + $0xf0] sm:$0xfe]  ;;  %v1771_v63 = vsel %vm361_vm0, %v1765_v50, %v1770_v61 }
  0x90   : > { %4888 = vmatprep.subr.bf16.mxu1 %v5285_v37  ;;  %4952 = vmatprep.subr.bf16.mxu0 %v5287_v14  ;;  %v5299_v37 = vld [vmem:[%s6876_s1 + $0x368] sm:$0xff]   ;;  %v1779_v14 = vsel %vm361_vm0, %v1777_v5, %v1778_v6  ;;  %v1852_v26 = vpack.c.bf16 %v1771_v63, %v1766_v32  ;;  %v6185_v5 = vld [vmem:[%s5470_s22 + $0x160] sm:$0xff]  ;;  %v5308_v6 = vld [vmem:[%s6876_s1 + $0x338] sm:$0xff]  }
  0x92   : > { %1566 = vmatmul.mubr.bf16.gmra.mrb[52].mxu1 %v5813_v48  ;;  %2032 = vmatmul.mubr.bf16.gmra.mrb[52].mxu0 %v1848_v27  ;;  %v1761_v48 = vsel %vm361_vm0, %v5689_v53, %v1760_v1  ;;  %v5293_v53 = vld [vmem:[%s6876_s1 + $0x2e0] sm:$0xff]   ;;  %v1774_v27 = vrot.slane %v4150_v62, 1  ;;  %v1780_v1 = vrot.slane %v4154_v9, 1  ;;  %v4162_v62 = vld [vmem:[%s5470_s22 + $0x150] sm:$0xfe] }
  0x93   : > { %1573 = vmatprep.mubr.bf16.mxu1 %v5821_v58  ;;  %2039 = vmatprep.mubr.bf16.mxu0 %v1851_v31  ;;  %v1773_v58 = vsel %vm361_vm0, %v1768_v39, %v1772_v16  ;;  %v1850_v52 = vpack.c.bf16 %v1761_v48, %v1756_v56  ;;  %v1855_v31 = vpack.c.bf16 %v1783_v15, %v1779_v14  ;;  %v4156_v39 = vld [vmem:[%s5470_s22 + $0x120] sm:$0xfe]  ;;  %v4160_v16 = vld [vmem:[%s5470_s22 + $0x140] sm:$0x1]  ;;  %v4163_v56 = vld [vmem:[%s5470_s22 + $0x158] sm:$0xfe] }
  0x94   : > { %4889 = vmatpush3.bf16.msra.mxu1 %v5286_v33  ;;  %4953 = vmatpush3.bf16.msra.mxu0 %v5288_v36  ;;  %v1853_v2 = vpack.c.bf16 %v1773_v58, %v1769_v23  ;;  %v1787_v33 = vrot.slane %v4157_v10, 1  ;;  %v1788_v36 = vrot.slane %v6122_v54, 1  ;;  %v1776_v41 = vsel %vm361_vm0, %v1774_v27, %v1775_v30  ;;  %v5304_v48 = vld [vmem:[%s6876_s1 + $0x330] sm:$0xff]   ;;  %v4169_v10 = vld [vmem:[%s5470_s22 + $0x188] sm:$0xfe]  ;;  %v5309_v14 = vld [vmem:[%s6876_s1 + $0x3c0] sm:$0xff]  }
  0x95   : > { %4890 = vmatprep.subr.bf16.mxu1 %v5289_v38  ;;  %4954 = vmatprep.subr.bf16.mxu0 %v5291_v44  ;;  %v5302_v38 = vld [vmem:[%s6876_s1 + $0x2b0] sm:$0xff]   ;;  %v1781_v17 = vsel %vm361_vm0, %v1775_v30, %v1780_v1  ;;  %v6160_v44 = vld [vmem:[%s5470_s22 + $0x168] sm:$0xff]  ;;  %v1388_v23 = vpack.c.bf16 %v6112_v29, %v5911_v13  ;;  %v1790_v60 = vrot.slane %v4160_v16, 1  ;;  %v1797_v50 = vrot.slane %v4163_v56, 1  ;;  %v4225_v16 = vld [vmem:[%s5470_s22 + $0x58] sm:$0x3] }
  0x96   : > { %v1793_v57 = vsel %vm361_vm0, %v1788_v36, %v1792_v34  ;;  %v1854_v58 = vpack.c.bf16 %v1781_v17, %v1776_v41  ;;  %v1798_v61 = vrot.slane %v6160_v44, 1  ;;  %v4166_v9 = vld [vmem:[%s5470_s22 + $0x170] sm:$0x1]  ;;  %v1393_v18 = vpack.c.bf16 %v6160_v44, %v5947_v45  ;;  %v4075_v45 = vld [vmem:[%s5470_s22 + $0x188] sm:$0xff] }
  0x97   : > { %v1807_v27 = vrot.slane %v4169_v10, 1  ;;  %v1392_v17 = vpack.c.bf16 %v6185_v5, %v5981_v12  ;;  %v4224_v12 = vld [vmem:[%s5470_s22 + $0x50] sm:$0x3] }
  0x98   : > { %4891 = vmatpush3.bf16.msra.mxu1 %v5290_v49  ;;  %4955 = vmatpush3.bf16.msra.mxu0 %v5292_v43  ;;  %v5303_v49 = vld [vmem:[%s6876_s1 + $0x370] sm:$0xff]   ;;  %v1789_v43 = vsel %vm361_vm0, %v1787_v33, %v1788_v36  ;;  %v1799_v32 = vsel %vm361_vm0, %v1797_v50, %v1798_v61  ;;  %v4168_v33 = vld [vmem:[%s5470_s22 + $0x180] sm:$0xfe]  ;;  %v4172_v36 = vld [vmem:[%s5470_s22 + $0x1a0] sm:$0x1] }
  0x99   : > { %4892 = vmatprep.subr.bf16.mxu1 %v5293_v53  ;;  %4956 = vmatprep.subr.bf16.mxu0 %v5295_v55  ;;  %v1391_v53 = vpack.c.bf16 %v6122_v54, %v5918_v0  ;;  %v5305_v55 = vld [vmem:[%s6876_s1 + $0x2f8] sm:$0xff]   ;;  %v1857_v13 = vpack.c.bf16 %v1793_v57, %v1789_v43  ;;  %v1804_v43 = vrot.slane %v4168_v33, 1  ;;  %v5312_v33 = vld [vmem:[%s6876_s1 + $0x400] sm:$0xff]  }
  0x9a   : > { %1574 = vmatmul.mubr.bf16.gmra.mrb[56].mxu1 %v5853_v22  ;;  %2040 = vmatmul.mubr.bf16.gmra.mrb[56].mxu0 %v1850_v52  ;;  %v5298_v22 = vld [vmem:[%s6876_s1 + $0x2a8] sm:$0xff]   ;;  %v1784_v52 = vrot.slane %v4156_v39, 1  ;;  %v5306_v0 = vld [vmem:[%s6876_s1 + $0x2b8] sm:$0xff]  }
  0x9b   : > { %1581 = vmatprep.mubr.bf16.mxu1 %v1387_v59  ;;  %2047 = vmatprep.mubr.bf16.mxu0 %v1853_v2  ;;  %v1785_v59 = vrot.slane %v6148_v47, 1  ;;  %v1802_v2 = vrot.slane %v4167_v51, 1  ;;  %v4223_v39 = vld [vmem:[%s5470_s22 + $0x38] sm:$0xfc] }
  0x9c   : > { %4893 = vmatpush3.bf16.msra.mxu1 %v5294_v4  ;;  %4957 = vmatpush3.bf16.msra.mxu0 %v5296_v20  ;;  %v5307_v4 = vld [vmem:[%s6876_s1 + $0x378] sm:$0xff]  }
  0x9d   : > { %4894 = vmatprep.subr.bf16.mxu1 %v5297_v3  ;;  %4958 = vmatprep.subr.bf16.mxu0 %v5299_v37  ;;  %v1786_v7 = vsel %vm361_vm0, %v1784_v52, %v1785_v59  ;;  %v1791_v20 = vsel %vm361_vm0, %v1785_v59, %v1790_v60  ;;  %v6195_v3 = vld [vmem:[%s5470_s22 + $0x198] sm:$0xff]  ;;  %v1803_v63 = vsel %vm361_vm0, %v1798_v61, %v1802_v2  ;;  %v4074_v52 = vld [vmem:[%s5470_s22 + $0x180] sm:$0xff]  ;;  %v4227_v59 = vld [vmem:[%s5470_s22 + $0x68] sm:$0xfc] }
  0x9e   : > { %v1390_v37 = vpack.c.bf16 %v6148_v47, %v5944_v11  ;;  %v1856_v15 = vpack.c.bf16 %v1791_v20, %v1786_v7  ;;  %v5311_v11 = vld [vmem:[%s6876_s1 + $0x440] sm:$0xff]   ;;  %v1808_v30 = vrot.slane %v6195_v3, 1  ;;  %v4229_v2 = vld [vmem:[%s5470_s22 + $0x88] sm:$0x3] }
  0x9f   : > { %v2186_v10 = vrot.slane %v4229_v2, 2  ;;  %v5319_v2 = vld [vmem:[%s6876_s1 + $0x450] sm:$0xff]  }
  0xa0   : > { %4895 = vmatpush3.bf16.msra.mxu1 %v5298_v22  ;;  %4959 = vmatpush3.bf16.msra.mxu0 %v5300_v24  ;;  %v4173_v22 = vld [vmem:[%s5470_s22 + $0x1a8] sm:$0x1]  ;;  %v1794_v24 = vrot.slane %v4162_v62, 1  ;;  %v2174_v62 = vrot.slane %v4224_v12, 2  ;;  %v4230_v12 = vld [vmem:[%s5470_s22 + $0x90] sm:$0xfc] }
  0xa1   : > { %4896 = vmatprep.subr.bf16.mxu1 %v5301_v42  ;;  %4960 = vmatprep.subr.bf16.mxu0 %v5303_v49  ;;  %v1812_v1 = vrot.slane %v4173_v22, 1  ;;  %v2172_v49 = vrot.slane %v5972_v8, 2  ;;  %v4305_v8 = vld [vmem:[%s5470_s22 + $0x68] sm:$0xff]  ;;  %v4226_v22 = vld [vmem:[%s5470_s22 + $0x60] sm:$0xfc] }
  0xa2   : > { %1582 = vmatmul.mubr.bf16.gmra.mrb[60].mxu1 %v1386_v25  ;;  %2048 = vmatmul.mubr.bf16.gmra.mrb[60].mxu0 %v1852_v26  ;;  %v1795_v25 = vrot.slane %v6185_v5, 1  ;;  %v1859_v26 = vpack.c.bf16 %v1803_v63, %v1799_v32  ;;  %v2181_v32 = vrot.slane %v4227_v59, 2  ;;  %v2182_v63 = vrot.slane %v6000_v35, 2  ;;  %v5317_v59 = vld [vmem:[%s6876_s1 + $0x3d0] sm:$0xff]  }
  0xa3   : > { %1589 = vmatprep.mubr.bf16.mxu1 %v1389_v28  ;;  %2055 = vmatprep.mubr.bf16.mxu0 %v1855_v31  ;;  %v1800_v28 = vrot.slane %v4166_v9, 1  ;;  %v6215_v31 = vld [vmem:[%s5470_s22 + $0x190] sm:$0xff]  ;;  %v1813_v41 = vsel %vm361_vm0, %v1808_v30, %v1812_v1  ;;  %v2575_v9 = vpack.c.bf16 %v6000_v35, %v4305_v8  ;;  %v4231_v35 = vld [vmem:[%s5470_s22 + $0x98] sm:$0xfc] }
  0xa4   : > { %4897 = vmatpush3.bf16.msra.mxu1 %v5302_v38  ;;  %4961 = vmatpush3.bf16.msra.mxu0 %v5304_v48  ;;  %v1796_v34 = vsel %vm361_vm0, %v1794_v24, %v1795_v25  ;;  %v1809_v38 = vsel %vm361_vm0, %v1807_v27, %v1808_v30  ;;  %v6229_v48 = vpack.c.bf16 %v6195_v3, %v4075_v45  ;;  %v1805_v57 = vrot.slane %v6215_v31, 1  ;;  %v4233_v24 = vld [vmem:[%s5470_s22 + $0xb8] sm:$0x3]  ;;  %v5342_v30 = vld [vmem:[%s5470_s22 + $0xa8] sm:$0xff]  ;;  %v4232_v8 = vld [vmem:[%s5470_s22 + $0xb0] sm:$0x3] }
  0xa5   : > { %4898 = vmatprep.subr.bf16.mxu1 %v5305_v55  ;;  %4962 = vmatprep.subr.bf16.mxu0 %v5307_v4  ;;  %v1801_v42 = vsel %vm361_vm0, %v1795_v25, %v1800_v28  ;;  %v1861_v51 = vpack.c.bf16 %v1813_v41, %v1809_v38  ;;  %v4222_v55 = vld [vmem:[%s5470_s22 + $0x30] sm:$0xfc]  ;;  %v2169_v4 = vrot.slane %v5985_v19, 2  ;;  %v4304_v19 = vld [vmem:[%s5470_s22 + $0x60] sm:$0xff]  ;;  %v2187_v28 = vsel %vm973_vm1, %v2182_v63, %v2186_v10 }
  0xa6   : > { %v1858_v56 = vpack.c.bf16 %v1801_v42, %v1796_v34  ;;  %v1806_v60 = vsel %vm361_vm0, %v1804_v43, %v1805_v57  ;;  %v2168_v20 = vrot.slane %v4222_v55, 2  ;;  %v5310_v25 = vld [vmem:[%s6876_s1 + $0x380] sm:$0xff]   ;;  %v2192_v1 = vrot.slane %v5342_v30, 2  ;;  %v6272_v34 = vld [vmem:[%s5470_s22 + $0xa8] sm:$0xff]  ;;  %v4308_v43 = vld [vmem:[%s5470_s22 + $0x90] sm:$0xff] }
  0xa7   : > { %v2178_v42 = vrot.slane %v4226_v22, 2  ;;  %v2191_v38 = vrot.slane %v4231_v35, 2  ;;  %v2196_v41 = vrot.slane %v4233_v24, 2  ;;  %v4313_v55 = vld [vmem:[%s5470_s22 + $0xc8] sm:$0xff]  ;;  %v5318_v10 = vld [vmem:[%s6876_s1 + $0x390] sm:$0xff]   ;;  %v4312_v35 = vld [vmem:[%s5470_s22 + $0xc0] sm:$0xff] }
  0xa8   : > { %4899 = vmatpush3.bf16.msra.mxu1 %v5306_v0  ;;  %4963 = vmatpush3.bf16.msra.mxu0 %v5308_v6  ;;  %v6244_v0 = vpack.c.bf16 %v6215_v31, %v4074_v52  ;;  %v4234_v24 = vld [vmem:[%s5470_s22 + $0xc0] sm:$0xfc]  ;;  %v5324_v30 = vld [vmem:[%s6876_s1 + $0x418] sm:$0xff]  }
  0xa9   : > { %5012 = vmatprep.subr.bf16.mxu1 %v5309_v14  ;;  %5076 = vmatprep.subr.bf16.mxu0 %v5311_v11  ;;  %v2175_v14 = vsel %vm973_vm1, %v2169_v4, %v2174_v62  ;;  %v5341_v11 = vld [vmem:[%s5470_s22 + $0x70] sm:$0xff] }
  0xaa   : > { %1590 = vmatmul.mubr.bf16.gmra.mrb[64].mxu1 %v1388_v23  ;;  %2056 = vmatmul.mubr.bf16.gmra.mrb[64].mxu0 %v1854_v58  ;;  %v1810_v23 = vrot.slane %v4172_v36, 1  ;;  %v2171_v58 = vrot.slane %v4223_v39, 2  ;;  %v2179_v27 = vrot.slane %v5341_v11, 2  ;;  %v4309_v36 = vld [vmem:[%s5470_s22 + $0x98] sm:$0xff] }
  0xab   : > { %1597 = vmatprep.mubr.bf16.mxu1 %v1391_v53  ;;  %2063 = vmatprep.mubr.bf16.mxu0 %v1857_v13  ;;  %v2176_v53 = vrot.slane %v4225_v16, 2 }
  0xac   : > { %v1811_v50 = vsel %vm361_vm0, %v1805_v57, %v1810_v23  ;;  %v2173_v61 = vsel %vm973_vm1, %v2171_v58, %v2172_v49  ;;  %v6281_v57 = vld [vmem:[%s5470_s22 + $0xa0] sm:$0xff]  ;;  %v5315_v23 = vld [vmem:[%s6876_s1 + $0x448] sm:$0xff]  }
  0xad   : > { %v2177_v13 = vsel %vm973_vm1, %v2172_v49, %v2176_v53  ;;  %v1860_v6 = vpack.c.bf16 %v1811_v50, %v1806_v60  ;;  %v2577_v49 = vpack.c.bf16 %v6272_v34, %v4309_v36  ;;  %v5316_v58 = vld [vmem:[%s6876_s1 + $0x408] sm:$0xff]   ;;  %v2180_v53 = vsel %vm973_vm1, %v2178_v42, %v2179_v27  ;;  %v4241_v36 = vld [vmem:[%s5470_s22 + $0x118] sm:$0x3]  ;;  %v5325_v42 = vld [vmem:[%s6876_s1 + $0x3e0] sm:$0xff]  }
  0xae   : > { %v2281_v7 = vpack.c.bf16 %v2177_v13, %v2173_v61  ;;  %v2193_v60 = vsel %vm973_vm1, %v2191_v38, %v2192_v1  ;;  %v2197_v50 = vsel %vm973_vm1, %v2192_v1, %v2196_v41  ;;  %v5343_v61 = vld [vmem:[%s5470_s22 + $0xa0] sm:$0xff]  ;;  %v4239_v1 = vld [vmem:[%s5470_s22 + $0xf8] sm:$0xfc]  ;;  %v2578_v41 = vpack.c.bf16 %v6069_v40, %v4312_v35 }
  0xaf   : > { %v2189_v13 = vrot.slane %v5343_v61, 2  ;;  %v2285_v62 = vpack.c.bf16 %v2197_v50, %v2193_v60  ;;  %v5327_v38 = vld [vmem:[%s6876_s1 + $0x460] sm:$0xff]   ;;  %v4321_v50 = vld [vmem:[%s5470_s22 + $0x128] sm:$0xff] }
  0xb0   : > { %v4243_v61 = vld [vmem:[%s5470_s22 + $0x128] sm:$0xfc] }
  0xb2   : > { %1598 = vmatmul.mubr.bf16.gmra.mrb[68].mxu1 %v1390_v37  ;;  %2064 = vmatmul.mubr.bf16.gmra.mrb[68].mxu0 %v1856_v15  ;;  %v2170_v37 = vsel %vm973_vm1, %v2168_v20, %v2169_v4  ;;  %v4228_v15 = vld [vmem:[%s5470_s22 + $0x80] sm:$0x3]  ;;  %v4235_v4 = vld [vmem:[%s5470_s22 + $0xc8] sm:$0xfc]  ;;  %v2576_v20 = vpack.c.bf16 %v6281_v57, %v4308_v43 }
  0xb3   : > { %1605 = vmatprep.mubr.bf16.mxu1 %v1393_v18  ;;  %2071 = vmatprep.mubr.bf16.mxu0 %v1859_v26  ;;  %v6256_v18 = vld [vmem:[%s5470_s22 + $0x70] sm:$0xff]  ;;  %v2183_v26 = vsel %vm973_vm1, %v2181_v32, %v2182_v63  ;;  %v2280_v45 = vpack.c.bf16 %v2175_v14, %v2170_v37  ;;  %v2184_v39 = vrot.slane %v4228_v15, 2  ;;  %v2194_v32 = vrot.slane %v4232_v8, 2  ;;  %v5321_v15 = vld [vmem:[%s6876_s1 + $0x3d8] sm:$0xff]   ;;  %v5331_v8 = vld [vmem:[%s6876_s1 + $0x468] sm:$0xff]  }
  0xb4   : > { %v2574_v16 = vpack.c.bf16 %v6256_v18, %v4304_v19  ;;  %v2579_v63 = vpack.c.bf16 %v6049_v21, %v4313_v55  ;;  %v2201_v22 = vrot.slane %v4235_v4, 2  ;;  %v2202_v19 = vrot.slane %v6049_v21, 2  ;;  %v5320_v14 = vld [vmem:[%s6876_s1 + $0x410] sm:$0xff]   ;;  %v5322_v21 = vld [vmem:[%s6876_s1 + $0x398] sm:$0xff]   ;;  %v5330_v4 = vld [vmem:[%s6876_s1 + $0x3a8] sm:$0xff]  }
  0xb5   : > { %v2185_v52 = vsel %vm973_vm1, %v2179_v27, %v2184_v39  ;;  %v2195_v11 = vsel %vm973_vm1, %v2189_v13, %v2194_v32  ;;  %v4317_v27 = vld [vmem:[%s5470_s22 + $0xf8] sm:$0xff]  ;;  %v4316_v55 = vld [vmem:[%s5470_s22 + $0xf0] sm:$0xff] }
  0xb6   : > { %v2581_v43 = vpack.c.bf16 %v6088_v46, %v4317_v27  ;;  %v5335_v32 = vld [vmem:[%s6876_s1 + $0x470] sm:$0xff]  }
  0xba   : > { %1606 = vmatmul.mubr.bf16.gmra.mrb[72].mxu1 %v1392_v17  ;;  %2072 = vmatmul.mubr.bf16.gmra.mrb[72].mxu0 %v1858_v56  ;;  %v2283_v17 = vpack.c.bf16 %v2187_v28, %v2183_v26  ;;  %v5313_v56 = vld [vmem:[%s6876_s1 + $0x3c8] sm:$0xff]   ;;  %v5323_v26 = vld [vmem:[%s6876_s1 + $0x458] sm:$0xff]  }
  0xbb   : > { %1613 = vmatprep.mubr.bf16.mxu1 %v6229_v48  ;;  %2079 = vmatprep.mubr.bf16.mxu0 %v1861_v51  ;;  %v5314_v51 = vld [vmem:[%s6876_s1 + $0x388] sm:$0xff]  }
  0xc2   : > { %1614 = vmatmul.mubr.bf16.gmra.mrb[76].mxu1 %v6244_v0  ;;  %2080 = vmatmul.mubr.bf16.gmra.mrb[76].mxu0 %v1860_v6  ;;  %v4237_v6 = vld [vmem:[%s5470_s22 + $0xe8] sm:$0x3] }
  0xc3   : > { %2457 = vmatprep.mubr.bf16.mxu1 %v2281_v7  ;;  %2751 = vmatprep.mubr.bf16.mxu0 %v2575_v9  ;;  %v2282_v7 = vpack.c.bf16 %v2185_v52, %v2180_v53  ;;  %v2188_v9 = vrot.slane %v4230_v12, 2  ;;  %v2206_v37 = vrot.slane %v4237_v6, 2  ;;  %v5326_v53 = vld [vmem:[%s6876_s1 + $0x3a0] sm:$0xff]   ;;  %v5329_v52 = vld [vmem:[%s6876_s1 + $0x3e8] sm:$0xff]   ;;  %v4240_v12 = vld [vmem:[%s5470_s22 + $0x110] sm:$0x3] }
  0xc4   : > { %v4245_v6 = vld [vmem:[%s5470_s22 + $0x148] sm:$0x3] }
  0xc5   : > { %v2190_v28 = vsel %vm973_vm1, %v2188_v9, %v2189_v13  ;;  %v2209_v9 = vrot.slane %v6112_v29, 2  ;;  %v2226_v35 = vrot.slane %v4245_v6, 2  ;;  %v2242_v6 = vrot.slane %v6195_v3, 2 }
  0xc6   : > { %v2284_v39 = vpack.c.bf16 %v2195_v11, %v2190_v28  ;;  %v4320_v28 = vld [vmem:[%s5470_s22 + $0x120] sm:$0xff]  ;;  %v4325_v11 = vld [vmem:[%s5470_s22 + $0x158] sm:$0xff] }
  0xca   : > { %2458 = vmatmul.mubr.bf16.vlgmr.msra.gmra.mrb[80].mxu1 %v2280_v45  ;;  %2752 = vmatmul.mubr.bf16.vlgmr.msra.gmra.mrb[80].mxu0 %v2574_v16  ;;  %v2203_v45 = vsel %vm973_vm1, %v2201_v22, %v2202_v19  ;;  %v2199_v16 = vrot.slane %v6069_v40, 2  ;;  %v5328_v40 = vld [vmem:[%s6876_s1 + $0x420] sm:$0xff]  }
  0xcb   : > { %5013 = vmatpush3.bf16.msra.mxu1 %v5310_v25  ;;  %5077 = vmatpush3.bf16.msra.mxu0 %v5312_v33  ;;  %v4236_v25 = vld [vmem:[%s5470_s22 + $0xe0] sm:$0x3]  ;;  %v2207_v33 = vsel %vm973_vm1, %v2202_v19, %v2206_v37  ;;  %v2214_v19 = vrot.slane %v4240_v12, 2  ;;  %v2583_v37 = vpack.c.bf16 %v6122_v54, %v4321_v50  ;;  %v4251_v12 = vld [vmem:[%s5470_s22 + $0x188] sm:$0xfc]  ;;  %v2229_v50 = vrot.slane %v6185_v5, 2 }
  0xcc   : > { %2465 = vmatprep.mubr.bf16.mxu1 %v2283_v17  ;;  %2759 = vmatprep.mubr.bf16.mxu0 %v2577_v49  ;;  %v2287_v17 = vpack.c.bf16 %v2207_v33, %v2203_v45  ;;  %v2198_v49 = vrot.slane %v4234_v24, 2  ;;  %v5334_v24 = vld [vmem:[%s6876_s1 + $0x3b0] sm:$0xff]   ;;  %v4244_v45 = vld [vmem:[%s5470_s22 + $0x140] sm:$0x3]  ;;  %v5338_v33 = vld [vmem:[%s6876_s1 + $0x3b8] sm:$0xff]  }
  0xcd   : > { %5014 = vmatprep.subr.bf16.mxu1 %v5313_v56  ;;  %5078 = vmatprep.subr.bf16.mxu0 %v5315_v23  ;;  %v2204_v56 = vrot.slane %v4236_v25, 2  ;;  %v2212_v23 = vrot.slane %v6088_v46, 2  ;;  %v4238_v46 = vld [vmem:[%s5470_s22 + $0xf0] sm:$0xfc]  ;;  %v5337_v25 = vld [vmem:[%s6876_s1 + $0x3f8] sm:$0xff]  }
  0xce   : > { %v2208_v22 = vrot.slane %v4238_v46, 2 }
  0xcf   : > { %5015 = vmatpush3.bf16.msra.mxu1 %v5314_v51  ;;  %5079 = vmatpush3.bf16.msra.mxu0 %v5316_v58  ;;  %v2211_v51 = vrot.slane %v4239_v1, 2  ;;  %v2216_v58 = vrot.slane %v4241_v36, 2  ;;  %v2205_v60 = vsel %vm973_vm1, %v2199_v16, %v2204_v56  ;;  %v4242_v1 = vld [vmem:[%s5470_s22 + $0x120] sm:$0xfc]  ;;  %v4247_v36 = vld [vmem:[%s5470_s22 + $0x158] sm:$0xfc] }
  0xd0   : > { %5016 = vmatprep.subr.bf16.mxu1 %v5317_v59  ;;  %5080 = vmatprep.subr.bf16.mxu0 %v5319_v2  ;;  %v2200_v59 = vsel %vm973_vm1, %v2198_v49, %v2199_v16  ;;  %v2218_v49 = vrot.slane %v4242_v1, 2  ;;  %v2224_v56 = vrot.slane %v4244_v45, 2  ;;  %v4483_v1 = vld [vmem:[%s5470_s22 + $0x88] sm:$0x3] }
  0xd1   : > { %v2213_v13 = vsel %vm973_vm1, %v2211_v51, %v2212_v23  ;;  %v2217_v2 = vsel %vm973_vm1, %v2212_v23, %v2216_v58  ;;  %v2231_v51 = vrot.slane %v4247_v36, 2  ;;  %v2232_v23 = vrot.slane %v6160_v44, 2 }
  0xd2   : > { %2466 = vmatmul.mubr.bf16.gmra.mrb[84].mxu1 %v2282_v7  ;;  %2760 = vmatmul.mubr.bf16.gmra.mrb[84].mxu0 %v2576_v20  ;;  %v5332_v7 = vld [vmem:[%s6876_s1 + $0x428] sm:$0xff]   ;;  %v5333_v20 = vld [vmem:[%s6876_s1 + $0x3f0] sm:$0xff]  }
  0xd3   : > { %2473 = vmatprep.mubr.bf16.mxu1 %v2285_v62  ;;  %2767 = vmatprep.mubr.bf16.mxu0 %v2579_v63  ;;  %v2286_v62 = vpack.c.bf16 %v2205_v60, %v2200_v59  ;;  %v2580_v63 = vpack.c.bf16 %v6112_v29, %v4316_v55  ;;  %v5336_v29 = vld [vmem:[%s6876_s1 + $0x430] sm:$0xff]   ;;  %v2233_v46 = vsel %vm973_vm1, %v2231_v51, %v2232_v23  ;;  %v3363_v51 = vrot.slane %v6256_v18, 2 }
  0xd4   : > { %5017 = vmatpush3.bf16.msra.mxu1 %v5318_v10  ;;  %5081 = vmatpush3.bf16.msra.mxu0 %v5320_v14  ;;  %v2289_v10 = vpack.c.bf16 %v2217_v2, %v2213_v13  ;;  %v2221_v14 = vrot.slane %v4243_v61, 2  ;;  %v4324_v55 = vld [vmem:[%s5470_s22 + $0x150] sm:$0xff] }
  0xd5   : > { %5018 = vmatprep.subr.bf16.mxu1 %v5321_v15  ;;  %5082 = vmatprep.subr.bf16.mxu0 %v5323_v26  ;;  %v2222_v15 = vrot.slane %v6122_v54, 2  ;;  %v5339_v54 = vld [vmem:[%s6876_s1 + $0x478] sm:$0xff]   ;;  %v2215_v26 = vsel %vm973_vm1, %v2209_v9, %v2214_v19  ;;  %v2584_v13 = vpack.c.bf16 %v6185_v5, %v4324_v55  ;;  %v4252_v5 = vld [vmem:[%s5470_s22 + $0x1a0] sm:$0x3]  ;;  %v4332_v55 = vld [vmem:[%s5470_s22 + $0x1b0] sm:$0xff] }
  0xd7   : > { %v2223_v27 = vsel %vm973_vm1, %v2221_v14, %v2222_v15  ;;  %v4387_v14 = vld [vmem:[%s5470_s22 + $0x78] sm:$0xff] }
  0xd8   : > { %5019 = vmatpush3.bf16.msra.mxu1 %v5322_v21  ;;  %5083 = vmatpush3.bf16.msra.mxu0 %v5324_v30  ;;  %v2210_v21 = vsel %vm973_vm1, %v2208_v22, %v2209_v9  ;;  %v2227_v30 = vsel %vm973_vm1, %v2222_v15, %v2226_v35  ;;  %v4333_v9 = vld [vmem:[%s5470_s22 + $0x1b8] sm:$0xff]  ;;  %v4389_v15 = vld [vmem:[%s5470_s22 + $0x88] sm:$0x1] }
  0xd9   : > { %5020 = vmatprep.subr.bf16.mxu1 %v5325_v42  ;;  %5084 = vmatprep.subr.bf16.mxu0 %v5327_v38  ;;  %v4249_v42 = vld [vmem:[%s5470_s22 + $0x178] sm:$0x3]  ;;  %v2288_v16 = vpack.c.bf16 %v2215_v26, %v2210_v21  ;;  %v2219_v38 = vrot.slane %v6148_v47, 2  ;;  %v4481_v21 = vld [vmem:[%s5470_s22 + $0x68] sm:$0xfc] }
  0xda   : > { %2474 = vmatmul.mubr.bf16.gmra.mrb[88].mxu1 %v2284_v39  ;;  %2768 = vmatmul.mubr.bf16.gmra.mrb[88].mxu0 %v2578_v41  ;;  %v5340_v39 = vld [vmem:[%s6876_s1 + $0x438] sm:$0xff]   ;;  %v2582_v41 = vpack.c.bf16 %v6148_v47, %v4320_v28  ;;  %v2236_v58 = vrot.slane %v4249_v42, 2 }
  0xdb   : > { %2481 = vmatprep.mubr.bf16.mxu1 %v2287_v17  ;;  %2775 = vmatprep.mubr.bf16.mxu0 %v2581_v43  ;;  %v2291_v17 = vpack.c.bf16 %v2227_v30, %v2223_v27  ;;  %v2585_v43 = vpack.c.bf16 %v6160_v44, %v4325_v11  ;;  %v2220_v47 = vsel %vm973_vm1, %v2218_v49, %v2219_v38  ;;  %v2244_v30 = vrot.slane %v4252_v5, 2  ;;  %v4384_v49 = vld [vmem:[%s5470_s22 + $0x60] sm:$0xfe] }
  0xdc   : > { %5021 = vmatpush3.bf16.msra.mxu1 %v5326_v53  ;;  %5085 = vmatpush3.bf16.msra.mxu0 %v5328_v40  ;;  %v2225_v53 = vsel %vm973_vm1, %v2219_v38, %v2224_v56  ;;  %v4246_v40 = vld [vmem:[%s5470_s22 + $0x150] sm:$0xfc]  ;;  %v2237_v44 = vsel %vm973_vm1, %v2232_v23, %v2236_v58  ;;  %v3370_v56 = vrot.slane %v4483_v1, 2  ;;  %v2942_v23 = vrot.slane %v6272_v34, 1  ;;  %v4388_v58 = vld [vmem:[%s5470_s22 + $0x80] sm:$0x1] }
  0xdd   : > { %5022 = vmatprep.subr.bf16.mxu1 %v5329_v52  ;;  %5086 = vmatprep.subr.bf16.mxu0 %v5331_v8  ;;  %v4248_v52 = vld [vmem:[%s5470_s22 + $0x170] sm:$0x3]  ;;  %v4253_v8 = vld [vmem:[%s5470_s22 + $0x1a8] sm:$0x3]  ;;  %v2290_v59 = vpack.c.bf16 %v2225_v53, %v2220_v47  ;;  %v2228_v60 = vrot.slane %v4246_v40, 2  ;;  %v2293_v2 = vpack.c.bf16 %v2237_v44, %v2233_v46  ;;  %v6469_v46 = vld [vmem:[%s5470_s22 + $0x1c0] sm:$0xff] }
  0xde   : > { %v2234_v61 = vrot.slane %v4248_v52, 2  ;;  %v4480_v47 = vld [vmem:[%s5470_s22 + $0x60] sm:$0xfc]  ;;  %v4482_v53 = vld [vmem:[%s5470_s22 + $0x80] sm:$0x3]  ;;  %v2928_v44 = vrot.slane %v4384_v49, 1 }
  0xdf   : > { %v4486_v1 = vld [vmem:[%s5470_s22 + $0xb0] sm:$0x3]  ;;  %v4397_v49 = vld [vmem:[%s5470_s22 + $0xc8] sm:$0xfe] }
  0xe0   : > { %5023 = vmatpush3.bf16.msra.mxu1 %v5330_v4  ;;  %5087 = vmatpush3.bf16.msra.mxu0 %v5332_v7  ;;  %v2241_v4 = vrot.slane %v4251_v12, 2  ;;  %v2246_v7 = vrot.slane %v4253_v8, 2 }
  0xe1   : > { %5024 = vmatprep.subr.bf16.mxu1 %v5333_v20  ;;  %5088 = vmatprep.subr.bf16.mxu0 %v5335_v32  ;;  %v2230_v20 = vsel %vm973_vm1, %v2228_v60, %v2229_v50  ;;  %v6435_v32 = vld [vmem:[%s5470_s22 + $0x1c8] sm:$0xff] }
  0xe2   : > { %2482 = vmatmul.mubr.bf16.gmra.mrb[92].mxu1 %v2286_v62  ;;  %2776 = vmatmul.mubr.bf16.gmra.mrb[92].mxu0 %v2580_v63  ;;  %v2235_v62 = vsel %vm973_vm1, %v2229_v50, %v2234_v61  ;;  %v4250_v63 = vld [vmem:[%s5470_s22 + $0x180] sm:$0xfc]  ;;  %v2243_v19 = vsel %vm973_vm1, %v2241_v4, %v2242_v6  ;;  %v4391_v50 = vld [vmem:[%s5470_s22 + $0x98] sm:$0xfe]  ;;  %v4395_v61 = vld [vmem:[%s5470_s22 + $0xb8] sm:$0x1] }
  0xe3   : > { %2489 = vmatprep.mubr.bf16.mxu1 %v2289_v10  ;;  %2783 = vmatprep.mubr.bf16.mxu0 %v2583_v37  ;;  %v4385_v10 = vld [vmem:[%s5470_s22 + $0x68] sm:$0xfe]  ;;  %v2247_v37 = vsel %vm973_vm1, %v2242_v6, %v2246_v7  ;;  %v2292_v35 = vpack.c.bf16 %v2235_v62, %v2230_v20  ;;  %v2238_v27 = vrot.slane %v4250_v63, 2  ;;  %v2934_v6 = vrot.slane %v4388_v58, 1 }
  0xe4   : > { %5025 = vmatpush3.bf16.msra.mxu1 %v5334_v24  ;;  %5089 = vmatpush3.bf16.msra.mxu0 %v5336_v29  ;;  %v2295_v36 = vpack.c.bf16 %v2247_v37, %v2243_v19  ;;  %v2931_v42 = vrot.slane %v4385_v10, 1  ;;  %v3368_v7 = vrot.slane %v4482_v53, 2  ;;  %v4485_v10 = vld [vmem:[%s5470_s22 + $0x98] sm:$0xfc]  ;;  %v3373_v58 = vrot.slane %v6281_v57, 2 }
  0xe5   : > { %5026 = vmatprep.subr.bf16.mxu1 %v5337_v25  ;;  %5090 = vmatprep.subr.bf16.mxu0 %v5339_v54  ;;  %v2589_v25 = vpack.c.bf16 %v6435_v32, %v4333_v9  ;;  %v2239_v54 = vrot.slane %v6215_v31, 2  ;;  %v2936_v31 = vrot.slane %v4389_v15, 1  ;;  %v2941_v15 = vrot.slane %v4391_v50, 1  ;;  %v4401_v53 = vld [vmem:[%s5470_s22 + $0xe8] sm:$0x1] }
  0xe7   : > { %v2240_v40 = vsel %vm973_vm1, %v2238_v27, %v2239_v54  ;;  %v2245_v52 = vsel %vm973_vm1, %v2239_v54, %v2244_v30  ;;  %v4484_v30 = vld [vmem:[%s5470_s22 + $0x90] sm:$0xfc] }
  0xe8   : > { %5027 = vmatpush3.bf16.msra.mxu1 %v5338_v33  ;;  %5091 = vmatpush3.bf16.msra.mxu0 %v5340_v39  ;;  %v2932_v39 = vrot.slane %v4387_v14, 1  ;;  %v2294_v20 = vpack.c.bf16 %v2245_v52, %v2240_v40 }
  0xea   : > { %2490 = vmatmul.mubr.bf16.gmra.mrb[96].mxu1 %v2288_v16  ;;  %2784 = vmatmul.mubr.bf16.gmra.mrb[96].mxu0 %v2582_v41  ;;  %v3365_v41 = vrot.slane %v4481_v21, 2  ;;  %v2937_v60 = vsel %vm361_vm0, %v2932_v39, %v2936_v31  ;;  %v4394_v21 = vld [vmem:[%s5470_s22 + $0xb0] sm:$0x1]  ;;  %v2943_v31 = vsel %vm361_vm0, %v2941_v15, %v2942_v23 }
  0xeb   : > { %2497 = vmatprep.mubr.bf16.mxu1 %v2291_v17  ;;  %2791 = vmatprep.mubr.bf16.mxu0 %v2585_v43  ;;  %v3366_v17 = vrot.slane %v4387_v14, 2  ;;  %v2929_v43 = vrot.slane %v6256_v18, 1  ;;  %v3376_v18 = vrot.slane %v6272_v34, 2  ;;  %v3362_v34 = vrot.slane %v4480_v47, 2  ;;  %v4399_v47 = vld [vmem:[%s5470_s22 + $0xd8] sm:$0xff] }
  0xed   : > { %v3371_v4 = vsel %vm973_vm1, %v3366_v17, %v3370_v56  ;;  %v3372_v56 = vrot.slane %v4484_v30, 2 }
  0xf2   : > { %2498 = vmatmul.mubr.bf16.gmra.mrb[100].mxu1 %v2290_v59  ;;  %2792 = vmatmul.mubr.bf16.gmra.mrb[100].mxu0 %v2584_v13  ;;  %v2933_v59 = vsel %vm361_vm0, %v2931_v42, %v2932_v39  ;;  %v3369_v39 = vsel %vm973_vm1, %v3363_v51, %v3368_v7  ;;  %v3374_v7 = vsel %vm973_vm1, %v3372_v56, %v3373_v58 }
  0xf3   : > { %2505 = vmatprep.mubr.bf16.mxu1 %v2293_v2  ;;  %2799 = vmatprep.mubr.bf16.mxu0 %v6229_v48  ;;  %v3041_v14 = vpack.c.bf16 %v2937_v60, %v2933_v59  ;;  %v2951_v59 = vrot.slane %v4397_v49, 1  ;;  %v4491_v60 = vld [vmem:[%s5470_s22 + $0xe8] sm:$0x3] }
  0xfa   : > { %2506 = vmatmul.mubr.bf16.gmra.mrb[104].mxu1 %v2292_v35  ;;  %2800 = vmatmul.mubr.bf16.gmra.mrb[104].mxu0 %v6244_v0  ;;  %v3367_v0 = vsel %vm973_vm1, %v3365_v41, %v3366_v17  ;;  %v2946_v35 = vrot.slane %v4395_v61, 1  ;;  %v2944_v17 = vrot.slane %v4394_v21, 1  ;;  %v4403_v21 = vld [vmem:[%s5470_s22 + $0xf8] sm:$0xfe] }
  0xfb   : > { %2513 = vmatprep.mubr.bf16.mxu1 %v2295_v36  ;;  %2807 = vmatprep.mubr.bf16.mxu0 %v2589_v25  ;;  %v3475_v54 = vpack.c.bf16 %v3371_v4, %v3367_v0  ;;  %v3364_v36 = vsel %vm973_vm1, %v3362_v34, %v3363_v51 }
  0xfc   : > { %v2947_v41 = vsel %vm361_vm0, %v2942_v23, %v2946_v35 }
  0xfd   : > { %v4580_v3 = vpop.f32.mrb[0].mxu0  ;;  %v4604_v22 = vpop.f32.mrb[0].mxu1 }
  0xfe   : > { %v4581_v24 = vpop.f32.mrb[1].mxu0  ;;  %v4605_v29 = vpop.f32.mrb[1].mxu1 }
  0xff   : > { %v6448_v26 = vadd.f32 %v4581_v24, %v4580_v3  ;;  %v6450_v48 = vadd.f32 %v4605_v29, %v4604_v22  ;;  %v4583_v28 = vpop.f32.mrb[2].mxu0  ;;  %v4607_v11 = vpop.f32.mrb[2].mxu1  ;;  %v4487_v3 = vld [vmem:[%s5470_s22 + $0xb8] sm:$0x3]  ;;  %v2588_v22 = vpack.c.bf16 %v6469_v46, %v4332_v55  ;;  %v4390_v24 = vld [vmem:[%s5470_s22 + $0x90] sm:$0xfe] }
 0x100   : > { %v4584_v45 = vpop.f32.mrb[3].mxu0  ;;  %v4608_v33 = vpop.f32.mrb[3].mxu1  ;;  %v3380_v27 = vrot.slane %v4487_v3, 2  ;;  %v2938_v42 = vrot.slane %v4390_v24, 1 }
 0x101   : > { %v6453_v16 = vadd.f32 %v4584_v45, %v4583_v28  ;;  %v6455_v38 = vadd.f32 %v4608_v33, %v4607_v11  ;;  %v2939_v28 = vrot.slane %v6281_v57, 1  ;;  %v3375_v11 = vrot.slane %v4485_v10, 2  ;;  %v4489_v57 = vld [vmem:[%s5470_s22 + $0xc8] sm:$0xfc] }
 0x102   : > { %2514 = vmatmul.mubr.bf16.gmra.mrb[108].mxu1 %v2294_v20  ;;  %v2930_v45 = vsel %vm361_vm0, %v2928_v44, %v2929_v43  ;;  %v2935_v33 = vsel %vm361_vm0, %v2929_v43, %v2934_v6  ;;  %2808 = vmatmul.mubr.bf16.gmra.mrb[108].mxu0 %v2588_v22  ;;  %v3378_v43 = vrot.slane %v4486_v1, 2  ;;  %v3381_v55 = vsel %vm973_vm1, %v3376_v18, %v3380_v27  ;;  %v4405_v1 = vld [vmem:[%s5470_s22 + $0x108] sm:$0xff] }
 0x103   : > { %3217 = vmatprep.mubr.bf16.mxu1 %v3041_v14  ;;  %3651 = vmatprep.mubr.bf16.mxu0 %v3475_v54  ;;  %v3040_v40 = vpack.c.bf16 %v2935_v33, %v2930_v45  ;;  %v3377_v51 = vsel %vm973_vm1, %v3375_v11, %v3376_v18  ;;  %v3474_v44 = vpack.c.bf16 %v3369_v39, %v3364_v36  ;;  %v4398_v18 = vld [vmem:[%s5470_s22 + $0xd0] sm:$0xff]  ;;  %v3385_v22 = vrot.slane %v4489_v57, 2  ;;  %v4488_v14 = vld [vmem:[%s5470_s22 + $0xc0] sm:$0xfc]  ;;  %v4490_v54 = vld [vmem:[%s5470_s22 + $0xe0] sm:$0x3] }
 0x104   : > { %v2945_v61 = vsel %vm361_vm0, %v2939_v28, %v2944_v17  ;;  %v3477_v34 = vpack.c.bf16 %v3381_v55, %v3377_v51  ;;  %v3379_v20 = vsel %vm973_vm1, %v3373_v58, %v3378_v43  ;;  %v4407_v45 = vld [vmem:[%s5470_s22 + $0x118] sm:$0x1]  ;;  %v4493_v33 = vld [vmem:[%s5470_s22 + $0xf8] sm:$0xfc]  ;;  %v2949_v39 = vrot.slane %v4398_v18, 1 }
 0x105   : > { %v4586_v12 = vpop.f32.mrb[4].mxu0  ;;  %v4610_v8 = vpop.f32.mrb[4].mxu1  ;;  %v3476_v11 = vpack.c.bf16 %v3379_v20, %v3374_v7  ;;  %v3382_v56 = vrot.slane %v4488_v14, 2  ;;  %v3383_v58 = vrot.slane %v4398_v18, 2  ;;  %v3388_v43 = vrot.slane %v4490_v54, 2  ;;  %v6541_v57 = vld [vmem:[%s5470_s22 + $0x138] sm:$0xff] }
 0x106   : > { %v4587_v13 = vpop.f32.mrb[5].mxu0  ;;  %v4611_v2 = vpop.f32.mrb[5].mxu1  ;;  %v3395_v51 = vrot.slane %v4493_v33, 2  ;;  %v3396_v55 = vrot.slane %v4405_v1, 2  ;;  %v4409_v18 = vld [vmem:[%s5470_s22 + $0x128] sm:$0xfe] }
 0x107   : > { %v6478_v62 = vadd.f32 %v4587_v13, %v4586_v12  ;;  %v6480_v9 = vadd.f32 %v4611_v2, %v4610_v8  ;;  %v4589_v63 = vpop.f32.mrb[6].mxu0  ;;  %v4613_v5 = vpop.f32.mrb[6].mxu1  ;;  %v3043_v12 = vpack.c.bf16 %v2947_v41, %v2943_v31  ;;  %v6507_v8 = vsel %vm361_vm0, %v2938_v42, %v2939_v28  ;;  %v4495_v41 = vld [vmem:[%s5470_s22 + $0x118] sm:$0x3] }
 0x108   : > { %v4590_v19 = vpop.f32.mrb[7].mxu0  ;;  %v4614_v37 = vpop.f32.mrb[7].mxu1  ;;  %v2952_v13 = vrot.slane %v4399_v47, 1  ;;  %v2956_v2 = vrot.slane %v4401_v53, 1  ;;  %v3042_v24 = vpack.c.bf16 %v2945_v61, %v6507_v8  ;;  %v2962_v53 = vrot.slane %v4405_v1, 1  ;;  %v4404_v8 = vld [vmem:[%s5470_s22 + $0x100] sm:$0xff] }
 0x109   : > { %v6486_v29 = vadd.f32 %v4590_v19, %v4589_v63  ;;  %v6488_v25 = vadd.f32 %v4614_v37, %v4613_v5  ;;  %v4396_v63 = vld [vmem:[%s5470_s22 + $0xc0] sm:$0xfe]  ;;  %v4400_v5 = vld [vmem:[%s5470_s22 + $0xe0] sm:$0x1]  ;;  %v3386_v19 = vrot.slane %v4399_v47, 2  ;;  %v3390_v37 = vrot.slane %v4491_v60, 2 }
 0x10a   : > { %3218 = vmatmul.mubr.bf16.vlgmr.msra.gmra.mrb[112].mxu1 %v3040_v40  ;;  %3652 = vmatmul.mubr.bf16.vlgmr.msra.gmra.mrb[112].mxu0 %v3474_v44  ;;  %v2953_v27 = vsel %vm361_vm0, %v2951_v59, %v2952_v13  ;;  %v2957_v30 = vsel %vm361_vm0, %v2952_v13, %v2956_v2  ;;  %v2948_v42 = vrot.slane %v4396_v63, 1  ;;  %v2954_v31 = vrot.slane %v4400_v5, 1  ;;  %v4406_v59 = vld [vmem:[%s5470_s22 + $0x110] sm:$0x1]  ;;  %v4492_v13 = vld [vmem:[%s5470_s22 + $0xf0] sm:$0xfc] }
 0x10b   : > { %3225 = vmatprep.mubr.bf16.mxu1 %v3043_v12  ;;  %3659 = vmatprep.mubr.bf16.mxu0 %v3477_v34  ;;  %v3387_v17 = vsel %vm973_vm1, %v3385_v22, %v3386_v19  ;;  %v3391_v49 = vsel %vm973_vm1, %v3386_v19, %v3390_v37  ;;  %v2961_v47 = vrot.slane %v4403_v21, 1  ;;  %v2966_v40 = vrot.slane %v4407_v45, 1  ;;  %v4494_v2 = vld [vmem:[%s5470_s22 + $0x110] sm:$0x3]  ;;  %v4413_v63 = vld [vmem:[%s5470_s22 + $0x148] sm:$0x1] }
 0x10c   : > { %v3400_v44 = vrot.slane %v4495_v41, 2  ;;  %v3479_v12 = vpack.c.bf16 %v3391_v49, %v3387_v17  ;;  %v2950_v60 = vsel %vm361_vm0, %v2948_v42, %v2949_v39  ;;  %v3384_v61 = vsel %vm973_vm1, %v3382_v56, %v3383_v58  ;;  %v4497_v5 = vld [vmem:[%s5470_s22 + $0x128] sm:$0xfc]  ;;  %v4408_v56 = vld [vmem:[%s5470_s22 + $0x120] sm:$0xfe] }
 0x10d   : > { %v4592_v52 = vpop.f32.mrb[8].mxu0  ;;  %v4616_v4 = vpop.f32.mrb[8].mxu1  ;;  %v2963_v34 = vsel %vm361_vm0, %v2961_v47, %v2962_v53  ;;  %v2967_v7 = vsel %vm361_vm0, %v2962_v53, %v2966_v40  ;;  %v3397_v22 = vsel %vm973_vm1, %v3395_v51, %v3396_v55  ;;  %v2959_v37 = vrot.slane %v4404_v8, 1  ;;  %v4412_v51 = vld [vmem:[%s5470_s22 + $0x140] sm:$0x1] }
 0x10e   : > { %v4593_v23 = vpop.f32.mrb[9].mxu0  ;;  %v4617_v10 = vpop.f32.mrb[9].mxu1  ;;  %v3401_v19 = vsel %vm973_vm1, %v3396_v55, %v3400_v44  ;;  %v2964_v14 = vrot.slane %v4406_v59, 1  ;;  %v3392_v21 = vrot.slane %v4492_v13, 2  ;;  %v2971_v45 = vrot.slane %v4409_v18, 1 }
 0x10f   : > { %v6511_v0 = vadd.f32 %v4593_v23, %v4592_v52  ;;  %v4595_v50 = vpop.f32.mrb[10].mxu0  ;;  %v6522_v15 = vadd.f32 %v4617_v10, %v4616_v4  ;;  %v4619_v35 = vpop.f32.mrb[10].mxu1  ;;  %v3045_v52 = vpack.c.bf16 %v2957_v30, %v2953_v27  ;;  %v4402_v23 = vld [vmem:[%s5470_s22 + $0xf0] sm:$0xfe]  ;;  %v3398_v27 = vrot.slane %v4494_v2, 2 }
 0x110   : > { %v4596_v6 = vpop.f32.mrb[11].mxu0  ;;  %v4620_v28 = vpop.f32.mrb[11].mxu1  ;;  %v2958_v20 = vrot.slane %v4402_v23, 1  ;;  %v2972_v33 = vrot.slane %v6541_v57, 1  ;;  %v2976_v42 = vrot.slane %v4413_v63, 1  ;;  %v3405_v41 = vrot.slane %v4497_v5, 2 }
 0x111   : > { %v6519_v3 = vadd.f32 %v4596_v6, %v4595_v50  ;;  %v6532_v36 = vadd.f32 %v4620_v28, %v4619_v35  ;;  %v2955_v50 = vsel %vm361_vm0, %v2949_v39, %v2954_v31  ;;  %v3389_v6 = vsel %vm973_vm1, %v3383_v58, %v3388_v43  ;;  %v4499_v35 = vld [vmem:[%s5470_s22 + $0x148] sm:$0x3]  ;;  %v4496_v59 = vld [vmem:[%s5470_s22 + $0x120] sm:$0xfc]  ;;  %v4415_v63 = vld [vmem:[%s5470_s22 + $0x158] sm:$0xfe] }
 0x112   : > { %3226 = vmatmul.mubr.bf16.gmra.mrb[116].mxu1 %v3042_v24  ;;  %3660 = vmatmul.mubr.bf16.gmra.mrb[116].mxu0 %v3476_v11  ;;  %v3393_v28 = vrot.slane %v4404_v8, 2  ;;  %v3044_v11 = vpack.c.bf16 %v2955_v50, %v2950_v60  ;;  %v3406_v17 = vrot.slane %v6541_v57, 2  ;;  %v3410_v49 = vrot.slane %v4499_v35, 2  ;;  %v4498_v57 = vld [vmem:[%s5470_s22 + $0x140] sm:$0x3]  ;;  %v4417_v5 = vld [vmem:[%s5470_s22 + $0x168] sm:$0xff] }
 0x113   : > { %3233 = vmatprep.mubr.bf16.mxu1 %v3045_v52  ;;  %3667 = vmatprep.mubr.bf16.mxu0 %v3479_v12  ;;  %v3478_v47 = vpack.c.bf16 %v3389_v6, %v3384_v61  ;;  %v3047_v53 = vpack.c.bf16 %v2967_v7, %v2963_v34  ;;  %v3481_v40 = vpack.c.bf16 %v3401_v19, %v3397_v22  ;;  %v4410_v52 = vld [vmem:[%s5470_s22 + $0x130] sm:$0xff]  ;;  %v2968_v13 = vrot.slane %v4408_v56, 1 }
 0x114   : > { %v2960_v44 = vsel %vm361_vm0, %v2958_v20, %v2959_v37  ;;  %v2965_v23 = vsel %vm361_vm0, %v2959_v37, %v2964_v14  ;;  %v3394_v12 = vsel %vm973_vm1, %v3392_v21, %v3393_v28  ;;  %v3399_v8 = vsel %vm973_vm1, %v3393_v28, %v3398_v27  ;;  %v4503_v21 = vld [vmem:[%s5470_s22 + $0x178] sm:$0x3] }
 0x115   : > { %v4598_v4 = vpop.f32.mrb[12].mxu0  ;;  %v4622_v30 = vpop.f32.mrb[12].mxu1  ;;  %v2973_v50 = vsel %vm361_vm0, %v2971_v45, %v2972_v33  ;;  %v2977_v61 = vsel %vm361_vm0, %v2972_v33, %v2976_v42  ;;  %v3407_v2 = vsel %vm973_vm1, %v3405_v41, %v3406_v17  ;;  %v3411_v18 = vsel %vm973_vm1, %v3406_v17, %v3410_v49 }
 0x116   : > { %v4599_v10 = vpop.f32.mrb[13].mxu0  ;;  %v4623_v39 = vpop.f32.mrb[13].mxu1  ;;  %v2974_v6 = vrot.slane %v4412_v51, 1  ;;  %v3402_v34 = vrot.slane %v4496_v59, 2  ;;  %v3403_v7 = vrot.slane %v4410_v52, 2  ;;  %v3408_v20 = vrot.slane %v4498_v57, 2 }
 0x117   : > { %v6557_v24 = vadd.f32 %v4599_v10, %v4598_v4  ;;  %v4601_v54 = vpop.f32.mrb[14].mxu0  ;;  %v6564_v58 = vadd.f32 %v4623_v39, %v4622_v30  ;;  %v4625_v43 = vpop.f32.mrb[14].mxu1  ;;  %v2969_v4 = vrot.slane %v4410_v52, 1  ;;  %v4419_v10 = vld [vmem:[%s5470_s22 + $0x178] sm:$0x1]  ;;  %v3046_v19 = vpack.c.bf16 %v2965_v23, %v2960_v44  ;;  %v4416_v57 = vld [vmem:[%s5470_s22 + $0x160] sm:$0xff] }
 0x118   : > { %v4602_v1 = vpop.f32.mrb[15].mxu0  ;;  %v4626_v55 = vpop.f32.mrb[15].mxu1  ;;  %v3480_v37 = vpack.c.bf16 %v3399_v8, %v3394_v12  ;;  %v3049_v14 = vpack.c.bf16 %v2977_v61, %v2973_v50  ;;  %v3483_v35 = vpack.c.bf16 %v3411_v18, %v3407_v2  ;;  %v2982_v45 = vrot.slane %v4417_v5, 1  ;;  %v4414_v23 = vld [vmem:[%s5470_s22 + $0x150] sm:$0xfe] }
 0x119   : > { %v6560_v31 = vadd.f32 %v4602_v1, %v4601_v54  ;;  %v6574_v60 = vadd.f32 %v4626_v55, %v4625_v43  ;;  %v4501_v54 = vld [vmem:[%s5470_s22 + $0x158] sm:$0xfc]  ;;  %v6586_v30 = vsel %vm361_vm0, %v2968_v13, %v2969_v4  ;;  %v6589_v1 = vsel %vm361_vm0, %v2969_v4, %v2974_v6  ;;  %v4418_v50 = vld [vmem:[%s5470_s22 + $0x170] sm:$0x1]  ;;  %v4500_v61 = vld [vmem:[%s5470_s22 + $0x150] sm:$0xfc] }
 0x11a   : > { %3234 = vmatmul.mubr.bf16.gmra.mrb[120].mxu1 %v3044_v11  ;;  %3668 = vmatmul.mubr.bf16.gmra.mrb[120].mxu0 %v3478_v47  ;;  %v2981_v11 = vrot.slane %v4415_v63, 1  ;;  %v6592_v41 = vsel %vm973_vm1, %v3402_v34, %v3403_v7  ;;  %v6595_v17 = vsel %vm973_vm1, %v3403_v7, %v3408_v20  ;;  %v2986_v49 = vrot.slane %v4419_v10, 1  ;;  %v4502_v18 = vld [vmem:[%s5470_s22 + $0x170] sm:$0x3]  ;;  %v4421_v4 = vld [vmem:[%s5470_s22 + $0x188] sm:$0xfe] }
 0x11b   : > { %3241 = vmatprep.mubr.bf16.mxu1 %v3047_v53  ;;  %3675 = vmatprep.mubr.bf16.mxu0 %v3481_v40  ;;  %v3415_v53 = vrot.slane %v4501_v54, 2  ;;  %v3416_v40 = vrot.slane %v4417_v5, 2  ;;  %v3420_v52 = vrot.slane %v4503_v21, 2  ;;  %v3048_v8 = vpack.c.bf16 %v6589_v1, %v6586_v30  ;;  %v4423_v6 = vld [vmem:[%s5470_s22 + $0x198] sm:$0xff]  ;;  %v4425_v10 = vld [vmem:[%s5470_s22 + $0x1a8] sm:$0x1] }
 0x11c   : > { %v3482_v59 = vpack.c.bf16 %v6595_v17, %v6592_v41  ;;  %v2983_v2 = vsel %vm361_vm0, %v2981_v11, %v2982_v45  ;;  %v3002_v34 = vrot.slane %v6435_v32, 1  ;;  %v2987_v7 = vsel %vm361_vm0, %v2982_v45, %v2986_v49  ;;  %v4507_v21 = vld [vmem:[%s5470_s22 + $0x1a8] sm:$0x3] }
 0x11d   : > { %v4644_v22 = vpop.f32.mrb[16].mxu1  ;;  %v4708_v28 = vpop.f32.mrb[16].mxu0  ;;  %v3417_v20 = vsel %vm973_vm1, %v3415_v53, %v3416_v40  ;;  %v3421_v63 = vsel %vm973_vm1, %v3416_v40, %v3420_v52  ;;  %v2978_v5 = vrot.slane %v4414_v23, 1  ;;  %v3412_v54 = vrot.slane %v4500_v61, 2 }
 0x11e   : > { %v4645_v27 = vpop.f32.mrb[17].mxu1  ;;  %v4709_v42 = vpop.f32.mrb[17].mxu0  ;;  %v3413_v30 = vrot.slane %v4416_v57, 2  ;;  %v2991_v1 = vrot.slane %v4421_v4, 1  ;;  %v2992_v11 = vrot.slane %v4423_v6, 1  ;;  %v3485_v41 = vpack.c.bf16 %v3421_v63, %v3417_v20 }
 0x11f   : > { %v4646_v33 = vadd.f32 %v4645_v27, %v4644_v22  ;;  %v4647_v39 = vpop.f32.mrb[18].mxu1  ;;  %v4710_v56 = vadd.f32 %v4709_v42, %v4708_v28  ;;  %v4711_v43 = vpop.f32.mrb[18].mxu0  ;;  %v2996_v17 = vrot.slane %v4425_v10, 1  ;;  %v3426_v53 = vrot.slane %v4423_v6, 2  ;;  %v4424_v4 = vld [vmem:[%s5470_s22 + $0x1a0] sm:$0x1] }
 0x120   : > { %v4648_v47 = vpop.f32.mrb[19].mxu1  ;;  %v4712_v44 = vpop.f32.mrb[19].mxu0  ;;  %v3430_v40 = vrot.slane %v4507_v21, 2  ;;  %v2993_v61 = vsel %vm361_vm0, %v2991_v1, %v2992_v11  ;;  %v3436_v6 = vrot.slane %v6435_v32, 2  ;;  %v4504_v63 = vld [vmem:[%s5470_s22 + $0x180] sm:$0xfc] }
 0x121   : > { %v847_v51 = vadd.f32 %v4646_v33, %v6448_v26  ;;  %v4649_v55 = vadd.f32 %v4648_v47, %v4647_v39  ;;  %v4713_v12 = vadd.f32 %v4712_v44, %v4711_v43  ;;  %v3051_v39 = vpack.c.bf16 %v2987_v7, %v2983_v2  ;;  %v4427_v10 = vld [vmem:[%s5470_s22 + $0x1b8] sm:$0xfe] }
 0x122   : > { %3242 = vmatmul.mubr.bf16.gmra.mrb[124].mxu1 %v3046_v19  ;;  %3676 = vmatmul.mubr.bf16.gmra.mrb[124].mxu0 %v3480_v37  ;;  %v2979_v37 = vrot.slane %v4416_v57, 1  ;;  %v3414_v57 = vsel %vm973_vm1, %v3412_v54, %v3413_v30  ;;  %v3431_v20 = vsel %vm973_vm1, %v3426_v53, %v3430_v40  ;;  %v4511_v1 = vld [vmem:[%s5470_s22 + $0x1d8] sm:$0x3]  ;;  %v3433_v32 = vrot.slane %v6469_v46, 2 }
 0x123   : > { %v6606_v26 = vadd.f32 %v4710_v56, %v847_v51  ;;  %v850_v13 = vadd.f32 %v4649_v55, %v6453_v16  ;;  %3249 = vmatprep.mubr.bf16.mxu1 %v3049_v14  ;;  %3683 = vmatprep.mubr.bf16.mxu0 %v3483_v35  ;;  %v4505_v16 = vld [vmem:[%s5470_s22 + $0x188] sm:$0xfc]  ;;  %v2984_v14 = vrot.slane %v4418_v50, 1  ;;  %v3418_v35 = vrot.slane %v4502_v18, 2  ;;  %v4422_v18 = vld [vmem:[%s5470_s22 + $0x190] sm:$0xff] }
 0x124   : > { %v3425_v47 = vrot.slane %v4505_v16, 2  ;;  %v2980_v44 = vsel %vm361_vm0, %v2978_v5, %v2979_v37  ;;  %v4506_v5 = vld [vmem:[%s5470_s22 + $0x1a0] sm:$0x3] }
 0x125   : > { %v6619_v22 = vadd.f32 %v4713_v12, %v850_v13  ;;  %v4650_v19 = vpop.f32.mrb[20].mxu1  ;;  %v4714_v28 = vpop.f32.mrb[20].mxu0  ;;  %v2985_v23 = vsel %vm361_vm0, %v2979_v37, %v2984_v14  ;;  %v3419_v50 = vsel %vm973_vm1, %v3413_v30, %v3418_v35  ;;  %v4431_v37 = vld [vmem:[%s5470_s22 + $0x1d8] sm:$0x1]  ;;  %v4509_v14 = vld [vmem:[%s5470_s22 + $0x1b8] sm:$0xfc] }
 0x126   : > { %v4651_v27 = vpop.f32.mrb[21].mxu1  ;;  %v4715_v33 = vpop.f32.mrb[21].mxu0  ;;  %v3427_v7 = vsel %vm973_vm1, %v3425_v47, %v3426_v53  ;;  %v3050_v16 = vpack.c.bf16 %v2985_v23, %v2980_v44  ;;  %v2989_v30 = vrot.slane %v4422_v18, 1  ;;  %v2994_v35 = vrot.slane %v4424_v4, 1 }
 0x127   : > { %v4652_v45 = vadd.f32 %v4651_v27, %v4650_v19  ;;  %v4653_v42 = vpop.f32.mrb[22].mxu1  ;;  %v4716_v49 = vadd.f32 %v4715_v33, %v4714_v28  ;;  %v4717_v56 = vpop.f32.mrb[22].mxu0  ;;  %v3484_v28 = vpack.c.bf16 %v3419_v50, %v3414_v57  ;;  %v3001_v47 = vrot.slane %v4427_v10, 1  ;;  %v4510_v10 = vld [vmem:[%s5470_s22 + $0x1d0] sm:$0x3] }
 0x128   : > { %v4654_v43 = vpop.f32.mrb[23].mxu1  ;;  %v4718_v55 = vpop.f32.mrb[23].mxu0  ;;  %v3006_v53 = vrot.slane %v4431_v37, 1  ;;  %v3440_v44 = vrot.slane %v4511_v1, 2 }
 0x129   : > { %v855_v52 = vadd.f32 %v4652_v45, %v6478_v62  ;;  %v4655_v51 = vadd.f32 %v4654_v43, %v4653_v42  ;;  %v4719_v12 = vadd.f32 %v4718_v55, %v4717_v56  ;;  %v4420_v62 = vld [vmem:[%s5470_s22 + $0x180] sm:$0xfe]  ;;  %v3487_v42 = vpack.c.bf16 %v3431_v20, %v3427_v7 }
 0x12a   : > { %3250 = vmatmul.mubr.bf16.gmra.mrb[128].mxu1 %v3048_v8  ;;  %3684 = vmatmul.mubr.bf16.gmra.mrb[128].mxu0 %v3482_v59  ;;  %v2997_v8 = vsel %vm361_vm0, %v2992_v11, %v2996_v17  ;;  %v2988_v19 = vrot.slane %v4420_v62, 1  ;;  %v3428_v43 = vrot.slane %v4506_v5, 2  ;;  %v3435_v55 = vrot.slane %v4509_v14, 2  ;;  %v4508_v5 = vld [vmem:[%s5470_s22 + $0x1b0] sm:$0xfc] }
 0x12b   : > { %v6629_v13 = vadd.f32 %v4716_v49, %v855_v52  ;;  %v858_v2 = vadd.f32 %v4655_v51, %v6486_v29  ;;  %3257 = vmatprep.mubr.bf16.mxu1 %v3051_v39  ;;  %3691 = vmatprep.mubr.bf16.mxu0 %v3485_v41  ;;  %v3053_v27 = vpack.c.bf16 %v2997_v8, %v2993_v61  ;;  %v3422_v39 = vrot.slane %v4504_v63, 2 }
 0x12c   : > { %v3423_v41 = vrot.slane %v4422_v18, 2  ;;  %v2995_v61 = vsel %vm361_vm0, %v2989_v30, %v2994_v35  ;;  %v3003_v8 = vsel %vm361_vm0, %v3001_v47, %v3002_v34  ;;  %v3007_v18 = vsel %vm361_vm0, %v3002_v34, %v3006_v53 }
 0x12d   : > { %v6641_v29 = vadd.f32 %v4719_v12, %v858_v2  ;;  %v4656_v59 = vpop.f32.mrb[24].mxu1  ;;  %v4720_v54 = vpop.f32.mrb[24].mxu0  ;;  %v2990_v12 = vsel %vm361_vm0, %v2988_v19, %v2989_v30  ;;  %v3437_v20 = vsel %vm973_vm1, %v3435_v55, %v3436_v6  ;;  %v3441_v63 = vsel %vm973_vm1, %v3436_v6, %v3440_v44 }
 0x12e   : > { %v4657_v21 = vpop.f32.mrb[25].mxu1  ;;  %v4721_v45 = vpop.f32.mrb[25].mxu0  ;;  %v3424_v62 = vsel %vm973_vm1, %v3422_v39, %v3423_v41  ;;  %v3429_v2 = vsel %vm973_vm1, %v3423_v41, %v3428_v43  ;;  %v3052_v19 = vpack.c.bf16 %v2995_v61, %v2990_v12  ;;  %v2999_v14 = vrot.slane %v6469_v46, 1 }
 0x12f   : > { %v4658_v11 = vadd.f32 %v4657_v21, %v4656_v59  ;;  %v4659_v33 = vpop.f32.mrb[26].mxu1  ;;  %v4722_v17 = vadd.f32 %v4721_v45, %v4720_v54  ;;  %v4723_v49 = vpop.f32.mrb[26].mxu0  ;;  %v3489_v6 = vpack.c.bf16 %v3441_v63, %v3437_v20  ;;  %v3432_v45 = vrot.slane %v4508_v5, 2 }
 0x130   : > { %v4660_v56 = vpop.f32.mrb[27].mxu1  ;;  %v4724_v51 = vpop.f32.mrb[27].mxu0 }
 0x131   : > { %v863_v40 = vadd.f32 %v4658_v11, %v6511_v0  ;;  %v4661_v52 = vadd.f32 %v4660_v56, %v4659_v33  ;;  %v4725_v23 = vadd.f32 %v4724_v51, %v4723_v49  ;;  %v4426_v0 = vld [vmem:[%s5470_s22 + $0x1b0] sm:$0xfe]  ;;  %v3438_v33 = vrot.slane %v4510_v10, 2 }
 0x132   : > { %3258 = vmatmul.mubr.bf16.gmra.mrb[132].mxu1 %v3050_v16  ;;  %3692 = vmatmul.mubr.bf16.gmra.mrb[132].mxu0 %v3484_v28  ;;  %v2998_v37 = vrot.slane %v4426_v0, 1  ;;  %v3486_v28 = vpack.c.bf16 %v3429_v2, %v3424_v62  ;;  %v3434_v47 = vsel %vm973_vm1, %v3432_v45, %v3433_v32 }
 0x133   : > { %v6648_v57 = vadd.f32 %v4722_v17, %v863_v40  ;;  %v866_v50 = vadd.f32 %v4661_v52, %v6519_v3  ;;  %3265 = vmatprep.mubr.bf16.mxu1 %v3053_v27  ;;  %3699 = vmatprep.mubr.bf16.mxu0 %v3487_v42  ;;  %v4430_v3 = vld [vmem:[%s5470_s22 + $0x1d0] sm:$0x1]  ;;  %v3055_v27 = vpack.c.bf16 %v3007_v18, %v3003_v8  ;;  %s3925_s22 = sshll.u32 %s5366_s12, 3 }
 0x134   : > { %v3004_v30 = vrot.slane %v4430_v3, 1  ;;  %v3000_v46 = vsel %vm361_vm0, %v2998_v37, %v2999_v14  ;;  %v3439_v53 = vsel %vm973_vm1, %v3433_v32, %v3438_v33  ;;  %p188_p6 = scmp.lt.s32.totalorder %s3925_s22, 15 }
 0x135   : > { %v6662_v4 = vadd.f32 %v4725_v23, %v866_v50  ;;  %v4662_v7 = vpop.f32.mrb[28].mxu1  ;;  %v4726_v59 = vpop.f32.mrb[28].mxu0  ;;  %v3488_v50 = vpack.c.bf16 %v3439_v53, %v3434_v47 }
 0x136   : > { %v4663_v16 = vpop.f32.mrb[29].mxu1  ;;  %v4727_v34 = vpop.f32.mrb[29].mxu0  ;;  %v3005_v43 = vsel %vm361_vm0, %v2999_v14, %v3004_v30  ;;  %s6892_s22 = smov (!%p188_p6, %s3925_s22), 15 }
 0x137   : > { %v4664_v54 = vadd.f32 %v4663_v16, %v4662_v7  ;;  %v4665_v21 = vpop.f32.mrb[30].mxu1  ;;  %v4728_v35 = vadd.f32 %v4727_v34, %v4726_v59  ;;  %v4729_v1 = vpop.f32.mrb[30].mxu0  ;;  %v3054_v55 = vpack.c.bf16 %v3005_v43, %v3000_v46  ;;  %s3926_s12 = sshll.u32 %s6892_s22, 1 }
 0x138   : > { %v4666_v11 = vpop.f32.mrb[31].mxu1  ;;  %v4730_v41 = vpop.f32.mrb[31].mxu0  ;;  %s192_s28 = sadd.s32 %s3927_s27, %s3926_s12 }
 0x139   : > { %v871_v42 = vadd.f32 %v4664_v54, %v6557_v24  ;;  %v4667_v39 = vadd.f32 %v4666_v11, %v4665_v21  ;;  %v4731_v17 = vadd.f32 %v4730_v41, %v4729_v1  ;;  %s3928_s13 = sshll.u32 %s192_s28, 3 }
 0x13a   : > { %3266 = vmatmul.mubr.bf16.gmra.mrb[136].mxu1 %v3052_v19  ;;  %3700 = vmatmul.mubr.bf16.gmra.mrb[136].mxu0 %v3486_v28  ;;  %s6813_s6 = scalar_lea.vmem %s6878_s3, %s3928_s13 }
 0x13b   : > { %v6672_v49 = vadd.f32 %v4728_v35, %v871_v42  ;;  %v874_v56 = vadd.f32 %v4667_v39, %v6560_v31  ;;  %3273 = vmatprep.mubr.bf16.mxu1 %v3055_v27  ;;  %3707 = vmatprep.mubr.bf16.mxu0 %v3489_v6 }
 0x13d   : > { %v6678_v24 = vadd.f32 %v4731_v17, %v874_v56  ;;  %v4668_v40 = vpop.f32.mrb[32].mxu1  ;;  %v4732_v52 = vpop.f32.mrb[32].mxu0 }
 0x13e   : > { %v4669_v51 = vpop.f32.mrb[33].mxu1  ;;  %v4733_v23 = vpop.f32.mrb[33].mxu0 }
 0x13f   : > { %v4670_v44 = vadd.f32 %v4669_v51, %v4668_v40  ;;  %v4671_v12 = vpop.f32.mrb[34].mxu1  ;;  %v4734_v31 = vadd.f32 %v4733_v23, %v4732_v52  ;;  %v4735_v61 = vpop.f32.mrb[34].mxu0 }
 0x140   : > { %v4672_v0 = vpop.f32.mrb[35].mxu1  ;;  %v4736_v8 = vpop.f32.mrb[35].mxu0 }
 0x141   : > { %v879_v62 = vadd.f32 %v4670_v44, %v6450_v48  ;;  %v4673_v2 = vadd.f32 %v4672_v0, %v4671_v12  ;;  %v4737_v18 = vadd.f32 %v4736_v8, %v4735_v61 }
 0x142   : > { %3274 = vmatmul.mubr.bf16.gmra.mrb[140].mxu1 %v3054_v55  ;;  %3708 = vmatmul.mubr.bf16.gmra.mrb[140].mxu0 %v3488_v50 }
 0x143   : > { %v6681_v3 = vadd.f32 %v4734_v31, %v879_v62  ;;  %v882_v7 = vadd.f32 %v4673_v2, %v6455_v38 }
 0x145   : > { %v6684_v20 = vadd.f32 %v4737_v18, %v882_v7  ;;  %v4674_v63 = vpop.f32.mrb[36].mxu1  ;;  %v4738_v5 = vpop.f32.mrb[36].mxu0 }
 0x146   : > { %v4675_v10 = vpop.f32.mrb[37].mxu1  ;;  %v4739_v16 = vpop.f32.mrb[37].mxu0 }
 0x147   : > { %v4676_v59 = vadd.f32 %v4675_v10, %v4674_v63  ;;  %v4677_v19 = vpop.f32.mrb[38].mxu1  ;;  %v4740_v37 = vadd.f32 %v4739_v16, %v4738_v5  ;;  %v4741_v14 = vpop.f32.mrb[38].mxu0 }
 0x148   : > { %v4678_v48 = vpop.f32.mrb[39].mxu1  ;;  %v4742_v34 = vpop.f32.mrb[39].mxu0 }
 0x149   : > { %v887_v32 = vadd.f32 %v4676_v59, %v6480_v9  ;;  %v4679_v54 = vadd.f32 %v4678_v48, %v4677_v19  ;;  %v4743_v21 = vadd.f32 %v4742_v34, %v4741_v14 }
 0x14b   : > { %v6687_v28 = vadd.f32 %v4740_v37, %v887_v32  ;;  %v890_v38 = vadd.f32 %v4679_v54, %v6488_v25 }
 0x14d   : > { %v6690_v27 = vadd.f32 %v4743_v21, %v890_v38  ;;  %v4680_v30 = vpop.f32.mrb[40].mxu1  ;;  %v4744_v35 = vpop.f32.mrb[40].mxu0 }
 0x14e   : > { %v4681_v1 = vpop.f32.mrb[41].mxu1  ;;  %v4745_v6 = vpop.f32.mrb[41].mxu0 }
 0x14f   : > { %v4682_v11 = vadd.f32 %v4681_v1, %v4680_v30  ;;  %v4683_v45 = vpop.f32.mrb[42].mxu1  ;;  %v4746_v33 = vadd.f32 %v4745_v6, %v4744_v35  ;;  %v4747_v42 = vpop.f32.mrb[42].mxu0 }
 0x150   : > { %v4684_v39 = vpop.f32.mrb[43].mxu1  ;;  %v4748_v17 = vpop.f32.mrb[43].mxu0 }
 0x151   : > { %v895_v9 = vadd.f32 %v4682_v11, %v6522_v15  ;;  %v4685_v41 = vadd.f32 %v4684_v39, %v4683_v45  ;;  %v4749_v46 = vadd.f32 %v4748_v17, %v4747_v42 }
 0x153   : > { %v6693_v56 = vadd.f32 %v4746_v33, %v895_v9  ;;  %v898_v25 = vadd.f32 %v4685_v41, %v6532_v36 }
 0x155   : > { %v6696_v43 = vadd.f32 %v4749_v46, %v898_v25  ;;  %v4686_v47 = vpop.f32.mrb[44].mxu1  ;;  %v4750_v53 = vpop.f32.mrb[44].mxu0 }
 0x156   : > { %v4687_v40 = vpop.f32.mrb[45].mxu1  ;;  %v4751_v51 = vpop.f32.mrb[45].mxu0 }
 0x157   : > { %v4688_v52 = vadd.f32 %v4687_v40, %v4686_v47  ;;  %v4689_v55 = vpop.f32.mrb[46].mxu1  ;;  %v4752_v44 = vadd.f32 %v4751_v51, %v4750_v53  ;;  %v4753_v23 = vpop.f32.mrb[46].mxu0 }
 0x158   : > { %v4690_v12 = vpop.f32.mrb[47].mxu1  ;;  %v4754_v31 = vpop.f32.mrb[47].mxu0 }
 0x159   : > { %v903_v15 = vadd.f32 %v4688_v52, %v6564_v58  ;;  %v4691_v50 = vadd.f32 %v4690_v12, %v4689_v55  ;;  %v4755_v61 = vadd.f32 %v4754_v31, %v4753_v23 }
 0x15b   : > { %v6699_v0 = vadd.f32 %v4752_v44, %v903_v15  ;;  %v906_v36 = vadd.f32 %v4691_v50, %v6574_v60 }
 0x15d   : > { %v6702_v62 = vadd.f32 %v4755_v61, %v906_v36  ;;  %v4772_v2 = vpop.f32.mrb[48].mxu1  ;;  %v4836_v8 = vpop.f32.mrb[48].mxu0 }
 0x15e   : > { %v4773_v18 = vpop.f32.mrb[49].mxu1  ;;  %v4837_v63 = vpop.f32.mrb[49].mxu0 }
 0x15f   : > { %v4774_v7 = vadd.f32 %v4773_v18, %v4772_v2  ;;  %v4775_v5 = vpop.f32.mrb[50].mxu1  ;;  %v4838_v10 = vadd.f32 %v4837_v63, %v4836_v8  ;;  %v4839_v59 = vpop.f32.mrb[50].mxu0 }
 0x160   : > { %v4776_v16 = vpop.f32.mrb[51].mxu1  ;;  %v4840_v37 = vpop.f32.mrb[51].mxu0 }
 0x161   : > { %v1622_v58 = vadd.f32 %v4774_v7, %v6606_v26  ;;  %v4777_v19 = vadd.f32 %v4776_v16, %v4775_v5  ;;  %v4841_v14 = vadd.f32 %v4840_v37, %v4839_v59 }
 0x163   : > { %v6705_v48 = vadd.f32 %v4838_v10, %v1622_v58  ;;  %v1623_v60 = vadd.f32 %v4777_v19, %v6619_v22 }
 0x165   : > { %v6708_v32 = vadd.f32 %v4841_v14, %v1623_v60  ;;  %v4778_v54 = vpop.f32.mrb[52].mxu1  ;;  %v4842_v34 = vpop.f32.mrb[52].mxu0 }
 0x166   : > { %v4779_v21 = vpop.f32.mrb[53].mxu1  ;;  %v4843_v30 = vpop.f32.mrb[53].mxu0 }
 0x167   : > { %v4780_v38 = vadd.f32 %v4779_v21, %v4778_v54  ;;  %v4781_v35 = vpop.f32.mrb[54].mxu1  ;;  %v4844_v1 = vadd.f32 %v4843_v30, %v4842_v34  ;;  %v4845_v11 = vpop.f32.mrb[54].mxu0 }
 0x168   : > { %v4782_v6 = vpop.f32.mrb[55].mxu1  ;;  %v4846_v33 = vpop.f32.mrb[55].mxu0 }
 0x169   : > { %v1624_v26 = vadd.f32 %v4780_v38, %v6629_v13  ;;  %v4783_v45 = vadd.f32 %v4782_v6, %v4781_v35  ;;  %v4847_v42 = vadd.f32 %v4846_v33, %v4845_v11 }
 0x16b   : > { %v6711_v39 = vadd.f32 %v4844_v1, %v1624_v26  ;;  %v1625_v22 = vadd.f32 %v4783_v45, %v6641_v29 }
 0x16d   : > { %v6714_v9 = vadd.f32 %v4847_v42, %v1625_v22  ;;  %v4784_v41 = vpop.f32.mrb[56].mxu1  ;;  %v4848_v17 = vpop.f32.mrb[56].mxu0 }
 0x16e   : > { %v4785_v46 = vpop.f32.mrb[57].mxu1  ;;  %v4849_v47 = vpop.f32.mrb[57].mxu0 }
 0x16f   : > { %v4786_v25 = vadd.f32 %v4785_v46, %v4784_v41  ;;  %v4787_v53 = vpop.f32.mrb[58].mxu1  ;;  %v4850_v40 = vadd.f32 %v4849_v47, %v4848_v17  ;;  %v4851_v52 = vpop.f32.mrb[58].mxu0 }
 0x170   : > { %v4788_v51 = vpop.f32.mrb[59].mxu1  ;;  %v4852_v44 = vpop.f32.mrb[59].mxu0 }
 0x171   : > { %v1626_v13 = vadd.f32 %v4786_v25, %v6648_v57  ;;  %v4789_v55 = vadd.f32 %v4788_v51, %v4787_v53  ;;  %v4853_v23 = vadd.f32 %v4852_v44, %v4851_v52 }
 0x173   : > { %v6717_v12 = vadd.f32 %v4850_v40, %v1626_v13  ;;  %v1627_v29 = vadd.f32 %v4789_v55, %v6662_v4 }
 0x175   : > { %v6720_v15 = vadd.f32 %v4853_v23, %v1627_v29  ;;  %v4790_v50 = vpop.f32.mrb[60].mxu1  ;;  %v4854_v31 = vpop.f32.mrb[60].mxu0 }
 0x176   : > { %v4791_v61 = vpop.f32.mrb[61].mxu1  ;;  %v4855_v2 = vpop.f32.mrb[61].mxu0 }
 0x177   : > { %v4792_v36 = vadd.f32 %v4791_v61, %v4790_v50  ;;  %v4793_v8 = vpop.f32.mrb[62].mxu1  ;;  %v4856_v18 = vadd.f32 %v4855_v2, %v4854_v31  ;;  %v4857_v7 = vpop.f32.mrb[62].mxu0 }
 0x178   : > { %v4794_v63 = vpop.f32.mrb[63].mxu1  ;;  %v4858_v10 = vpop.f32.mrb[63].mxu0 }
 0x179   : > { %v1628_v57 = vadd.f32 %v4792_v36, %v6672_v49  ;;  %v4795_v5 = vadd.f32 %v4794_v63, %v4793_v8  ;;  %v4859_v59 = vadd.f32 %v4858_v10, %v4857_v7 }
 0x17b   : > { %v6723_v16 = vadd.f32 %v4856_v18, %v1628_v57  ;;  %v1629_v4 = vadd.f32 %v4795_v5, %v6678_v24 }
 0x17d   : > { %v6726_v58 = vadd.f32 %v4859_v59, %v1629_v4  ;;  %v4796_v19 = vpop.f32.mrb[64].mxu1  ;;  %v4860_v37 = vpop.f32.mrb[64].mxu0 }
 0x17e   : > { %v4797_v14 = vpop.f32.mrb[65].mxu1  ;;  %v4861_v54 = vpop.f32.mrb[65].mxu0 }
 0x17f   : > { %v4798_v60 = vadd.f32 %v4797_v14, %v4796_v19  ;;  %v4799_v34 = vpop.f32.mrb[66].mxu1  ;;  %v4862_v21 = vadd.f32 %v4861_v54, %v4860_v37  ;;  %v4863_v38 = vpop.f32.mrb[66].mxu0 }
 0x180   : > { %v4800_v30 = vpop.f32.mrb[67].mxu1  ;;  %v4864_v1 = vpop.f32.mrb[67].mxu0 }
 0x181   : > { %v1630_v49 = vadd.f32 %v4798_v60, %v6681_v3  ;;  %v4801_v35 = vadd.f32 %v4800_v30, %v4799_v34  ;;  %v4865_v11 = vadd.f32 %v4864_v1, %v4863_v38 }
 0x183   : > { %v6729_v6 = vadd.f32 %v4862_v21, %v1630_v49  ;;  %v1631_v24 = vadd.f32 %v4801_v35, %v6684_v20 }
 0x185   : > { %v6732_v26 = vadd.f32 %v4865_v11, %v1631_v24  ;;  %v4802_v45 = vpop.f32.mrb[68].mxu1  ;;  %v4866_v33 = vpop.f32.mrb[68].mxu0 }
 0x186   : > { %v4803_v42 = vpop.f32.mrb[69].mxu1  ;;  %v4867_v41 = vpop.f32.mrb[69].mxu0 }
 0x187   : > { %v4804_v22 = vadd.f32 %v4803_v42, %v4802_v45  ;;  %v4805_v17 = vpop.f32.mrb[70].mxu1  ;;  %v4868_v46 = vadd.f32 %v4867_v41, %v4866_v33  ;;  %v4869_v25 = vpop.f32.mrb[70].mxu0 }
 0x188   : > { %v4806_v47 = vpop.f32.mrb[71].mxu1  ;;  %v4870_v40 = vpop.f32.mrb[71].mxu0 }
 0x189   : > { %v1632_v3 = vadd.f32 %v4804_v22, %v6687_v28  ;;  %v4807_v53 = vadd.f32 %v4806_v47, %v4805_v17  ;;  %v4871_v52 = vadd.f32 %v4870_v40, %v4869_v25 }
 0x18b   : > { %v6735_v51 = vadd.f32 %v4868_v46, %v1632_v3  ;;  %v1633_v20 = vadd.f32 %v4807_v53, %v6690_v27 }
 0x18d   : > { %v6738_v13 = vadd.f32 %v4871_v52, %v1633_v20  ;;  %v4808_v55 = vpop.f32.mrb[72].mxu1  ;;  %v4872_v44 = vpop.f32.mrb[72].mxu0 }
 0x18e   : > { %v4809_v23 = vpop.f32.mrb[73].mxu1  ;;  %v4873_v50 = vpop.f32.mrb[73].mxu0 }
 0x18f   : > { %v4810_v29 = vadd.f32 %v4809_v23, %v4808_v55  ;;  %v4811_v31 = vpop.f32.mrb[74].mxu1  ;;  %v4874_v61 = vadd.f32 %v4873_v50, %v4872_v44  ;;  %v4875_v36 = vpop.f32.mrb[74].mxu0 }
 0x190   : > { %v4812_v2 = vpop.f32.mrb[75].mxu1  ;;  %v4876_v18 = vpop.f32.mrb[75].mxu0 }
 0x191   : > { %v1634_v28 = vadd.f32 %v4810_v29, %v6693_v56  ;;  %v4813_v8 = vadd.f32 %v4812_v2, %v4811_v31  ;;  %v4877_v7 = vadd.f32 %v4876_v18, %v4875_v36 }
 0x193   : > { %v6741_v63 = vadd.f32 %v4874_v61, %v1634_v28  ;;  %v1635_v27 = vadd.f32 %v4813_v8, %v6696_v43 }
 0x195   : > { %v6744_v57 = vadd.f32 %v4877_v7, %v1635_v27  ;;  %v4814_v5 = vpop.f32.mrb[76].mxu1  ;;  %v4878_v10 = vpop.f32.mrb[76].mxu0 }
 0x196   : > { %v4815_v59 = vpop.f32.mrb[77].mxu1  ;;  %v4879_v19 = vpop.f32.mrb[77].mxu0 }
 0x197   : > { %v4816_v4 = vadd.f32 %v4815_v59, %v4814_v5  ;;  %v4817_v37 = vpop.f32.mrb[78].mxu1  ;;  %v4880_v14 = vadd.f32 %v4879_v19, %v4878_v10  ;;  %v4881_v60 = vpop.f32.mrb[78].mxu0 }
 0x198   : > { %v4818_v54 = vpop.f32.mrb[79].mxu1  ;;  %v4882_v21 = vpop.f32.mrb[79].mxu0 }
 0x199   : > { %v1636_v56 = vadd.f32 %v4816_v4, %v6699_v0  ;;  %v4819_v34 = vadd.f32 %v4818_v54, %v4817_v37  ;;  %v4883_v38 = vadd.f32 %v4882_v21, %v4881_v60 }
 0x19b   : > { %v6747_v30 = vadd.f32 %v4880_v14, %v1636_v56  ;;  %v1637_v43 = vadd.f32 %v4819_v34, %v6702_v62 }
 0x19d   : > { %v6750_v49 = vadd.f32 %v4883_v38, %v1637_v43  ;;  %v4900_v35 = vpop.f32.mrb[80].mxu1  ;;  %v4964_v1 = vpop.f32.mrb[80].mxu0 }
 0x19e   : > { %v4901_v11 = vpop.f32.mrb[81].mxu1  ;;  %v4965_v45 = vpop.f32.mrb[81].mxu0 }
 0x19f   : > { %v4902_v24 = vadd.f32 %v4901_v11, %v4900_v35  ;;  %v4903_v33 = vpop.f32.mrb[82].mxu1  ;;  %v4966_v42 = vadd.f32 %v4965_v45, %v4964_v1  ;;  %v4967_v22 = vpop.f32.mrb[82].mxu0 }
 0x1a0   : > { %v4904_v41 = vpop.f32.mrb[83].mxu1  ;;  %v4968_v46 = vpop.f32.mrb[83].mxu0 }
 0x1a1   : > { %v2522_v0 = vadd.f32 %v4902_v24, %v6705_v48  ;;  %v4905_v17 = vadd.f32 %v4904_v41, %v4903_v33  ;;  %v4969_v25 = vadd.f32 %v4968_v46, %v4967_v22 }
 0x1a3   : > { %v6753_v47 = vadd.f32 %v4966_v42, %v2522_v0  ;;  %v2523_v62 = vadd.f32 %v4905_v17, %v6708_v32 }
 0x1a5   : > { %v6756_v3 = vadd.f32 %v4969_v25, %v2523_v62  ;;  %v4906_v53 = vpop.f32.mrb[84].mxu1  ;;  %v4970_v40 = vpop.f32.mrb[84].mxu0 }
 0x1a6   : > { %v4907_v52 = vpop.f32.mrb[85].mxu1  ;;  %v4971_v55 = vpop.f32.mrb[85].mxu0 }
 0x1a7   : > { %v4908_v20 = vadd.f32 %v4907_v52, %v4906_v53  ;;  %v4909_v44 = vpop.f32.mrb[86].mxu1  ;;  %v4972_v23 = vadd.f32 %v4971_v55, %v4970_v40  ;;  %v4973_v29 = vpop.f32.mrb[86].mxu0 }
 0x1a8   : > { %v4910_v50 = vpop.f32.mrb[87].mxu1  ;;  %v4974_v61 = vpop.f32.mrb[87].mxu0 }
 0x1a9   : > { %v2524_v48 = vadd.f32 %v4908_v20, %v6711_v39  ;;  %v4911_v31 = vadd.f32 %v4910_v50, %v4909_v44  ;;  %v4975_v36 = vadd.f32 %v4974_v61, %v4973_v29 }
 0x1ab   : > { %v6759_v2 = vadd.f32 %v4972_v23, %v2524_v48  ;;  %v2525_v32 = vadd.f32 %v4911_v31, %v6714_v9 }
 0x1ad   : > { %v6762_v28 = vadd.f32 %v4975_v36, %v2525_v32  ;;  %v4912_v8 = vpop.f32.mrb[88].mxu1  ;;  %v4976_v18 = vpop.f32.mrb[88].mxu0 }
 0x1ae   : > { %v4913_v7 = vpop.f32.mrb[89].mxu1  ;;  %v4977_v5 = vpop.f32.mrb[89].mxu0 }
 0x1af   : > { %v4914_v27 = vadd.f32 %v4913_v7, %v4912_v8  ;;  %v4915_v10 = vpop.f32.mrb[90].mxu1  ;;  %v4978_v59 = vadd.f32 %v4977_v5, %v4976_v18  ;;  %v4979_v4 = vpop.f32.mrb[90].mxu0 }
 0x1b0   : > { %v4916_v19 = vpop.f32.mrb[91].mxu1  ;;  %v4980_v14 = vpop.f32.mrb[91].mxu0 }
 0x1b1   : > { %v2526_v39 = vadd.f32 %v4914_v27, %v6717_v12  ;;  %v4917_v37 = vadd.f32 %v4916_v19, %v4915_v10  ;;  %v4981_v60 = vadd.f32 %v4980_v14, %v4979_v4 }
 0x1b3   : > { %v6765_v54 = vadd.f32 %v4978_v59, %v2526_v39  ;;  %v2527_v9 = vadd.f32 %v4917_v37, %v6720_v15 }
 0x1b5   : > { %v6768_v56 = vadd.f32 %v4981_v60, %v2527_v9  ;;  %v4918_v34 = vpop.f32.mrb[92].mxu1  ;;  %v4982_v21 = vpop.f32.mrb[92].mxu0 }
 0x1b6   : > { %v4919_v38 = vpop.f32.mrb[93].mxu1  ;;  %v4983_v35 = vpop.f32.mrb[93].mxu0 }
 0x1b7   : > { %v4920_v43 = vadd.f32 %v4919_v38, %v4918_v34  ;;  %v4921_v1 = vpop.f32.mrb[94].mxu1  ;;  %v4984_v11 = vadd.f32 %v4983_v35, %v4982_v21  ;;  %v4985_v24 = vpop.f32.mrb[94].mxu0 }
 0x1b8   : > { %v4922_v45 = vpop.f32.mrb[95].mxu1  ;;  %v4986_v42 = vpop.f32.mrb[95].mxu0 }
 0x1b9   : > { %v2528_v12 = vadd.f32 %v4920_v43, %v6723_v16  ;;  %v4923_v33 = vadd.f32 %v4922_v45, %v4921_v1  ;;  %v4987_v22 = vadd.f32 %v4986_v42, %v4985_v24 }
 0x1bb   : > { %v6771_v41 = vadd.f32 %v4984_v11, %v2528_v12  ;;  %v2529_v15 = vadd.f32 %v4923_v33, %v6726_v58 }
 0x1bd   : > { %v6774_v0 = vadd.f32 %v4987_v22, %v2529_v15  ;;  %v4924_v17 = vpop.f32.mrb[96].mxu1  ;;  %v4988_v46 = vpop.f32.mrb[96].mxu0 }
 0x1be   : > { %v4925_v25 = vpop.f32.mrb[97].mxu1  ;;  %v4989_v53 = vpop.f32.mrb[97].mxu0 }
 0x1bf   : > { %v4926_v62 = vadd.f32 %v4925_v25, %v4924_v17  ;;  %v4927_v40 = vpop.f32.mrb[98].mxu1  ;;  %v4990_v52 = vadd.f32 %v4989_v53, %v4988_v46  ;;  %v4991_v20 = vpop.f32.mrb[98].mxu0 }
 0x1c0   : > { %v4928_v55 = vpop.f32.mrb[99].mxu1  ;;  %v4992_v23 = vpop.f32.mrb[99].mxu0 }
 0x1c1   : > { %v2530_v16 = vadd.f32 %v4926_v62, %v6729_v6  ;;  %v4929_v44 = vadd.f32 %v4928_v55, %v4927_v40  ;;  %v4993_v29 = vadd.f32 %v4992_v23, %v4991_v20 }
 0x1c3   : > { %v6777_v50 = vadd.f32 %v4990_v52, %v2530_v16  ;;  %v2531_v58 = vadd.f32 %v4929_v44, %v6732_v26 }
 0x1c5   : > { %v6780_v48 = vadd.f32 %v4993_v29, %v2531_v58  ;;  %v4930_v31 = vpop.f32.mrb[100].mxu1  ;;  %v4994_v61 = vpop.f32.mrb[100].mxu0 }
 0x1c6   : > { %v4931_v36 = vpop.f32.mrb[101].mxu1  ;;  %v4995_v8 = vpop.f32.mrb[101].mxu0 }
 0x1c7   : > { %v4932_v32 = vadd.f32 %v4931_v36, %v4930_v31  ;;  %v4933_v18 = vpop.f32.mrb[102].mxu1  ;;  %v4996_v7 = vadd.f32 %v4995_v8, %v4994_v61  ;;  %v4997_v27 = vpop.f32.mrb[102].mxu0 }
 0x1c8   : > { %v4934_v5 = vpop.f32.mrb[103].mxu1  ;;  %v4998_v59 = vpop.f32.mrb[103].mxu0 }
 0x1c9   : > { %v2532_v6 = vadd.f32 %v4932_v32, %v6735_v51  ;;  %v4935_v10 = vadd.f32 %v4934_v5, %v4933_v18  ;;  %v4999_v4 = vadd.f32 %v4998_v59, %v4997_v27 }
 0x1cb   : > { %v6783_v19 = vadd.f32 %v4996_v7, %v2532_v6  ;;  %v2533_v26 = vadd.f32 %v4935_v10, %v6738_v13 }
 0x1cd   : > { %v6786_v39 = vadd.f32 %v4999_v4, %v2533_v26  ;;  %v4936_v37 = vpop.f32.mrb[104].mxu1  ;;  %v5000_v14 = vpop.f32.mrb[104].mxu0 }
 0x1ce   : > { %v4937_v60 = vpop.f32.mrb[105].mxu1  ;;  %v5001_v34 = vpop.f32.mrb[105].mxu0 }
 0x1cf   : > { %v4938_v9 = vadd.f32 %v4937_v60, %v4936_v37  ;;  %v4939_v21 = vpop.f32.mrb[106].mxu1  ;;  %v5002_v38 = vadd.f32 %v5001_v34, %v5000_v14  ;;  %v5003_v43 = vpop.f32.mrb[106].mxu0 }
 0x1d0   : > { %v4940_v35 = vpop.f32.mrb[107].mxu1  ;;  %v5004_v11 = vpop.f32.mrb[107].mxu0 }
 0x1d1   : > { %v2534_v51 = vadd.f32 %v4938_v9, %v6741_v63  ;;  %v4941_v1 = vadd.f32 %v4940_v35, %v4939_v21  ;;  %v5005_v24 = vadd.f32 %v5004_v11, %v5003_v43 }
 0x1d3   : > { %v6789_v45 = vadd.f32 %v5002_v38, %v2534_v51  ;;  %v2535_v13 = vadd.f32 %v4941_v1, %v6744_v57 }
 0x1d5   : > { %v6793_v12 = vadd.f32 %v5005_v24, %v2535_v13  ;;  %v4942_v33 = vpop.f32.mrb[108].mxu1  ;;  %v5006_v42 = vpop.f32.mrb[108].mxu0 }
 0x1d6   : > { %v4943_v22 = vpop.f32.mrb[109].mxu1  ;;  %v5007_v17 = vpop.f32.mrb[109].mxu0 }
 0x1d7   : > { %v4944_v15 = vadd.f32 %v4943_v22, %v4942_v33  ;;  %v4945_v46 = vpop.f32.mrb[110].mxu1  ;;  %v5008_v25 = vadd.f32 %v5007_v17, %v5006_v42  ;;  %v5009_v63 = vpop.f32.mrb[110].mxu0 }
 0x1d8   : > { %v4946_v62 = vpop.f32.mrb[111].mxu1  ;;  %v5010_v52 = vpop.f32.mrb[111].mxu0 }
 0x1d9   : > { %v2536_v53 = vadd.f32 %v4944_v15, %v6747_v30  ;;  %v4947_v40 = vadd.f32 %v4946_v62, %v4945_v46  ;;  %v5011_v20 = vadd.f32 %v5010_v52, %v5009_v63 }
 0x1db   : > { %v6796_v57 = vadd.f32 %v5008_v25, %v2536_v53  ;;  %v2537_v55 = vadd.f32 %v4947_v40, %v6750_v49  ;;  %v6806_v49 = vld [vmem:[%s6877_s2] ss:$0 sm:$0xff] }
 0x1dd   : > { %v6799_v16 = vadd.f32 %v5011_v20, %v2537_v55  ;;  %v5028_v44 = vpop.f32.mrb[112].mxu1  ;;  %v5092_v23 = vpop.f32.mrb[112].mxu0 }
 0x1de   : > { %v5029_v29 = vpop.f32.mrb[113].mxu1  ;;  %v5093_v31 = vpop.f32.mrb[113].mxu0 }
 0x1df   : > { %v5030_v58 = vadd.f32 %v5029_v29, %v5028_v44  ;;  %v5031_v61 = vpop.f32.mrb[114].mxu1  ;;  %v5094_v36 = vadd.f32 %v5093_v31, %v5092_v23  ;;  %v5095_v30 = vpop.f32.mrb[114].mxu0 }
 0x1e0   : > { %v5032_v32 = vpop.f32.mrb[115].mxu1  ;;  %v5096_v7 = vpop.f32.mrb[115].mxu0 }
 0x1e1   : > { %v3282_v8 = vadd.f32 %v5030_v58, %v6753_v47  ;;  %v5033_v18 = vadd.f32 %v5032_v32, %v5031_v61  ;;  %v5097_v27 = vadd.f32 %v5096_v7, %v5095_v30 }
 0x1e3   : > { %v3716_v5 = vadd.f32 %v5094_v36, %v3282_v8  ;;  %v3283_v6 = vadd.f32 %v5033_v18, %v6756_v3 }
 0x1e5   : > { %v3739_v10 = vadd.f32 %v6806_v49, %v3716_v5  ;;  %v3717_v59 = vadd.f32 %v5097_v27, %v3283_v6  ;;  %v5034_v4 = vpop.f32.mrb[116].mxu1  ;;  %v5098_v26 = vpop.f32.mrb[116].mxu0 }
 0x1e6   : > { %v5035_v37 = vpop.f32.mrb[117].mxu1  ;;  %v5099_v3 = vpop.f32.mrb[117].mxu0 }
 0x1e7   : > { %vm3755_vm2 = vcmp.gt.f32.partialorder %v3739_v10, 0.0  ;;  %v3771_v47 = vmul.f32 0.01, %v3739_v10  ;;  %v3740_v14 = vadd.f32 %v6806_v49, %v3717_v59  ;;  %v5036_v60 = vadd.f32 %v5035_v37, %v5034_v4  ;;  %v5037_v9 = vpop.f32.mrb[118].mxu1  ;;  %v5101_v21 = vpop.f32.mrb[118].mxu0 }
 0x1e8   : > { %v5100_v34 = vadd.f32 %v5099_v3, %v5098_v26  ;;  %v5038_v38 = vpop.f32.mrb[119].mxu1  ;;  %v5102_v1 = vpop.f32.mrb[119].mxu0 }
 0x1e9   : > { %v3787_v43 = vsel %vm3755_vm2, %v3739_v10, %v3771_v47  ;;  %vm3756_vm3 = vcmp.gt.f32.partialorder %v3740_v14, 0.0  ;;  %v3772_v35 = vmul.f32 0.01, %v3740_v14  ;;  %v3284_v51 = vadd.f32 %v5036_v60, %v6759_v2 }
 0x1ea   : > { %3803 = vst [vmem:[%s6813_s6] sm:$0xff] %v3787_v43  ;;  %v5039_v11 = vadd.f32 %v5038_v38, %v5037_v9  ;;  %v5103_v24 = vadd.f32 %v5102_v1, %v5101_v21 }
 0x1eb   : > { %v3788_v13 = vsel %vm3756_vm3, %v3740_v14, %v3772_v35  ;;  %v3718_v33 = vadd.f32 %v5100_v34, %v3284_v51 }
 0x1ec   : > { %3804 = vst [vmem:[%s6813_s6 + $0x8] sm:$0xff] %v3788_v13  ;;  %v3285_v42 = vadd.f32 %v5039_v11, %v6762_v28 }
 0x1ed   : > { %v3741_v22 = vadd.f32 %v6806_v49, %v3718_v33  ;;  %v5040_v15 = vpop.f32.mrb[120].mxu1  ;;  %v5104_v46 = vpop.f32.mrb[120].mxu0 }
 0x1ee   : > { %v3719_v17 = vadd.f32 %v5103_v24, %v3285_v42  ;;  %v5041_v25 = vpop.f32.mrb[121].mxu1  ;;  %v5105_v2 = vpop.f32.mrb[121].mxu0 }
 0x1ef   : > { %vm3757_vm4 = vcmp.gt.f32.partialorder %v3741_v22, 0.0  ;;  %v3773_v63 = vmul.f32 0.01, %v3741_v22  ;;  %v5042_v62 = vadd.f32 %v5041_v25, %v5040_v15  ;;  %v5043_v53 = vpop.f32.mrb[122].mxu1  ;;  %v5106_v52 = vadd.f32 %v5105_v2, %v5104_v46  ;;  %v5107_v20 = vpop.f32.mrb[122].mxu0 }
 0x1f0   : > { %v3742_v40 = vadd.f32 %v6806_v49, %v3719_v17  ;;  %v5044_v55 = vpop.f32.mrb[123].mxu1  ;;  %v5108_v29 = vpop.f32.mrb[123].mxu0 }
 0x1f1   : > { %v3789_v44 = vsel %vm3757_vm4, %v3741_v22, %v3773_v63  ;;  %v3286_v28 = vadd.f32 %v5042_v62, %v6765_v54  ;;  %v5045_v23 = vadd.f32 %v5044_v55, %v5043_v53  ;;  %v5109_v31 = vadd.f32 %v5108_v29, %v5107_v20 }
 0x1f2   : > { %3805 = vst [vmem:[%s6813_s6 + $0x10] sm:$0xff] %v3789_v44  ;;  %vm3758_vm5 = vcmp.gt.f32.partialorder %v3742_v40, 0.0  ;;  %v3774_v58 = vmul.f32 0.01, %v3742_v40 }
 0x1f3   : > { %v3720_v61 = vadd.f32 %v5106_v52, %v3286_v28  ;;  %v3287_v36 = vadd.f32 %v5045_v23, %v6768_v56 }
 0x1f4   : > { %v3790_v30 = vsel %vm3758_vm5, %v3742_v40, %v3774_v58 }
 0x1f5   : > { %3806 = vst [vmem:[%s6813_s6 + $0x18] sm:$0xff] %v3790_v30  ;;  %v3743_v32 = vadd.f32 %v6806_v49, %v3720_v61  ;;  %v3721_v8 = vadd.f32 %v5109_v31, %v3287_v36  ;;  %v5046_v18 = vpop.f32.mrb[124].mxu1  ;;  %v5110_v7 = vpop.f32.mrb[124].mxu0 }
 0x1f6   : > { %v5047_v27 = vpop.f32.mrb[125].mxu1  ;;  %v5111_v10 = vpop.f32.mrb[125].mxu0 }
 0x1f7   : > { %vm3759_vm6 = vcmp.gt.f32.partialorder %v3743_v32, 0.0  ;;  %v3775_v54 = vmul.f32 0.01, %v3743_v32  ;;  %v3744_v5 = vadd.f32 %v6806_v49, %v3721_v8  ;;  %v5048_v6 = vadd.f32 %v5047_v27, %v5046_v18  ;;  %v5049_v59 = vpop.f32.mrb[126].mxu1  ;;  %v5113_v26 = vpop.f32.mrb[126].mxu0 }
 0x1f8   : > { %v5112_v4 = vadd.f32 %v5111_v10, %v5110_v7  ;;  %v5050_v56 = vpop.f32.mrb[127].mxu1  ;;  %v5114_v60 = vpop.f32.mrb[127].mxu0 }
 0x1f9   : > { %v3791_v37 = vsel %vm3759_vm6, %v3743_v32, %v3775_v54  ;;  %vm3760_vm7 = vcmp.gt.f32.partialorder %v3744_v5, 0.0  ;;  %v3776_v47 = vmul.f32 0.01, %v3744_v5  ;;  %v3288_v14 = vadd.f32 %v5048_v6, %v6771_v41 }
 0x1fa   : > { %3807 = vst [vmem:[%s6813_s6 + $0x20] sm:$0xff] %v3791_v37  ;;  %v5051_v3 = vadd.f32 %v5050_v56, %v5049_v59  ;;  %v5115_v9 = vadd.f32 %v5114_v60, %v5113_v26 }
 0x1fb   : > { %v3792_v34 = vsel %vm3760_vm7, %v3744_v5, %v3776_v47  ;;  %v3722_v21 = vadd.f32 %v5112_v4, %v3288_v14 }
 0x1fc   : > { %3808 = vst [vmem:[%s6813_s6 + $0x28] sm:$0xff] %v3792_v34  ;;  %v3289_v38 = vadd.f32 %v5051_v3, %v6774_v0 }
 0x1fd   : > { %v3745_v43 = vadd.f32 %v6806_v49, %v3722_v21  ;;  %v5052_v35 = vpop.f32.mrb[128].mxu1  ;;  %v5116_v1 = vpop.f32.mrb[128].mxu0 }
 0x1fe   : > { %v3723_v51 = vadd.f32 %v5115_v9, %v3289_v38  ;;  %v5053_v11 = vpop.f32.mrb[129].mxu1  ;;  %v5117_v41 = vpop.f32.mrb[129].mxu0 }
 0x1ff   : > { %vm3761_vm8 = vcmp.gt.f32.partialorder %v3745_v43, 0.0  ;;  %v3777_v24 = vmul.f32 0.01, %v3745_v43  ;;  %v5054_v13 = vadd.f32 %v5053_v11, %v5052_v35  ;;  %v5055_v33 = vpop.f32.mrb[130].mxu1  ;;  %v5118_v22 = vadd.f32 %v5117_v41, %v5116_v1  ;;  %v5119_v15 = vpop.f32.mrb[130].mxu0 }
 0x200   : > { %v3746_v42 = vadd.f32 %v6806_v49, %v3723_v51  ;;  %v5056_v17 = vpop.f32.mrb[131].mxu1  ;;  %v5120_v63 = vpop.f32.mrb[131].mxu0 }
 0x201   : > { %v3793_v46 = vsel %vm3761_vm8, %v3745_v43, %v3777_v24  ;;  %v3290_v0 = vadd.f32 %v5054_v13, %v6777_v50  ;;  %v5057_v25 = vadd.f32 %v5056_v17, %v5055_v33  ;;  %v5121_v2 = vadd.f32 %v5120_v63, %v5119_v15 }
 0x202   : > { %3809 = vst [vmem:[%s6813_s6 + $0x30] sm:$0xff] %v3793_v46  ;;  %vm3762_vm9 = vcmp.gt.f32.partialorder %v3746_v42, 0.0  ;;  %v3778_v62 = vmul.f32 0.01, %v3746_v42 }
 0x203   : > { %v3724_v53 = vadd.f32 %v5118_v22, %v3290_v0  ;;  %v3291_v40 = vadd.f32 %v5057_v25, %v6780_v48 }
 0x204   : > { %v3794_v52 = vsel %vm3762_vm9, %v3746_v42, %v3778_v62 }
 0x205   : > { %3810 = vst [vmem:[%s6813_s6 + $0x38] sm:$0xff] %v3794_v52  ;;  %v3747_v20 = vadd.f32 %v6806_v49, %v3724_v53  ;;  %v3725_v55 = vadd.f32 %v5121_v2, %v3291_v40  ;;  %v5058_v44 = vpop.f32.mrb[132].mxu1  ;;  %v5122_v28 = vpop.f32.mrb[132].mxu0 }
 0x206   : > { %v5059_v23 = vpop.f32.mrb[133].mxu1  ;;  %v5123_v31 = vpop.f32.mrb[133].mxu0 }
 0x207   : > { %vm3763_vm10 = vcmp.gt.f32.partialorder %v3747_v20, 0.0  ;;  %v3779_v50 = vmul.f32 0.01, %v3747_v20  ;;  %v3748_v29 = vadd.f32 %v6806_v49, %v3725_v55  ;;  %v5060_v58 = vadd.f32 %v5059_v23, %v5058_v44  ;;  %v5061_v61 = vpop.f32.mrb[134].mxu1  ;;  %v5125_v30 = vpop.f32.mrb[134].mxu0 }
 0x208   : > { %v5124_v36 = vadd.f32 %v5123_v31, %v5122_v28  ;;  %v5062_v48 = vpop.f32.mrb[135].mxu1  ;;  %v5126_v7 = vpop.f32.mrb[135].mxu0 }
 0x209   : > { %v3795_v32 = vsel %vm3763_vm10, %v3747_v20, %v3779_v50  ;;  %vm3764_vm11 = vcmp.gt.f32.partialorder %v3748_v29, 0.0  ;;  %v3780_v8 = vmul.f32 0.01, %v3748_v29  ;;  %v3292_v18 = vadd.f32 %v5060_v58, %v6783_v19 }
 0x20a   : > { %3811 = vst [vmem:[%s6813_s6 + $0x40] sm:$0xff] %v3795_v32  ;;  %v5063_v27 = vadd.f32 %v5062_v48, %v5061_v61  ;;  %v5127_v54 = vadd.f32 %v5126_v7, %v5125_v30 }
 0x20b   : > { %v3796_v5 = vsel %vm3764_vm11, %v3748_v29, %v3780_v8  ;;  %v3726_v6 = vadd.f32 %v5124_v36, %v3292_v18 }
 0x20c   : > { %3812 = vst [vmem:[%s6813_s6 + $0x48] sm:$0xff] %v3796_v5  ;;  %v3293_v10 = vadd.f32 %v5063_v27, %v6786_v39 }
 0x20d   : > { %v3749_v59 = vadd.f32 %v6806_v49, %v3726_v6  ;;  %v5064_v4 = vpop.f32.mrb[136].mxu1  ;;  %v5128_v56 = vpop.f32.mrb[136].mxu0 }
 0x20e   : > { %v3727_v26 = vadd.f32 %v5127_v54, %v3293_v10  ;;  %v5065_v37 = vpop.f32.mrb[137].mxu1  ;;  %v5129_v19 = vpop.f32.mrb[137].mxu0 }
 0x20f   : > { %vm3765_vm12 = vcmp.gt.f32.partialorder %v3749_v59, 0.0  ;;  %v3781_v47 = vmul.f32 0.01, %v3749_v59  ;;  %v5066_v14 = vadd.f32 %v5065_v37, %v5064_v4  ;;  %v5067_v60 = vpop.f32.mrb[138].mxu1  ;;  %v5130_v9 = vadd.f32 %v5129_v19, %v5128_v56  ;;  %v5131_v34 = vpop.f32.mrb[138].mxu0 }
 0x210   : > { %v3750_v3 = vadd.f32 %v6806_v49, %v3727_v26  ;;  %v5068_v21 = vpop.f32.mrb[139].mxu1  ;;  %v5132_v35 = vpop.f32.mrb[139].mxu0 }
 0x211   : > { %v3797_v38 = vsel %vm3765_vm12, %v3749_v59, %v3781_v47  ;;  %v3294_v39 = vadd.f32 %v5066_v14, %v6789_v45  ;;  %v5069_v43 = vadd.f32 %v5068_v21, %v5067_v60  ;;  %v5133_v1 = vadd.f32 %v5132_v35, %v5131_v34 }
 0x212   : > { %3813 = vst [vmem:[%s6813_s6 + $0x50] sm:$0xff] %v3797_v38  ;;  %vm3766_vm13 = vcmp.gt.f32.partialorder %v3750_v3, 0.0  ;;  %v3782_v51 = vmul.f32 0.01, %v3750_v3 }
 0x213   : > { %v3728_v11 = vadd.f32 %v5130_v9, %v3294_v39  ;;  %v3295_v24 = vadd.f32 %v5069_v43, %v6793_v12 }
 0x214   : > { %v3798_v13 = vsel %vm3766_vm13, %v3750_v3, %v3782_v51 }
 0x215   : > { %3814 = vst [vmem:[%s6813_s6 + $0x58] sm:$0xff] %v3798_v13  ;;  %v3751_v41 = vadd.f32 %v6806_v49, %v3728_v11  ;;  %v3729_v33 = vadd.f32 %v5133_v1, %v3295_v24  ;;  %v5070_v42 = vpop.f32.mrb[140].mxu1  ;;  %v5134_v22 = vpop.f32.mrb[140].mxu0 }
 0x216   : > { %v5071_v15 = vpop.f32.mrb[141].mxu1  ;;  %v5135_v0 = vpop.f32.mrb[141].mxu0 }
 0x217   : > { %vm3767_vm14 = vcmp.gt.f32.partialorder %v3751_v41, 0.0  ;;  %v3783_v45 = vmul.f32 0.01, %v3751_v41  ;;  %v3752_v17 = vadd.f32 %v6806_v49, %v3729_v33  ;;  %v5072_v46 = vadd.f32 %v5071_v15, %v5070_v42  ;;  %v5073_v25 = vpop.f32.mrb[142].mxu1  ;;  %v5137_v62 = vpop.f32.mrb[142].mxu0 }
 0x218   : > { %v5136_v63 = vadd.f32 %v5135_v0, %v5134_v22  ;;  %v5074_v12 = vpop.f32.mrb[143].mxu1  ;;  %v5138_v52 = vpop.f32.mrb[143].mxu0 }
 0x219   : > { %v3799_v2 = vsel %vm3767_vm14, %v3751_v41, %v3783_v45  ;;  %vm3768_vm15 = vcmp.gt.f32.partialorder %v3752_v17, 0.0  ;;  %v3784_v53 = vmul.f32 0.01, %v3752_v17  ;;  %v3296_v40 = vadd.f32 %v5072_v46, %v6796_v57 }
 0x21a   : > { %3815 = vst [vmem:[%s6813_s6 + $0x60] sm:$0xff] %v3799_v2  ;;  %v5075_v20 = vadd.f32 %v5074_v12, %v5073_v25  ;;  %v5139_v55 = vadd.f32 %v5138_v52, %v5137_v62 }
 0x21b   : > { %v3800_v44 = vsel %vm3768_vm15, %v3752_v17, %v3784_v53  ;;  %v3730_v28 = vadd.f32 %v5136_v63, %v3296_v40 }
 0x21c   : > { %3816 = vst [vmem:[%s6813_s6 + $0x68] sm:$0xff] %v3800_v44  ;;  %v3297_v23 = vadd.f32 %v5075_v20, %v6799_v16 }
 0x21d   : > { %v3753_v50 = vadd.f32 %v6806_v49, %v3730_v28 }
 0x21e   : > { %v3731_v29 = vadd.f32 %v5139_v55, %v3297_v23 }
 0x21f   : > { %vm3769_vm0 = vcmp.gt.f32.partialorder %v3753_v50, 0.0  ;;  %v3785_v58 = vmul.f32 0.01, %v3753_v50 }
 0x220   : > { %v3754_v31 = vadd.f32 %v6806_v49, %v3731_v29 }
 0x221   : > { %v3801_v61 = vsel %vm3769_vm0, %v3753_v50, %v3785_v58 }
 0x222   : > { %3817 = vst [vmem:[%s6813_s6 + $0x70] sm:$0xff] %v3801_v61  ;;  %vm3770_vm1 = vcmp.gt.f32.partialorder %v3754_v31, 0.0  ;;  %v3786_v57 = vmul.f32 0.01, %v3754_v31 }
 0x224   : > { %v3802_v36 = vsel %vm3770_vm1, %v3754_v31, %v3786_v57 }
 0x225   : > { %3818 = vst [vmem:[%s6813_s6 + $0x78] sm:$0xff] %v3802_v36 }
 0x226 PF: > { %s13_s16 = sadd.s32 1, %s5382_s16   ;;  %s6879_s12 = smov %s5374_s14 }
 0x227   : > { %p10_p7 = scmp.ge.s32.totalorder %s13_s16, 6   ;;  %s6880_s13 = smov %s5378_s15 }
 0x228   : > { %s6881_s14 = smov %s6884_s17  ;;  %s6882_s15 = smov %s6888_s18 }
 0x229   :  { %12 = sbr.rel (!%p10_p7) target bundleno = 3 (0x3), region = 73 }

</bundles_post_ra>
